<compile_context>
chip_gen: v5e
topology: v5e:2x2
jax: 0.10.0
libtpu: 0.0.40
codegen_flags: <defaults>
</compile_context>

<pallas_src>
import functools

import jax
import jax.numpy as jnp
from jax import lax
from jax.experimental import pallas as pl
from jax.experimental.pallas import tpu as pltpu


def _conv_kernel(xpad_ref, w_ref, out_ref, patches_ref, *, KH, KW, dilation, H, W):
    """One batch element per grid step.

    xpad_ref:    (1, Hp, Wp, Cin)   reflect-padded input tile, bf16
    w_ref:       (Cout, KH*KW*Cin)  flattened weights, bf16
    out_ref:     (1, Cout, H*W)     output tile, f32 (lane axis = H*W, dense)
    patches_ref: (H*W, KH*KW*Cin)   VMEM scratch for the im2row matrix, bf16
    """
    Cin = xpad_ref.shape[3]
    d = dilation

    # Build the im2row matrix: column block t = (kh*KW + kw) holds the Cin
    # channels of that tap for every output pixel (row-major m = y*W + x).
    t = 0
    for kh in range(KH):
        for kw in range(KW):
            patch = xpad_ref[0, kh * d:kh * d + H, kw * d:kw * d + W, :]  # (H, W, Cin)
            patches_ref[:, t * Cin:(t + 1) * Cin] = patch.reshape(H * W, Cin)
            t += 1

    # Single folded contraction over K = KH*KW*Cin:
    #   (Cout, K) x (H*W, K)^T -> (Cout, H*W), f32 accumulation on the MXU.
    acc = lax.dot_general(
        w_ref[...], patches_ref[...],
        dimension_numbers=(((1,), (1,)), ((), ())),
        preferred_element_type=jnp.float32)

    out_ref[0] = acc.astype(out_ref.dtype)


def atrous_conv2d_reflect_pad(x_nchw, weight_oihw, *, dilation):
    """Forward pass of AtrousConv2D_ReflectPad (stride=1, padding=dilation, bias=False).

    x_nchw:      (N, Cin, H, W)      float32
    weight_oihw: (Cout, Cin, KH, KW) float32 (PyTorch Conv2d weight layout)
    Returns:     (N, Cout, H, W)     float32
    """
    N, Cin, H, W = x_nchw.shape
    Cout, _, KH, KW = weight_oihw.shape
    pad = dilation
    Hp, Wp = H + 2 * pad, W + 2 * pad
    K = KH * KW * Cin

    # Reflect pad (PyTorch 'reflect' == numpy 'reflect'), channels-last, bf16.
    x_pad = jnp.pad(x_nchw, ((0, 0), (0, 0), (pad, pad), (pad, pad)), mode="reflect")
    x_pad = jnp.transpose(x_pad, (0, 2, 3, 1)).astype(jnp.bfloat16)   # (N, Hp, Wp, Cin)

    # OIHW -> (Cout, KH*KW*Cin) with k = (kh*KW + kw)*Cin + cin (matches im2row order).
    w2 = jnp.transpose(weight_oihw, (0, 2, 3, 1)).reshape(Cout, K).astype(jnp.bfloat16)

    kernel = functools.partial(_conv_kernel, KH=KH, KW=KW, dilation=dilation, H=H, W=W)

    out_flat = pl.pallas_call(
        kernel,
        out_shape=jax.ShapeDtypeStruct((N, Cout, H * W), jnp.float32),
        grid_spec=pltpu.PrefetchScalarGridSpec(
            num_scalar_prefetch=0,
            grid=(N,),
            in_specs=[
                pl.BlockSpec((1, Hp, Wp, Cin), lambda n: (n, 0, 0, 0)),
                pl.BlockSpec((Cout, K), lambda n: (0, 0)),
            ],
            out_specs=pl.BlockSpec((1, Cout, H * W), lambda n: (n, 0, 0)),
            scratch_shapes=[pltpu.VMEM((H * W, K), jnp.bfloat16)],
        ),
        compiler_params=pltpu.CompilerParams(
            dimension_semantics=("parallel",)),
        cost_estimate=pl.CostEstimate(
            flops=2 * N * H * W * Cin * Cout * KH * KW,
            transcendentals=0,
            bytes_accessed=int(x_pad.size) * 2 + int(w2.size) * 2 + N * Cout * H * W * 4),
    )(x_pad, w2)

    # (N, Cout, H*W) -> (N, Cout, H, W): free reshape, no transpose.
    return out_flat.reshape(N, Cout, H, W)


def _reference(x_nchw, weight_oihw, *, dilation):
    # Match the kernel's bf16 operand rounding (accumulation stays f32).
    pad = dilation
    xq = x_nchw.astype(jnp.bfloat16).astype(jnp.float32)
    wq = weight_oihw.astype(jnp.bfloat16).astype(jnp.float32)
    x_pad = jnp.pad(xq, ((0, 0), (0, 0), (pad, pad), (pad, pad)), mode="reflect")
    return lax.conv_general_dilated(
        x_pad, wq,
        window_strides=(1, 1),
        padding="VALID",
        rhs_dilation=(dilation, dilation),
        dimension_numbers=("NCHW", "OIHW", "NCHW"),
    )


if __name__ == "__main__":
    # Module config: kernel_size=3, dilation=2 (the original module never
    # forwards `stride` to nn.Conv2d, so the effective stride is always 1).
    N, Cin, Cout, H, W = 2, 4, 8, 16, 16
    KSZ, DIL = 3, 2

    key = jax.random.PRNGKey(0)
    kx, kw = jax.random.split(key)
    x = jax.random.normal(kx, (N, Cin, H, W), dtype=jnp.float32)
    # Deterministic Conv2d weight, PyTorch OIHW layout, bias=False.
    weight = jax.random.normal(kw, (Cout, Cin, KSZ, KSZ), dtype=jnp.float32) * 0.1

    out = atrous_conv2d_reflect_pad(x, weight, dilation=DIL)
    out = jax.block_until_ready(out)

    ref = _reference(x, weight, dilation=DIL)
    assert out.shape == (N, Cout, H, W)
    assert jnp.allclose(out, ref, atol=1e-3, rtol=1e-3), "mismatch vs reference conv"

    print("KERNEL_OK")
</pallas_src>

<mosaic_0001>
module attributes {stable_mosaic.version = 11 : i64} {
  func.func @_conv_kernel(%arg0: i32, %arg1: memref<1x20x20x4xbf16, #tpu.memory_space<vmem>>, %arg2: memref<8x36xbf16, #tpu.memory_space<vmem>>, %arg3: memref<1x8x256xf32, #tpu.memory_space<vmem>>, %arg4: memref<256x36xbf16, #tpu.memory_space<vmem>>) attributes {dimension_semantics = [#tpu.dimension_semantics<parallel>], iteration_bounds = array<i64: 2>, scalar_prefetch = 0 : i64, scratch_operands = 1 : i64, tpu.core_type = #tpu.core_type<tc>, window_params = [{transform_indices = @transform_0, window_bounds = array<i64: 1, 20, 20, 4>}, {pipeline_mode = #tpu.pipeline_mode<synchronous>, transform_indices = @transform_1, window_bounds = array<i64: 8, 36>}, {transform_indices = @transform_2, window_bounds = array<i64: 1, 8, 256>}]} {
    %c0 = arith.constant 0 : index
    %c0_0 = arith.constant 0 : index
    %c0_1 = arith.constant 0 : index
    %c0_2 = arith.constant 0 : index
    %0 = vector.load %arg1[%c0, %c0_0, %c0_1, %c0_2] : memref<1x20x20x4xbf16, #tpu.memory_space<vmem>>, vector<1x16x16x4xbf16>
    %1 = vector.shape_cast %0 : vector<1x16x16x4xbf16> to vector<16x16x4xbf16>
    %2 = vector.shape_cast %1 : vector<16x16x4xbf16> to vector<256x4xbf16>
    %c0_3 = arith.constant 0 : index
    %c0_4 = arith.constant 0 : index
    %3 = vector.load %arg4[%c0_3, %c0_4] : memref<256x36xbf16, #tpu.memory_space<vmem>>, vector<256x4xbf16>
    tpu.vector_store %arg4[%c0_3, %c0_4], %2 {strides = array<i32>} : memref<256x36xbf16, #tpu.memory_space<vmem>>, vector<256x4xbf16>,
    %c0_5 = arith.constant 0 : index
    %c0_6 = arith.constant 0 : index
    %c2 = arith.constant 2 : index
    %c0_7 = arith.constant 0 : index
    %4 = vector.load %arg1[%c0_5, %c0_6, %c2, %c0_7] : memref<1x20x20x4xbf16, #tpu.memory_space<vmem>>, vector<1x16x16x4xbf16>
    %5 = vector.shape_cast %4 : vector<1x16x16x4xbf16> to vector<16x16x4xbf16>
    %6 = vector.shape_cast %5 : vector<16x16x4xbf16> to vector<256x4xbf16>
    %c0_8 = arith.constant 0 : index
    %c4 = arith.constant 4 : index
    %7 = vector.load %arg4[%c0_8, %c4] : memref<256x36xbf16, #tpu.memory_space<vmem>>, vector<256x4xbf16>
    tpu.vector_store %arg4[%c0_8, %c4], %6 {strides = array<i32>} : memref<256x36xbf16, #tpu.memory_space<vmem>>, vector<256x4xbf16>,
    %c0_9 = arith.constant 0 : index
    %c0_10 = arith.constant 0 : index
    %c4_11 = arith.constant 4 : index
    %c0_12 = arith.constant 0 : index
    %8 = vector.load %arg1[%c0_9, %c0_10, %c4_11, %c0_12] : memref<1x20x20x4xbf16, #tpu.memory_space<vmem>>, vector<1x16x16x4xbf16>
    %9 = vector.shape_cast %8 : vector<1x16x16x4xbf16> to vector<16x16x4xbf16>
    %10 = vector.shape_cast %9 : vector<16x16x4xbf16> to vector<256x4xbf16>
    %c0_13 = arith.constant 0 : index
    %c8 = arith.constant 8 : index
    %11 = vector.load %arg4[%c0_13, %c8] : memref<256x36xbf16, #tpu.memory_space<vmem>>, vector<256x4xbf16>
    tpu.vector_store %arg4[%c0_13, %c8], %10 {strides = array<i32>} : memref<256x36xbf16, #tpu.memory_space<vmem>>, vector<256x4xbf16>,
    %c0_14 = arith.constant 0 : index
    %c2_15 = arith.constant 2 : index
    %c0_16 = arith.constant 0 : index
    %c0_17 = arith.constant 0 : index
    %12 = vector.load %arg1[%c0_14, %c2_15, %c0_16, %c0_17] : memref<1x20x20x4xbf16, #tpu.memory_space<vmem>>, vector<1x16x16x4xbf16>
    %13 = vector.shape_cast %12 : vector<1x16x16x4xbf16> to vector<16x16x4xbf16>
    %14 = vector.shape_cast %13 : vector<16x16x4xbf16> to vector<256x4xbf16>
    %c0_18 = arith.constant 0 : index
    %c12 = arith.constant 12 : index
    %15 = vector.load %arg4[%c0_18, %c12] : memref<256x36xbf16, #tpu.memory_space<vmem>>, vector<256x4xbf16>
    tpu.vector_store %arg4[%c0_18, %c12], %14 {strides = array<i32>} : memref<256x36xbf16, #tpu.memory_space<vmem>>, vector<256x4xbf16>,
    %c0_19 = arith.constant 0 : index
    %c2_20 = arith.constant 2 : index
    %c2_21 = arith.constant 2 : index
    %c0_22 = arith.constant 0 : index
    %16 = vector.load %arg1[%c0_19, %c2_20, %c2_21, %c0_22] : memref<1x20x20x4xbf16, #tpu.memory_space<vmem>>, vector<1x16x16x4xbf16>
    %17 = vector.shape_cast %16 : vector<1x16x16x4xbf16> to vector<16x16x4xbf16>
    %18 = vector.shape_cast %17 : vector<16x16x4xbf16> to vector<256x4xbf16>
    %c0_23 = arith.constant 0 : index
    %c16 = arith.constant 16 : index
    %19 = vector.load %arg4[%c0_23, %c16] : memref<256x36xbf16, #tpu.memory_space<vmem>>, vector<256x4xbf16>
    tpu.vector_store %arg4[%c0_23, %c16], %18 {strides = array<i32>} : memref<256x36xbf16, #tpu.memory_space<vmem>>, vector<256x4xbf16>,
    %c0_24 = arith.constant 0 : index
    %c2_25 = arith.constant 2 : index
    %c4_26 = arith.constant 4 : index
    %c0_27 = arith.constant 0 : index
    %20 = vector.load %arg1[%c0_24, %c2_25, %c4_26, %c0_27] : memref<1x20x20x4xbf16, #tpu.memory_space<vmem>>, vector<1x16x16x4xbf16>
    %21 = vector.shape_cast %20 : vector<1x16x16x4xbf16> to vector<16x16x4xbf16>
    %22 = vector.shape_cast %21 : vector<16x16x4xbf16> to vector<256x4xbf16>
    %c0_28 = arith.constant 0 : index
    %c20 = arith.constant 20 : index
    %23 = vector.load %arg4[%c0_28, %c20] : memref<256x36xbf16, #tpu.memory_space<vmem>>, vector<256x4xbf16>
    tpu.vector_store %arg4[%c0_28, %c20], %22 {strides = array<i32>} : memref<256x36xbf16, #tpu.memory_space<vmem>>, vector<256x4xbf16>,
    %c0_29 = arith.constant 0 : index
    %c4_30 = arith.constant 4 : index
    %c0_31 = arith.constant 0 : index
    %c0_32 = arith.constant 0 : index
    %24 = vector.load %arg1[%c0_29, %c4_30, %c0_31, %c0_32] : memref<1x20x20x4xbf16, #tpu.memory_space<vmem>>, vector<1x16x16x4xbf16>
    %25 = vector.shape_cast %24 : vector<1x16x16x4xbf16> to vector<16x16x4xbf16>
    %26 = vector.shape_cast %25 : vector<16x16x4xbf16> to vector<256x4xbf16>
    %c0_33 = arith.constant 0 : index
    %c24 = arith.constant 24 : index
    %27 = vector.load %arg4[%c0_33, %c24] : memref<256x36xbf16, #tpu.memory_space<vmem>>, vector<256x4xbf16>
    tpu.vector_store %arg4[%c0_33, %c24], %26 {strides = array<i32>} : memref<256x36xbf16, #tpu.memory_space<vmem>>, vector<256x4xbf16>,
    %c0_34 = arith.constant 0 : index
    %c4_35 = arith.constant 4 : index
    %c2_36 = arith.constant 2 : index
    %c0_37 = arith.constant 0 : index
    %28 = vector.load %arg1[%c0_34, %c4_35, %c2_36, %c0_37] : memref<1x20x20x4xbf16, #tpu.memory_space<vmem>>, vector<1x16x16x4xbf16>
    %29 = vector.shape_cast %28 : vector<1x16x16x4xbf16> to vector<16x16x4xbf16>
    %30 = vector.shape_cast %29 : vector<16x16x4xbf16> to vector<256x4xbf16>
    %c0_38 = arith.constant 0 : index
    %c28 = arith.constant 28 : index
    %31 = vector.load %arg4[%c0_38, %c28] : memref<256x36xbf16, #tpu.memory_space<vmem>>, vector<256x4xbf16>
    tpu.vector_store %arg4[%c0_38, %c28], %30 {strides = array<i32>} : memref<256x36xbf16, #tpu.memory_space<vmem>>, vector<256x4xbf16>,
    %c0_39 = arith.constant 0 : index
    %c4_40 = arith.constant 4 : index
    %c4_41 = arith.constant 4 : index
    %c0_42 = arith.constant 0 : index
    %32 = vector.load %arg1[%c0_39, %c4_40, %c4_41, %c0_42] : memref<1x20x20x4xbf16, #tpu.memory_space<vmem>>, vector<1x16x16x4xbf16>
    %33 = vector.shape_cast %32 : vector<1x16x16x4xbf16> to vector<16x16x4xbf16>
    %34 = vector.shape_cast %33 : vector<16x16x4xbf16> to vector<256x4xbf16>
    %c0_43 = arith.constant 0 : index
    %c32 = arith.constant 32 : index
    %35 = vector.load %arg4[%c0_43, %c32] : memref<256x36xbf16, #tpu.memory_space<vmem>>, vector<256x4xbf16>
    tpu.vector_store %arg4[%c0_43, %c32], %34 {strides = array<i32>} : memref<256x36xbf16, #tpu.memory_space<vmem>>, vector<256x4xbf16>,
    %c0_44 = arith.constant 0 : index
    %c0_45 = arith.constant 0 : index
    %36 = vector.load %arg2[%c0_44, %c0_45] : memref<8x36xbf16, #tpu.memory_space<vmem>>, vector<8x36xbf16>
    %c0_46 = arith.constant 0 : index
    %c0_47 = arith.constant 0 : index
    %37 = vector.load %arg4[%c0_46, %c0_47] : memref<256x36xbf16, #tpu.memory_space<vmem>>, vector<256x36xbf16>
    %cst = arith.constant dense<0.000000e+00> : vector<8x256xf32>
    %38 = tpu.matmul %36, %37, %cst {dimension_numbers = #tpu.dot_dimension_numbers<[1], [1], [0], [0], [0, 0, 1, 0], [], []>} : vector<8x36xbf16>, vector<256x36xbf16>, vector<8x256xf32> -> vector<8x256xf32>
    %c0_48 = arith.constant 0 : index
    %c0_49 = arith.constant 0 : index
    %c0_50 = arith.constant 0 : index
    %39 = vector.load %arg3[%c0_48, %c0_49, %c0_50] : memref<1x8x256xf32, #tpu.memory_space<vmem>>, vector<1x8x256xf32>
    %40 = vector.shape_cast %39 : vector<1x8x256xf32> to vector<8x256xf32>
    %41 = vector.shape_cast %38 : vector<8x256xf32> to vector<1x8x256xf32>
    tpu.vector_store %arg3[%c0_48, %c0_49, %c0_50], %41 {strides = array<i32>} : memref<1x8x256xf32, #tpu.memory_space<vmem>>, vector<1x8x256xf32>,
    return
  }
  func.func @transform_0(%arg0: i32) -> (i32, i32, i32, i32) {
    %c0_i32 = arith.constant 0 : i32
    %c0_i32_0 = arith.constant 0 : i32
    %c0_i32_1 = arith.constant 0 : i32
    %c0_i32_2 = arith.constant 0 : i32
    return %arg0, %c0_i32, %c0_i32_0, %c0_i32_1 : i32, i32, i32, i32
  }
  func.func @transform_1(%arg0: i32) -> (i32, i32) {
    %c0_i32 = arith.constant 0 : i32
    %c0_i32_0 = arith.constant 0 : i32
    %c0_i32_1 = arith.constant 0 : i32
    return %c0_i32, %c0_i32_0 : i32, i32
  }
  func.func @transform_2(%arg0: i32) -> (i32, i32, i32) {
    %c0_i32 = arith.constant 0 : i32
    %c0_i32_0 = arith.constant 0 : i32
    %c0_i32_1 = arith.constant 0 : i32
    return %arg0, %c0_i32, %c0_i32_0 : i32, i32, i32
  }
}

</mosaic_0001>

<bundles_post_ra>
// kernel: tpu_custom_call.1
= control target key start
LH: loop header
LB: loop body
LE: loop exit
PB: predicated region body
PF: predicated region fallthrough
CT: control target
= control target key end

     0   :  { %7 = vsyncpa [#allocation4], 0  ;;  %s4901_s0 = inlined_call_operand.vmem [shape: bf16[2,20,20,4], index: 0, kind: input, shape index: {}]   ;;  %s4902_s1 = inlined_call_operand.vmem [shape: bf16[8,36], index: 1, kind: input, shape index: {}]   ;;  %s4903_s2 = inlined_call_operand.hbm [shape: f32[2,8,256], index: 2, kind: output, shape index: {}]  }
   0x1   :  { %9 = vsyncpa [#allocation4 + $0x1], 0  ;;  %s3473_s9 = smov 0   ;;  %s3475_s10 = smov 0  }
   0x2   :  { %s3477_s11 = smov 0   ;;  %s3479_s12 = smov 0  }
   0x3 LB: > { %s3494_s13 = sadd.s32 4294967295, %s3448_s12   ;;  %s2892_s14 = sadd.s32 4294967294, %s3448_s12   ;;  %s3448_s12 = sphi %s3479_s12, %s4913_s12   ;;  %s3444_s11 = sphi %s3477_s11, %s4912_s11   ;;  %s3440_s10 = sphi %s3475_s10, %s4911_s10   ;;  %s3436_s9 = sphi %s3473_s9, %s4910_s9  }
   0x4   : > { %s3498_s15 = sadd.s32 1, %s3448_s12   ;;  %s69_s16 = sadd.s32 1, %s3444_s11 }
   0x5   : > { %s66_s17 = ssub.s32 %s3448_s12, %s3498_s15  ;;  %p79_p0 = scmp.ne.s32.totalorder %s3444_s11, %s3440_s10 }
   0x6   : > { %p67_p1 = scmp.eq.s32.totalorder %s66_s17, 0  ;;  %p80_p2 = scmp.eq.s32.totalorder %s3494_s13, 1 }
   0x7   : > { %p85_p3 = scmp.ne.s32.totalorder %s3440_s10, %s3436_s9  ;;  %p86_p4 = scmp.eq.s32.totalorder %s2892_s14, 1 }
   0x8   : > { %s3509_s18 = scalar_select %p67_p1, %s3444_s11, %s69_s16  }
   0x9   : > { %p3511_p5 = por %p80_p2, %p79_p0  ;;  %p3515_p6 = por %p86_p4, %p85_p3 }
   0xa   : > { %p2895_p7 = scmp.ge.s32.totalorder %s3448_s12, 1  ;;  %p115_p8 = scmp.lt.s32.totalorder %s3448_s12, 3 }
   0xc   : > { %p116_p9 = pnand %p2895_p7, %p115_p8 }
   0xd   : > { %p137_p10 = scmp.lt.s32.totalorder (!%p116_p9), %s3494_s13, 1  ;;  %s3450_s26 = smov (!%p116_p9), 4  }
   0xe   : > { %119 = sbr.rel (%p116_p9) target bundleno = 974 (0x3ce), region = 28  ;;  %s3451_s27 = smov (!%p116_p9), 8  }
   0xf   : > { %s3452_s28 = smov (!%p116_p9), 12   ;;  %s3453_s29 = smov (!%p116_p9), 16  }
  0x10   : > { %s3454_s30 = smov (!%p116_p9), 20   ;;  %s3455_s3 = smov (!%p116_p9), 24  }
  0x11   : > { %s3456_s4 = smov (!%p116_p9), 28   ;;  %s3457_s5 = smov (!%p116_p9), 32  }
  0x12   : > { %s134_s8 = sand.u32 (!%p116_p9), 1, %s3440_s10   ;;  %s3337_s16 = sshll.u32 (!%p116_p9), %s3494_s13, 4 }
  0x13   : > { %s138_s21 = scalar_select %p137_p10, %s3494_s13, 1  ;;  %vm303_vm0 = vcmask 1042432   ;;  %vm304_vm1 = vcmask 1046532   ;;  %vm643_vm3 = vcmask 1041408   ;;  %vm644_vm4 = vcmask 1045508  }
  0x14   : > { %vm3528_vm2 = vmor %vm303_vm0, %vm304_vm1  ;;  %vm174_vm5 = vcmask 27648   ;;  %vm514_vm7 = vcmask 60448   ;;  %vm854_vm8 = vcmask 93248   ;;  %vm1048_vm9 = vcmask 126048   ;;  %s2896_s14 = sshll.u32 %s134_s8, 4  ;;  %s2828_s23 = scalar_lea.hbm %s4903_s2, %s3337_s16 }
  0x15   : > { %s3338_s22 = smul.u32 240, %s138_s21  ;;  %vm3682_vm6 = vmor %vm643_vm3, %vm644_vm4  ;;  %vm1385_vm10 = vcmask 158848   ;;  %vm1722_vm11 = vcmask 191648   ;;  %vm1916_vm12 = vcmask 224448   ;;  %vm2253_vm13 = vcmask 257248   ;;  %s136_s17 = scalar_lea.vmem [#allocation3], %s2896_s14 }
  0x16   : > { %vm2590_vm14 = vcmask 290048   ;;  %vm2736_vm15 = vcmask 293888   ;;  %s2830_s24 = sshll.u32 %s136_s17, 4  ;;  %s2831_s24 = int_to_ptr.vmem [resolvable:$true] %s2830_s24 }
  0x17   : > { %s3526_s25 = scalar_lea.vmem %s4901_s0, %s3338_s22 }
  0x18   : > { %v210_v1 = vld [vmem:[%s3526_s25 + $0xc] sm:$0xe]  ;;  %v211_v2 = vld [vmem:[%s3526_s25 + $0x10] sm:$0xf]  ;;  %v207_v3 = vld [vmem:[%s3526_s25] sm:$0xe] }
  0x19   : > { %v2899_v4 = vrot.slane %v210_v1, 9  ;;  %v315_v5 = vrot.slane %v211_v2, 5  ;;  %v208_v6 = vld [vmem:[%s3526_s25 + $0x4] sm:$0xf]  ;;  %v2898_v7 = vrot.slane %v207_v3, 9 }
  0x1a   : > { %v308_v8 = vrot.slane %v208_v6, 5  ;;  %v212_v9 = vld [vmem:[%s3526_s25 + $0x14] sm:$0x1]  ;;  %v209_v11 = vld [vmem:[%s3526_s25 + $0x8] sm:$0x1] }
  0x1b   : > { %v316_v10 = vsel %vm3528_vm2, %v2899_v4, %v315_v5  ;;  %v317_v13 = vrot.slane %v315_v5, 4  ;;  %v318_v14 = vrot.slane %v212_v9, 5  ;;  %v311_v16 = vrot.slane %v209_v11, 5  ;;  %v217_v17 = vld [vmem:[%s3526_s25 + $0x28] sm:$0xf] }
  0x1c   : > { %422 = vrot.lane.b32.xlu1 %v316_v10, %s3450_s26  ;;  %v309_v12 = vsel %vm3528_vm2, %v2898_v7, %v308_v8  ;;  %v310_v15 = vrot.slane %v308_v8, 4  ;;  %v213_v18 = vld [vmem:[%s3526_s25 + $0x18] sm:$0xe]  ;;  %v214_v19 = vld [vmem:[%s3526_s25 + $0x1c] sm:$0xf]  ;;  %v329_v22 = vrot.slane %v217_v17, 5 }
  0x1d   : > { %418 = vrot.lane.b32.xlu0 %v309_v12, %s3450_s26  ;;  %v2900_v20 = vrot.slane %v213_v18, 9  ;;  %v319_v21 = vsel %vm3528_vm2, %v317_v13, %v318_v14  ;;  %v322_v23 = vrot.slane %v214_v19, 5  ;;  %v218_v25 = vld [vmem:[%s3526_s25 + $0x2c] sm:$0x1]  ;;  %v215_v26 = vld [vmem:[%s3526_s25 + $0x20] sm:$0x1] }
  0x1e   : > { %v312_v24 = vsel %vm3528_vm2, %v310_v15, %v311_v16  ;;  %v216_v27 = vld [vmem:[%s3526_s25 + $0x24] sm:$0xe]  ;;  %v331_v29 = vrot.slane %v329_v22, 4  ;;  %v332_v30 = vrot.slane %v218_v25, 5  ;;  %v325_v32 = vrot.slane %v215_v26, 5 }
  0x1f   : > { %v323_v28 = vsel %vm3528_vm2, %v2900_v20, %v322_v23  ;;  %v324_v31 = vrot.slane %v322_v23, 4  ;;  %v2901_v33 = vrot.slane %v216_v27, 9  ;;  %v220_v34 = vld [vmem:[%s3526_s25 + $0x34] sm:$0xf]  ;;  %v222_v36 = vld [vmem:[%s3526_s25 + $0x3c] sm:$0xe] }
  0x20   : > { %426 = vrot.lane.b32.xlu2 %v323_v28, %s3450_s26  ;;  %v333_v35 = vsel %vm3528_vm2, %v331_v29, %v332_v30  ;;  %v223_v39 = vld [vmem:[%s3526_s25 + $0x40] sm:$0xf]  ;;  %v336_v40 = vrot.slane %v220_v34, 5  ;;  %v219_v41 = vld [vmem:[%s3526_s25 + $0x30] sm:$0xe]  ;;  %v2903_v43 = vrot.slane %v222_v36, 9 }
  0x21   : > { %v326_v37 = vsel %vm3528_vm2, %v324_v31, %v325_v32  ;;  %v330_v38 = vsel %vm3528_vm2, %v2901_v33, %v329_v22  ;;  %v221_v42 = vld [vmem:[%s3526_s25 + $0x38] sm:$0x1]  ;;  %v343_v44 = vrot.slane %v223_v39, 5  ;;  %v2902_v45 = vrot.slane %v219_v41, 9  ;;  %v226_v48 = vld [vmem:[%s3526_s25 + $0x4c] sm:$0xf] }
  0x22   : > { %v338_v46 = vrot.slane %v336_v40, 4  ;;  %v339_v47 = vrot.slane %v221_v42, 5  ;;  %v350_v50 = vrot.slane %v226_v48, 5  ;;  %v227_v53 = vld [vmem:[%s3526_s25 + $0x50] sm:$0x1] }
  0x23   : > { %v344_v49 = vsel %vm3528_vm2, %v2903_v43, %v343_v44  ;;  %v337_v51 = vsel %vm3528_vm2, %v2902_v45, %v336_v40  ;;  %v224_v54 = vld [vmem:[%s3526_s25 + $0x44] sm:$0x1]  ;;  %v225_v55 = vld [vmem:[%s3526_s25 + $0x48] sm:$0xe]  ;;  %v353_v57 = vrot.slane %v227_v53, 5  ;;  %v345_v58 = vrot.slane %v343_v44, 4 }
  0x24   : > { %424 = vrot.lane.b32.xlu1 %v319_v21, %s3450_s26  ;;  %v340_v52 = vsel %vm3528_vm2, %v338_v46, %v339_v47  ;;  %v352_v56 = vrot.slane %v350_v50, 4  ;;  %v346_v59 = vrot.slane %v224_v54, 5  ;;  %v2904_v60 = vrot.slane %v225_v55, 9  ;;  %v229_v61 = vld [vmem:[%s3526_s25 + $0x58] sm:$0xf] }
  0x25   : > { %420 = vrot.lane.b32.xlu0 %v312_v24, %s3450_s26  ;;  %v231_v63 = vld [vmem:[%s3526_s25 + $0x60] sm:$0xe]  ;;  %v232_v3 = vld [vmem:[%s3526_s25 + $0x64] sm:$0xf]  ;;  %v357_v4 = vrot.slane %v229_v61, 5 }
  0x26   : > { %v354_v62 = vsel %vm3528_vm2, %v352_v56, %v353_v57  ;;  %v347_v1 = vsel %vm3528_vm2, %v345_v58, %v346_v59  ;;  %v351_v2 = vsel %vm3528_vm2, %v2904_v60, %v350_v50  ;;  %v228_v5 = vld [vmem:[%s3526_s25 + $0x54] sm:$0xe]  ;;  %v230_v6 = vld [vmem:[%s3526_s25 + $0x5c] sm:$0x1]  ;;  %v2906_v7 = vrot.slane %v231_v63, 9 }
  0x27   : > { %v364_v8 = vrot.slane %v232_v3, 5  ;;  %v2905_v9 = vrot.slane %v228_v5, 9  ;;  %v359_v10 = vrot.slane %v357_v4, 4  ;;  %v360_v11 = vrot.slane %v230_v6, 5  ;;  %v235_v12 = vld [vmem:[%s3526_s25 + $0x70] sm:$0xf] }
  0x28   : > { %428 = vrot.lane.b32.xlu2 %v326_v37, %s3450_s26  ;;  %v371_v14 = vrot.slane %v235_v12, 5  ;;  %v236_v17 = vld [vmem:[%s3526_s25 + $0x74] sm:$0x1]  ;;  %v233_v18 = vld [vmem:[%s3526_s25 + $0x68] sm:$0x1] }
  0x29   : > { %v365_v13 = vsel %vm3528_vm2, %v2906_v7, %v364_v8  ;;  %v358_v15 = vsel %vm3528_vm2, %v2905_v9, %v357_v4  ;;  %v361_v16 = vsel %vm3528_vm2, %v359_v10, %v360_v11  ;;  %v234_v19 = vld [vmem:[%s3526_s25 + $0x6c] sm:$0xe]  ;;  %v374_v21 = vrot.slane %v236_v17, 5  ;;  %v238_v25 = vld [vmem:[%s3526_s25 + $0x7c] sm:$0xf] }
  0x2a   : > { %v373_v20 = vrot.slane %v371_v14, 4  ;;  %v366_v22 = vrot.slane %v364_v8, 4  ;;  %v367_v23 = vrot.slane %v233_v18, 5  ;;  %v2907_v24 = vrot.slane %v234_v19, 9  ;;  %v240_v27 = vld [vmem:[%s3526_s25 + $0x84] sm:$0xe] }
  0x2b   : > { %v241_v30 = vld [vmem:[%s3526_s25 + $0x88] sm:$0xf]  ;;  %v378_v31 = vrot.slane %v238_v25, 5  ;;  %v237_v32 = vld [vmem:[%s3526_s25 + $0x78] sm:$0xe]  ;;  %v2909_v34 = vrot.slane %v240_v27, 9 }
  0x2c   : > { %432 = vrot.lane.b32.xlu1 %v333_v35, %s3450_s26  ;;  %v375_v26 = vsel %vm3528_vm2, %v373_v20, %v374_v21  ;;  %v368_v28 = vsel %vm3528_vm2, %v366_v22, %v367_v23  ;;  %v372_v29 = vsel %vm3528_vm2, %v2907_v24, %v371_v14  ;;  %v239_v33 = vld [vmem:[%s3526_s25 + $0x80] sm:$0x1]  ;;  %v385_v35 = vrot.slane %v241_v30, 5  ;;  %v244_v39 = vld [vmem:[%s3526_s25 + $0x94] sm:$0xf] }
  0x2d   : > { %430 = vrot.lane.b32.xlu0 %v330_v38, %s3450_s26  ;;  %v2908_v36 = vrot.slane %v237_v32, 9  ;;  %v380_v37 = vrot.slane %v378_v31, 4  ;;  %v381_v38 = vrot.slane %v239_v33, 5  ;;  %v392_v41 = vrot.slane %v244_v39, 5  ;;  %v245_v44 = vld [vmem:[%s3526_s25 + $0x98] sm:$0x1] }
  0x2e   : > { %v386_v40 = vsel %vm3528_vm2, %v2909_v34, %v385_v35  ;;  %v242_v45 = vld [vmem:[%s3526_s25 + $0x8c] sm:$0x1]  ;;  %v243_v46 = vld [vmem:[%s3526_s25 + $0x90] sm:$0xe]  ;;  %v395_v48 = vrot.slane %v245_v44, 5 }
  0x2f   : > { %v379_v42 = vsel %vm3528_vm2, %v2908_v36, %v378_v31  ;;  %v382_v43 = vsel %vm3528_vm2, %v380_v37, %v381_v38  ;;  %v394_v47 = vrot.slane %v392_v41, 4  ;;  %v388_v50 = vrot.slane %v242_v45, 5  ;;  %v249_v54 = vld [vmem:[%s3526_s25 + $0xa8] sm:$0xe]  ;;  %v250_v57 = vld [vmem:[%s3526_s25 + $0xac] sm:$0xf] }
  0x30   : > { %434 = vrot.lane.b32.xlu2 %v337_v51, %s3450_s26  ;;  %v2910_v51 = vrot.slane %v243_v46, 9  ;;  %v246_v59 = vld [vmem:[%s3526_s25 + $0x9c] sm:$0xe]  ;;  %v248_v60 = vld [vmem:[%s3526_s25 + $0xa4] sm:$0x1]  ;;  %v2912_v61 = vrot.slane %v249_v54, 9 }
  0x31   : > { %v396_v53 = vsel %vm3528_vm2, %v394_v47, %v395_v48  ;;  %v2911_v63 = vrot.slane %v246_v59, 9  ;;  %v253_v3 = vld [vmem:[%s3526_s25 + $0xb8] sm:$0xf]  ;;  %v254_v8 = vld [vmem:[%s3526_s25 + $0xbc] sm:$0x1] }
  0x32   : > { %v393_v56 = vsel %vm3528_vm2, %v2910_v51, %v392_v41  ;;  %v413_v5 = vrot.slane %v253_v3, 5  ;;  %v251_v9 = vld [vmem:[%s3526_s25 + $0xb0] sm:$0x1]  ;;  %v252_v10 = vld [vmem:[%s3526_s25 + $0xb4] sm:$0xe]  ;;  %v416_v12 = vrot.slane %v254_v8, 5 }
  0x33   : > { %v409_v14 = vrot.slane %v251_v9, 5  ;;  %v550_v18 = vld [vmem:[%s3526_s25 + $0xc] sm:$0xc]  ;;  %v551_v21 = vld [vmem:[%s3526_s25 + $0x10] sm:$0xf] }
  0x34   : > { %438 = vrot.lane.b32.xlu1 %v344_v49, %s3450_s26  ;;  %v387_v49 = vrot.slane %v385_v35, 4  ;;  %v415_v11 = vrot.slane %v413_v5, 4  ;;  %v547_v23 = vld [vmem:[%s3526_s25] sm:$0xc]  ;;  %v549_v24 = vld [vmem:[%s3526_s25 + $0x8] sm:$0x3] }
  0x35   : > { %436 = vrot.lane.b32.xlu0 %v340_v52, %s3450_s26  ;;  %v247_v52 = vld [vmem:[%s3526_s25 + $0xa0] sm:$0xf]  ;;  %v2915_v25 = vrot.slane %v550_v18, 10  ;;  %v554_v27 = vld [vmem:[%s3526_s25 + $0x1c] sm:$0xf]  ;;  %v651_v31 = vrot.slane %v549_v24, 6 }
  0x36   : > { %v389_v55 = vsel %vm3528_vm2, %v387_v49, %v388_v50  ;;  %v399_v58 = vrot.slane %v247_v52, 5  ;;  %v417_v17 = vsel %vm3528_vm2, %v415_v11, %v416_v12  ;;  %v144_v32 = vld [vmem:[%s3526_s25 + $0xc] sm:$0xf]  ;;  %v142_v33 = vld [vmem:[%s3526_s25] sm:$0xf]  ;;  %v662_v34 = vrot.slane %v554_v27, 6 }
  0x37   : > { %177 = vst.msk [vmem:[#allocation2 + $0x8] sm:$0xf] %vm174_vm5, %v144_v32  ;;  %v555_v36 = vld [vmem:[%s3526_s25 + $0x20] sm:$0x3]  ;;  %v553_v37 = vld [vmem:[%s3526_s25 + $0x18] sm:$0xc] }
  0x38   : > { %440 = vrot.lane.b32.xlu2 %v347_v1, %s3450_s26  ;;  %v401_v1 = vrot.slane %v399_v58, 4  ;;  %v400_v6 = vsel %vm3528_vm2, %v2911_v63, %v399_v58  ;;  %175 = vst.msk [vmem:[#allocation2] sm:$0xf] %vm174_vm5, %v142_v33  ;;  %v664_v41 = vrot.slane %v662_v34, 4  ;;  %v557_v44 = vld [vmem:[%s3526_s25 + $0x28] sm:$0xf] }
  0x39   : > { %v146_v47 = vld [vmem:[%s3526_s25 + $0x18] sm:$0xf]  ;;  %v145_v48 = vld [vmem:[%s3526_s25 + $0x10] sm:$0xf]  ;;  %v143_v49 = vld [vmem:[%s3526_s25 + $0x4] sm:$0xf] }
  0x3a   : > { %179 = vst.msk [vmem:[#allocation2 + $0x10] sm:$0xf] %vm174_vm5, %v146_v47  ;;  %v669_v50 = vrot.slane %v557_v44, 6  ;;  %v559_v52 = vld [vmem:[%s3526_s25 + $0x30] sm:$0xc] }
  0x3b   : > { %178 = vst.msk [vmem:[#allocation2 + $0xc] sm:$0xf] %vm174_vm5, %v145_v48  ;;  %v558_v54 = vld [vmem:[%s3526_s25 + $0x2c] sm:$0x3]  ;;  %v2918_v58 = vrot.slane %v559_v52, 10 }
  0x3c   : > { %444 = vrot.lane.b32.xlu1 %v354_v62, %s3450_s26  ;;  %v406_v62 = vrot.slane %v250_v57, 5  ;;  %176 = vst.msk [vmem:[#allocation2 + $0x4] sm:$0xf] %vm174_vm5, %v143_v49  ;;  %v556_v57 = vld [vmem:[%s3526_s25 + $0x24] sm:$0xc] }
  0x3d   : > { %442 = vrot.lane.b32.xlu0 %v351_v2, %s3450_s26  ;;  %v402_v2 = vrot.slane %v248_v60, 5  ;;  %v671_v60 = vrot.slane %v669_v50, 4  ;;  %v2917_v63 = vrot.slane %v556_v57, 10  ;;  %v149_v3 = vld [vmem:[%s3526_s25 + $0x28] sm:$0xf] }
  0x3e   : > { %v407_v4 = vsel %vm3528_vm2, %v2912_v61, %v406_v62  ;;  %v672_v61 = vrot.slane %v558_v54, 6  ;;  %182 = vst.msk [vmem:[#allocation2 + $0x1c] sm:$0xf] %vm174_vm5, %v149_v3  ;;  %v562_v8 = vld [vmem:[%s3526_s25 + $0x3c] sm:$0xc] }
  0x3f   : > { %v403_v7 = vsel %vm3528_vm2, %v401_v1, %v402_v2  ;;  %v147_v1 = vld [vmem:[%s3526_s25 + $0x1c] sm:$0xf]  ;;  %v670_v9 = vsel %vm3682_vm6, %v2917_v63, %v669_v50  ;;  %v561_v11 = vld [vmem:[%s3526_s25 + $0x38] sm:$0x3]  ;;  %v150_v18 = vld [vmem:[%s3526_s25 + $0x30] sm:$0xf] }
  0x40   : > { %446 = vrot.lane.b32.xlu2 %v358_v15, %s3450_s26  ;;  %v2913_v15 = vrot.slane %v252_v10, 9  ;;  %180 = vst.msk [vmem:[#allocation2 + $0x14] sm:$0xf] %vm174_vm5, %v147_v1  ;;  %v673_v10 = vsel %vm3682_vm6, %v671_v60, %v672_v61  ;;  %v569_v27 = vld [vmem:[%s3526_s25 + $0x58] sm:$0xf] }
  0x41   : > { %183 = vst.msk [vmem:[#allocation2 + $0x20] sm:$0xf] %vm174_vm5, %v150_v18  ;;  %v697_v32 = vrot.slane %v569_v27, 6  ;;  %v573_v47 = vld [vmem:[%s3526_s25 + $0x68] sm:$0x3] }
  0x42   : > { %v414_v20 = vsel %vm3528_vm2, %v2913_v15, %v413_v5  ;;  %v566_v15 = vld [vmem:[%s3526_s25 + $0x4c] sm:$0xf]  ;;  %v570_v48 = vld [vmem:[%s3526_s25 + $0x5c] sm:$0x3]  ;;  %v571_v49 = vld [vmem:[%s3526_s25 + $0x60] sm:$0xc] }
  0x43   : > { %v699_v52 = vrot.slane %v697_v32, 4  ;;  %v156_v54 = vld [vmem:[%s3526_s25 + $0x54] sm:$0xf]  ;;  %v575_v57 = vld [vmem:[%s3526_s25 + $0x70] sm:$0xf] }
  0x44   : > { %450 = vrot.lane.b32.xlu1 %v365_v13, %s3450_s26  ;;  %v408_v13 = vrot.slane %v406_v62, 4  ;;  %v563_v62 = vld [vmem:[%s3526_s25 + $0x40] sm:$0xf]  ;;  %189 = vst.msk [vmem:[#allocation2 + $0x38] sm:$0xf] %vm174_vm5, %v156_v54  ;;  %v711_v1 = vrot.slane %v575_v57, 6 }
  0x45   : > { %448 = vrot.lane.b32.xlu0 %v361_v16, %s3450_s26  ;;  %v548_v16 = vld [vmem:[%s3526_s25 + $0x4] sm:$0xf]  ;;  %v683_v5 = vrot.slane %v563_v62, 6  ;;  %v158_v60 = vld [vmem:[%s3526_s25 + $0x60] sm:$0xf] }
  0x46   : > { %v410_v19 = vsel %vm3528_vm2, %v408_v13, %v409_v14  ;;  %v648_v22 = vrot.slane %v548_v16, 6  ;;  %v2919_v14 = vrot.slane %v562_v8, 10  ;;  %v157_v61 = vld [vmem:[%s3526_s25 + $0x58] sm:$0xf]  ;;  %191 = vst.msk [vmem:[#allocation2 + $0x40] sm:$0xf] %vm174_vm5, %v158_v60 }
  0x47   : > { %v685_v12 = vrot.slane %v683_v5, 4  ;;  %v577_v63 = vld [vmem:[%s3526_s25 + $0x78] sm:$0xc]  ;;  %190 = vst.msk [vmem:[#allocation2 + $0x3c] sm:$0xf] %vm174_vm5, %v157_v61 }
  0x48   : > { %452 = vrot.lane.b32.xlu2 %v368_v28, %s3450_s26  ;;  %v2914_v28 = vrot.slane %v547_v23, 10  ;;  %v650_v30 = vrot.slane %v648_v22, 4  ;;  %v690_v23 = vrot.slane %v566_v15, 6  ;;  %v160_v18 = vld [vmem:[%s3526_s25 + $0x6c] sm:$0xf] }
  0x49   : > { %193 = vst.msk [vmem:[#allocation2 + $0x48] sm:$0xf] %vm174_vm5, %v160_v18  ;;  %v590_v54 = vld [vmem:[%s3526_s25 + $0xac] sm:$0xf]  ;;  %v167_v57 = vld [vmem:[%s3526_s25 + $0x94] sm:$0xf] }
  0x4a   : > { %v649_v38 = vsel %vm3682_vm6, %v2914_v28, %v648_v22  ;;  %v652_v39 = vsel %vm3682_vm6, %v650_v30, %v651_v31  ;;  %v565_v28 = vld [vmem:[%s3526_s25 + $0x48] sm:$0xc]  ;;  %v567_v30 = vld [vmem:[%s3526_s25 + $0x50] sm:$0x3]  ;;  %v746_v60 = vrot.slane %v590_v54, 6 }
  0x4b   : > { %v2920_v33 = vrot.slane %v565_v28, 10  ;;  %200 = vst.msk [vmem:[#allocation2 + $0x64] sm:$0xf] %vm174_vm5, %v167_v57  ;;  %v2941_v57 = vld [vmem:[%s3526_s25 + $0x58] sm:$0xf] }
  0x4c   : > { %456 = vrot.lane.b32.xlu1 %v375_v26, %s3450_s26  ;;  %v655_v26 = vrot.slane %v551_v21, 6  ;;  %v151_v21 = vld [vmem:[%s3526_s25 + $0x34] sm:$0xf] }
  0x4d   : > { %454 = vrot.lane.b32.xlu0 %v372_v29, %s3450_s26  ;;  %184 = vst.msk [vmem:[#allocation2 + $0x24] sm:$0xf] %vm174_vm5, %v151_v21 }
  0x4e   : > { %v656_v35 = vsel %vm3682_vm6, %v2915_v25, %v655_v26  ;;  %v657_v45 = vrot.slane %v655_v26, 4  ;;  %v684_v25 = vsel %vm3682_vm6, %v2919_v14, %v683_v5  ;;  %v568_v26 = vld [vmem:[%s3526_s25 + $0x54] sm:$0xc]  ;;  %v574_v5 = vld [vmem:[%s3526_s25 + $0x6c] sm:$0xc] }
  0x4f   : > { %v2921_v31 = vrot.slane %v568_v26, 10  ;;  %v581_v14 = vld [vmem:[%s3526_s25 + $0x88] sm:$0xf] }
  0x50   : > { %458 = vrot.lane.b32.xlu2 %v379_v42, %s3450_s26  ;;  %v665_v42 = vrot.slane %v555_v36, 6  ;;  %v692_v36 = vrot.slane %v690_v23, 4 }
  0x52   : > { %v666_v51 = vsel %vm3682_vm6, %v664_v41, %v665_v42  ;;  %v155_v41 = vld [vmem:[%s3526_s25 + $0x4c] sm:$0xf]  ;;  %v154_v42 = vld [vmem:[%s3526_s25 + $0x48] sm:$0xf] }
  0x53   : > { %188 = vst.msk [vmem:[#allocation2 + $0x34] sm:$0xf] %vm174_vm5, %v155_v41 }
  0x54   : > { %462 = vrot.lane.b32.xlu1 %v386_v40, %s3450_s26  ;;  %v552_v40 = vld [vmem:[%s3526_s25 + $0x14] sm:$0x3]  ;;  %187 = vst.msk [vmem:[#allocation2 + $0x30] sm:$0xf] %vm174_vm5, %v154_v42 }
  0x55   : > { %460 = vrot.lane.b32.xlu0 %v382_v43, %s3450_s26  ;;  %v2916_v43 = vrot.slane %v553_v37, 10  ;;  %v658_v46 = vrot.slane %v552_v40, 6  ;;  %v693_v37 = vrot.slane %v567_v30, 6 }
  0x58   : > { %464 = vrot.lane.b32.xlu2 %v389_v55, %s3450_s26  ;;  %v659_v55 = vsel %vm3682_vm6, %v657_v45, %v658_v46  ;;  %v691_v45 = vsel %vm3682_vm6, %v2920_v33, %v690_v23  ;;  %v694_v46 = vsel %vm3682_vm6, %v692_v36, %v693_v37  ;;  %v582_v23 = vld [vmem:[%s3526_s25 + $0x8c] sm:$0x3]  ;;  %v164_v37 = vld [vmem:[%s3526_s25 + $0x84] sm:$0xf] }
  0x59   : > { %v728_v27 = vrot.slane %v582_v23, 6  ;;  %197 = vst.msk [vmem:[#allocation2 + $0x58] sm:$0xf] %vm174_vm5, %v164_v37  ;;  %v2933_v37 = vld [vmem:[%s3526_s25 + $0x28] sm:$0xf] }
  0x5c   : > { %468 = vrot.lane.b32.xlu1 %v396_v53, %s3450_s26  ;;  %v560_v53 = vld [vmem:[%s3526_s25 + $0x34] sm:$0xf] }
  0x5d   : > { %466 = vrot.lane.b32.xlu0 %v393_v56, %s3450_s26  ;;  %v663_v56 = vsel %vm3682_vm6, %v2916_v43, %v662_v34  ;;  %v676_v59 = vrot.slane %v560_v53, 6  ;;  %v153_v34 = vld [vmem:[%s3526_s25 + $0x40] sm:$0xf]  ;;  %v698_v43 = vsel %vm3682_vm6, %v2921_v31, %v697_v32  ;;  %v700_v53 = vrot.slane %v570_v48, 6  ;;  %v162_v31 = vld [vmem:[%s3526_s25 + $0x78] sm:$0xf] }
  0x5e   : > { %186 = vst.msk [vmem:[#allocation2 + $0x2c] sm:$0xf] %vm174_vm5, %v153_v34  ;;  %v584_v34 = vld [vmem:[%s3526_s25 + $0x94] sm:$0xf] }
  0x5f   : > { %v678_v16 = vrot.slane %v676_v59, 4  ;;  %195 = vst.msk [vmem:[#allocation2 + $0x50] sm:$0xf] %vm174_vm5, %v162_v31  ;;  %v732_v41 = vrot.slane %v584_v34, 6  ;;  %v2930_v31 = vld [vmem:[%s3526_s25 + $0x18] sm:$0xf] }
  0x60   : > { %470 = vrot.lane.b32.xlu2 %v400_v6, %s3450_s26  ;;  %v677_v6 = vsel %vm3682_vm6, %v2918_v58, %v676_v59 }
  0x64   : > { %474 = vrot.lane.b32.xlu1 %v407_v4, %s3450_s26  ;;  %v148_v4 = vld [vmem:[%s3526_s25 + $0x24] sm:$0xf] }
  0x65   : > { %472 = vrot.lane.b32.xlu0 %v403_v7, %s3450_s26  ;;  %v564_v7 = vld [vmem:[%s3526_s25 + $0x44] sm:$0x3]  ;;  %181 = vst.msk [vmem:[#allocation2 + $0x18] sm:$0xf] %vm174_vm5, %v148_v4  ;;  %v578_v4 = vld [vmem:[%s3526_s25 + $0x7c] sm:$0xf] }
  0x66   : > { %v686_v13 = vrot.slane %v564_v7, 6  ;;  %v2924_v7 = vrot.slane %v577_v63, 10  ;;  %v718_v8 = vrot.slane %v578_v4, 6  ;;  %v591_v63 = vld [vmem:[%s3526_s25 + $0xb0] sm:$0x3] }
  0x67   : > { %v749_v4 = vrot.slane %v591_v63, 6  ;;  %v2944_v63 = vld [vmem:[%s3526_s25 + $0x6c] sm:$0xf] }
  0x68   : > { %476 = vrot.lane.b32.xlu2 %v410_v19, %s3450_s26  ;;  %v687_v22 = vsel %vm3682_vm6, %v685_v12, %v686_v13  ;;  %v713_v12 = vrot.slane %v711_v1, 4  ;;  %v720_v28 = vrot.slane %v718_v8, 4 }
  0x6c   : > { %480 = vrot.lane.b32.xlu1 %v417_v17, %s3450_s26  ;;  %v679_v17 = vrot.slane %v561_v11, 6 }
  0x6d   : > { %478 = vrot.lane.b32.xlu0 %v414_v20, %s3450_s26  ;;  %v152_v20 = vld [vmem:[%s3526_s25 + $0x3c] sm:$0xf]  ;;  %s2817_s26 = scalar_lea.sflag [#allocation4], %s134_s8 }
  0x6e   : > { %185 = vst.msk [vmem:[#allocation2 + $0x28] sm:$0xf] %vm174_vm5, %v152_v20  ;;  %v680_v24 = vsel %vm3682_vm6, %v678_v16, %v679_v17  ;;  %v161_v17 = vld [vmem:[%s3526_s25 + $0x70] sm:$0xf]  ;;  %v725_v20 = vrot.slane %v581_v14, 6 }
  0x6f   : > { %194 = vst.msk [vmem:[#allocation2 + $0x4c] sm:$0xf] %vm174_vm5, %v161_v17  ;;  %v169_v14 = vld [vmem:[%s3526_s25 + $0xa0] sm:$0xf] }
  0x70   : > { %758 = vrot.lane.b32.xlu2 %v649_v38, %s3451_s27  ;;  %v572_v38 = vld [vmem:[%s3526_s25 + $0x64] sm:$0xf]  ;;  %v727_v26 = vrot.slane %v725_v20, 4  ;;  %202 = vst.msk [vmem:[#allocation2 + $0x6c] sm:$0xf] %vm174_vm5, %v169_v14 }
  0x71   : > { %v704_v44 = vrot.slane %v572_v38, 6  ;;  %v163_v38 = vld [vmem:[%s3526_s25 + $0x7c] sm:$0xf] }
  0x72   : > { %196 = vst.msk [vmem:[#allocation2 + $0x54] sm:$0xf] %vm174_vm5, %v163_v38  ;;  %v2931_v38 = vld [vmem:[%s3526_s25 + $0x1c] sm:$0xf] }
  0x73   : > { %v706_v50 = vrot.slane %v704_v44, 4 }
  0x74   : > { %762 = vrot.lane.b32.xlu1 %v656_v35, %s3451_s27 }
  0x75   : > { %760 = vrot.lane.b32.xlu0 %v652_v39, %s3451_s27 }
  0x78   : > { %764 = vrot.lane.b32.xlu2 %v659_v55, %s3451_s27 }
  0x7a   : > { %v427_v2 = vpop.permute.xlu2 %426 }
  0x7b   : > { %519 = vst.msk [vmem:[#allocation2 + $0x10] sm:$0xf] %vm514_vm7, %v427_v2  ;;  %v701_v2 = vsel %vm3682_vm6, %v699_v52, %v700_v53  ;;  %v734_v52 = vrot.slane %v732_v41, 4 }
  0x7c   : > { %768 = vrot.lane.b32.xlu1 %v666_v51, %s3451_s27  ;;  %v707_v51 = vrot.slane %v573_v47, 6 }
  0x7d   : > { %766 = vrot.lane.b32.xlu0 %v663_v56, %s3451_s27  ;;  %v2922_v56 = vrot.slane %v571_v49, 10 }
  0x7e   : > { %v708_v62 = vsel %vm3682_vm6, %v706_v50, %v707_v51  ;;  %v165_v50 = vld [vmem:[%s3526_s25 + $0x88] sm:$0xf] }
  0x7f   : > { %v705_v3 = vsel %vm3682_vm6, %v2922_v56, %v704_v44  ;;  %v587_v44 = vld [vmem:[%s3526_s25 + $0xa0] sm:$0xf]  ;;  %198 = vst.msk [vmem:[#allocation2 + $0x5c] sm:$0xf] %vm174_vm5, %v165_v50 }
  0x80   : > { %770 = vrot.lane.b32.xlu2 %v670_v9, %s3451_s27  ;;  %v2923_v9 = vrot.slane %v574_v5, 10  ;;  %v739_v48 = vrot.slane %v587_v44, 6  ;;  %v2934_v44 = vld [vmem:[%s3526_s25 + $0x30] sm:$0xf]  ;;  %v2937_v50 = vld [vmem:[%s3526_s25 + $0x40] sm:$0xf] }
  0x82   : > { %v429_v19 = vpop.permute.xlu2 %428  ;;  %v712_v21 = vsel %vm3682_vm6, %v2923_v9, %v711_v1  ;;  %v588_v1 = vld [vmem:[%s3526_s25 + $0xa4] sm:$0x3]  ;;  %v741_v5 = vrot.slane %v739_v48, 4 }
  0x83   : > { %520 = vst.msk [vmem:[#allocation2 + $0x14] sm:$0xf] %vm514_vm7, %v429_v19  ;;  %v719_v19 = vsel %vm3682_vm6, %v2924_v7, %v718_v8  ;;  %v168_v7 = vld [vmem:[%s3526_s25 + $0x9c] sm:$0xf] }
  0x84   : > { %774 = vrot.lane.b32.xlu1 %v677_v6, %s3451_s27  ;;  %v576_v6 = vld [vmem:[%s3526_s25 + $0x74] sm:$0x3]  ;;  %201 = vst.msk [vmem:[#allocation2 + $0x68] sm:$0xf] %vm174_vm5, %v168_v7 }
  0x85   : > { %772 = vrot.lane.b32.xlu0 %v673_v10, %s3451_s27  ;;  %v159_v10 = vld [vmem:[%s3526_s25 + $0x64] sm:$0xf]  ;;  %v714_v13 = vrot.slane %v576_v6, 6  ;;  %v742_v6 = vrot.slane %v588_v1, 6 }
  0x86   : > { %192 = vst.msk [vmem:[#allocation2 + $0x44] sm:$0xf] %vm174_vm5, %v159_v10 }
  0x88   : > { %776 = vrot.lane.b32.xlu2 %v680_v24, %s3451_s27  ;;  %v579_v24 = vld [vmem:[%s3526_s25 + $0x80] sm:$0x3] }
  0x89   : > { %v721_v30 = vrot.slane %v579_v24, 6 }
  0x8a   : > { %v435_v39 = vpop.permute.xlu2 %434 }
  0x8b   : > { %523 = vst.msk [vmem:[#allocation2 + $0x20] sm:$0xf] %vm514_vm7, %v435_v39  ;;  %v729_v39 = vsel %vm3682_vm6, %v727_v26, %v728_v27  ;;  %v722_v42 = vsel %vm3682_vm6, %v720_v28, %v721_v30  ;;  %v173_v28 = vld [vmem:[%s3526_s25 + $0xb8] sm:$0xf]  ;;  %v172_v30 = vld [vmem:[%s3526_s25 + $0xb4] sm:$0xf] }
  0x8c   : > { %780 = vrot.lane.b32.xlu1 %v687_v22, %s3451_s27  ;;  %v715_v22 = vsel %vm3682_vm6, %v713_v12, %v714_v13  ;;  %v593_v12 = vld [vmem:[%s3526_s25 + $0xb8] sm:$0xf]  ;;  %v170_v13 = vld [vmem:[%s3526_s25 + $0xa8] sm:$0xf]  ;;  %206 = vst.msk [vmem:[#allocation2 + $0x7c] sm:$0xf] %vm174_vm5, %v173_v28 }
  0x8d   : > { %778 = vrot.lane.b32.xlu0 %v684_v25, %s3451_s27  ;;  %v580_v25 = vld [vmem:[%s3526_s25 + $0x84] sm:$0xc]  ;;  %v753_v18 = vrot.slane %v593_v12, 6  ;;  %203 = vst.msk [vmem:[#allocation2 + $0x70] sm:$0xf] %vm174_vm5, %v170_v13 }
  0x8e   : > { %v423_v35 = vpop.permute.xlu1 %422  ;;  %v2925_v33 = vrot.slane %v580_v25, 10  ;;  %205 = vst.msk [vmem:[#allocation2 + $0x78] sm:$0xf] %vm174_vm5, %v172_v30  ;;  %v2950_v12 = vld [vmem:[%s3526_s25 + $0x90] sm:$0xf] }
  0x8f   : > { %517 = vst.msk [vmem:[#allocation2 + $0x8] sm:$0xf] %vm514_vm7, %v423_v35  ;;  %v419_v40 = vpop.permute.xlu0 %418  ;;  %v755_v24 = vrot.slane %v753_v18, 4  ;;  %v2960_v30 = vld [vmem:[%s3526_s25 + $0xcc] sm:$0xf] }
  0x90   : > { %515 = vst.msk [vmem:[#allocation2] sm:$0xf] %vm514_vm7, %v419_v40  ;;  %782 = vrot.lane.b32.xlu2 %v691_v45, %s3451_s27  ;;  %v586_v40 = vld [vmem:[%s3526_s25 + $0x9c] sm:$0xc]  ;;  %v583_v45 = vld [vmem:[%s3526_s25 + $0x90] sm:$0xc] }
  0x91   : > { %v2927_v47 = vrot.slane %v586_v40, 10  ;;  %v2926_v49 = vrot.slane %v583_v45, 10  ;;  %v2935_v45 = vld [vmem:[%s3526_s25 + $0x34] sm:$0xf] }
  0x92   : > { %v441_v58 = vpop.permute.xlu2 %440 }
  0x93   : > { %526 = vst.msk [vmem:[#allocation2 + $0x2c] sm:$0xf] %vm514_vm7, %v441_v58  ;;  %v166_v58 = vld [vmem:[%s3526_s25 + $0x90] sm:$0xf]  ;;  %v733_v61 = vsel %vm3682_vm6, %v2926_v49, %v732_v41  ;;  %v2939_v49 = vld [vmem:[%s3526_s25 + $0x4c] sm:$0xf] }
  0x94   : > { %786 = vrot.lane.b32.xlu1 %v698_v43, %s3451_s27  ;;  %v726_v43 = vsel %vm3682_vm6, %v2925_v33, %v725_v20  ;;  %199 = vst.msk [vmem:[#allocation2 + $0x60] sm:$0xf] %vm174_vm5, %v166_v58  ;;  %v594_v20 = vld [vmem:[%s3526_s25 + $0xbc] sm:$0x3] }
  0x95   : > { %784 = vrot.lane.b32.xlu0 %v694_v46, %s3451_s27  ;;  %v585_v46 = vld [vmem:[%s3526_s25 + $0x98] sm:$0x3]  ;;  %v756_v25 = vrot.slane %v594_v20, 6 }
  0x96   : > { %v425_v55 = vpop.permute.xlu1 %424  ;;  %v735_v53 = vrot.slane %v585_v46, 6 }
  0x97   : > { %518 = vst.msk [vmem:[#allocation2 + $0xc] sm:$0xf] %vm514_vm7, %v425_v55  ;;  %v421_v59 = vpop.permute.xlu0 %420  ;;  %v757_v33 = vsel %vm3682_vm6, %v755_v24, %v756_v25  ;;  %v2956_v24 = vld [vmem:[%s3526_s25 + $0xb4] sm:$0xf] }
  0x98   : > { %516 = vst.msk [vmem:[#allocation2 + $0x4] sm:$0xf] %vm514_vm7, %v421_v59  ;;  %788 = vrot.lane.b32.xlu2 %v701_v2, %s3451_s27  ;;  %v740_v59 = vsel %vm3682_vm6, %v2927_v47, %v739_v48  ;;  %v589_v2 = vld [vmem:[%s3526_s25 + $0xa8] sm:$0xc] }
  0x99   : > { %v2928_v9 = vrot.slane %v589_v2, 10 }
  0x9a   : > { %v447_v15 = vpop.permute.xlu2 %446 }
  0x9b   : > { %529 = vst.msk [vmem:[#allocation2 + $0x38] sm:$0xf] %vm514_vm7, %v447_v15  ;;  %v747_v17 = vsel %vm3682_vm6, %v2928_v9, %v746_v60 }
  0x9c   : > { %792 = vrot.lane.b32.xlu1 %v708_v62, %s3451_s27  ;;  %v736_v62 = vsel %vm3682_vm6, %v734_v52, %v735_v53 }
  0x9d   : > { %790 = vrot.lane.b32.xlu0 %v705_v3, %s3451_s27  ;;  %v748_v3 = vrot.slane %v746_v60, 4 }
  0x9e   : > { %v433_v11 = vpop.permute.xlu1 %432 }
  0x9f   : > { %522 = vst.msk [vmem:[#allocation2 + $0x1c] sm:$0xf] %vm514_vm7, %v433_v11  ;;  %v431_v16 = vpop.permute.xlu0 %430  ;;  %v750_v15 = vsel %vm3682_vm6, %v748_v3, %v749_v4  ;;  %v2948_v4 = vld [vmem:[%s3526_s25 + $0x84] sm:$0xf] }
  0xa0   : > { %521 = vst.msk [vmem:[#allocation2 + $0x18] sm:$0xf] %vm514_vm7, %v431_v16  ;;  %794 = vrot.lane.b32.xlu2 %v712_v21, %s3451_s27  ;;  %v743_v16 = vsel %vm3682_vm6, %v741_v5, %v742_v6  ;;  %v2946_v5 = vld [vmem:[%s3526_s25 + $0x78] sm:$0xf]  ;;  %v2947_v6 = vld [vmem:[%s3526_s25 + $0x7c] sm:$0xf] }
  0xa2   : > { %v453_v35 = vpop.permute.xlu2 %452 }
  0xa3   : > { %532 = vst.msk [vmem:[#allocation2 + $0x44] sm:$0xf] %vm514_vm7, %v453_v35 }
  0xa4   : > { %798 = vrot.lane.b32.xlu1 %v719_v19, %s3451_s27  ;;  %v592_v19 = vld [vmem:[%s3526_s25 + $0xb4] sm:$0xc] }
  0xa5   : > { %796 = vrot.lane.b32.xlu0 %v715_v22, %s3451_s27  ;;  %v2929_v21 = vrot.slane %v592_v19, 10  ;;  %v171_v22 = vld [vmem:[%s3526_s25 + $0xac] sm:$0xf] }
  0xa6   : > { %v439_v32 = vpop.permute.xlu1 %438  ;;  %204 = vst.msk [vmem:[#allocation2 + $0x74] sm:$0xf] %vm174_vm5, %v171_v22  ;;  %v2957_v22 = vld [vmem:[%s3526_s25 + $0xb8] sm:$0xf] }
  0xa7   : > { %525 = vst.msk [vmem:[#allocation2 + $0x28] sm:$0xf] %vm514_vm7, %v439_v32  ;;  %v437_v36 = vpop.permute.xlu0 %436  ;;  %v754_v32 = vsel %vm3682_vm6, %v2929_v21, %v753_v18  ;;  %v2953_v18 = vld [vmem:[%s3526_s25 + $0xa0] sm:$0xf] }
  0xa8   : > { %524 = vst.msk [vmem:[#allocation2 + $0x24] sm:$0xf] %vm514_vm7, %v437_v36  ;;  %800 = vrot.lane.b32.xlu2 %v722_v42, %s3451_s27 }
  0xaa   : > { %v459_v55 = vpop.permute.xlu2 %458 }
  0xab   : > { %535 = vst.msk [vmem:[#allocation2 + $0x50] sm:$0xf] %vm514_vm7, %v459_v55  ;;  %v2942_v55 = vld [vmem:[%s3526_s25 + $0x60] sm:$0xf] }
  0xac   : > { %804 = vrot.lane.b32.xlu1 %v729_v39, %s3451_s27  ;;  %v2932_v39 = vld [vmem:[%s3526_s25 + $0x24] sm:$0xf] }
  0xad   : > { %802 = vrot.lane.b32.xlu0 %v726_v43, %s3451_s27  ;;  %v2936_v43 = vld [vmem:[%s3526_s25 + $0x3c] sm:$0xf] }
  0xae   : > { %v445_v51 = vpop.permute.xlu1 %444 }
  0xaf   : > { %528 = vst.msk [vmem:[#allocation2 + $0x34] sm:$0xf] %vm514_vm7, %v445_v51  ;;  %v443_v56 = vpop.permute.xlu0 %442  ;;  %v2938_v51 = vld [vmem:[%s3526_s25 + $0x48] sm:$0xf] }
  0xb0   : > { %527 = vst.msk [vmem:[#allocation2 + $0x30] sm:$0xf] %vm514_vm7, %v443_v56  ;;  %806 = vrot.lane.b32.xlu2 %v733_v61, %s3451_s27  ;;  %v2940_v56 = vld [vmem:[%s3526_s25 + $0x54] sm:$0xf]  ;;  %v2945_v61 = vld [vmem:[%s3526_s25 + $0x70] sm:$0xf] }
  0xb2   : > { %v465_v10 = vpop.permute.xlu2 %464 }
  0xb3   : > { %538 = vst.msk [vmem:[#allocation2 + $0x5c] sm:$0xf] %vm514_vm7, %v465_v10  ;;  %v2951_v10 = vld [vmem:[%s3526_s25 + $0x94] sm:$0xf] }
  0xb4   : > { %810 = vrot.lane.b32.xlu1 %v740_v59, %s3451_s27 }
  0xb5   : > { %808 = vrot.lane.b32.xlu0 %v736_v62, %s3451_s27  ;;  %v2943_v62 = vld [vmem:[%s3526_s25 + $0x64] sm:$0xf] }
  0xb6   : > { %v451_v8 = vpop.permute.xlu1 %450 }
  0xb7   : > { %531 = vst.msk [vmem:[#allocation2 + $0x40] sm:$0xf] %vm514_vm7, %v451_v8  ;;  %v449_v11 = vpop.permute.xlu0 %448 }
  0xb8   : > { %530 = vst.msk [vmem:[#allocation2 + $0x3c] sm:$0xf] %vm514_vm7, %v449_v11  ;;  %812 = vrot.lane.b32.xlu2 %v743_v16, %s3451_s27  ;;  %v2949_v11 = vld [vmem:[%s3526_s25 + $0x88] sm:$0xf] }
  0xb9   : > { %v2954_v16 = vld [vmem:[%s3526_s25 + $0xa8] sm:$0xf] }
  0xba   : > { %v471_v26 = vpop.permute.xlu2 %470 }
  0xbb   : > { %541 = vst.msk [vmem:[#allocation2 + $0x68] sm:$0xf] %vm514_vm7, %v471_v26  ;;  %v2963_v26 = vld [vmem:[%s3526_s25 + $0x1c] sm:$0xf] }
  0xbc   : > { %816 = vrot.lane.b32.xlu1 %v750_v15, %s3451_s27 }
  0xbd   : > { %814 = vrot.lane.b32.xlu0 %v747_v17, %s3451_s27  ;;  %v2952_v17 = vld [vmem:[%s3526_s25 + $0x9c] sm:$0xf] }
  0xbe   : > { %v457_v23 = vpop.permute.xlu1 %456 }
  0xbf   : > { %534 = vst.msk [vmem:[#allocation2 + $0x4c] sm:$0xf] %vm514_vm7, %v457_v23  ;;  %v455_v27 = vpop.permute.xlu0 %454  ;;  %v2955_v23 = vld [vmem:[%s3526_s25 + $0xac] sm:$0xf] }
  0xc0   : > { %533 = vst.msk [vmem:[#allocation2 + $0x48] sm:$0xf] %vm514_vm7, %v455_v27  ;;  %818 = vrot.lane.b32.xlu2 %v754_v32, %s3451_s27  ;;  %v2958_v32 = vld [vmem:[%s3526_s25 + $0xc0] sm:$0xf] }
  0xc2   : > { %v477_v35 = vpop.permute.xlu2 %476 }
  0xc3   : > { %544 = vst.msk [vmem:[#allocation2 + $0x74] sm:$0xf] %vm514_vm7, %v477_v35  ;;  %v2962_v35 = vld [vmem:[%s3526_s25 + $0x18] sm:$0xe] }
  0xc4   : > { %952 = vrot.lane.b32.xlu1 %v2930_v31, %s3452_s28  ;;  %v1179_v31 = vrot.slane %v2963_v26, 5 }
  0xc5   : > { %820 = vrot.lane.b32.xlu0 %v757_v33, %s3451_s27  ;;  %v2959_v33 = vld [vmem:[%s3526_s25 + $0xc4] sm:$0xf] }
  0xc6   : > { %v463_v34 = vpop.permute.xlu1 %462 }
  0xc7   : > { %537 = vst.msk [vmem:[#allocation2 + $0x58] sm:$0xf] %vm514_vm7, %v463_v34  ;;  %v461_v36 = vpop.permute.xlu0 %460  ;;  %v2964_v34 = vld [vmem:[%s3526_s25 + $0x20] sm:$0x1] }
  0xc8   : > { %536 = vst.msk [vmem:[#allocation2 + $0x54] sm:$0xf] %vm514_vm7, %v461_v36  ;;  %954 = vrot.lane.b32.xlu2 %v2931_v38, %s3452_s28  ;;  %v1181_v36 = vrot.slane %v1179_v31, 4 }
  0xca   : > { %v759_v41 = vpop.permute.xlu2 %758 }
  0xcb   : > { %855 = vst.msk [vmem:[#allocation2] sm:$0xf] %vm854_vm8, %v759_v41 }
  0xcc   : > { %958 = vrot.lane.b32.xlu1 %v2933_v37, %s3452_s28  ;;  %v1182_v37 = vrot.slane %v2964_v34, 5 }
  0xcd   : > { %956 = vrot.lane.b32.xlu0 %v2932_v39, %s3452_s28  ;;  %v3010_v39 = vrot.slane %v2962_v35, 9  ;;  %v2982_v35 = vld [vmem:[%s3526_s25 + $0x68] sm:$0x1] }
  0xce   : > { %v469_v40 = vpop.permute.xlu1 %468 }
  0xcf   : > { %540 = vst.msk [vmem:[#allocation2 + $0x64] sm:$0xf] %vm514_vm7, %v469_v40  ;;  %v467_v42 = vpop.permute.xlu0 %466 }
  0xd0   : > { %539 = vst.msk [vmem:[#allocation2 + $0x60] sm:$0xf] %vm514_vm7, %v467_v42  ;;  %960 = vrot.lane.b32.xlu2 %v2934_v44, %s3452_s28  ;;  %v2966_v42 = vld [vmem:[%s3526_s25 + $0x28] sm:$0xf]  ;;  %v2968_v44 = vld [vmem:[%s3526_s25 + $0x30] sm:$0xe] }
  0xd2   : > { %v765_v47 = vpop.permute.xlu2 %764 }
  0xd3   : > { %858 = vst.msk [vmem:[#allocation2 + $0xc] sm:$0xf] %vm854_vm8, %v765_v47  ;;  %v2969_v47 = vld [vmem:[%s3526_s25 + $0x34] sm:$0xf] }
  0xd4   : > { %964 = vrot.lane.b32.xlu1 %v2936_v43, %s3452_s28  ;;  %v1183_v43 = vsel %vm3528_vm2, %v1181_v36, %v1182_v37  ;;  %v2979_v36 = vld [vmem:[%s3526_s25 + $0x5c] sm:$0x1]  ;;  %v2980_v37 = vld [vmem:[%s3526_s25 + $0x60] sm:$0xe] }
  0xd5   : > { %962 = vrot.lane.b32.xlu0 %v2935_v45, %s3452_s28  ;;  %v2961_v45 = vld [vmem:[%s3526_s25 + $0xd0] sm:$0xf] }
  0xd6   : > { %v475_v46 = vpop.permute.xlu1 %474 }
  0xd7   : > { %543 = vst.msk [vmem:[#allocation2 + $0x70] sm:$0xf] %vm514_vm7, %v475_v46  ;;  %v473_v48 = vpop.permute.xlu0 %472  ;;  %v1180_v46 = vsel %vm3528_vm2, %v3010_v39, %v1179_v31  ;;  %v1224_v39 = vrot.slane %v2982_v35, 5 }
  0xd8   : > { %542 = vst.msk [vmem:[#allocation2 + $0x6c] sm:$0xf] %vm514_vm7, %v473_v48  ;;  %966 = vrot.lane.b32.xlu2 %v2937_v50, %s3452_s28  ;;  %v1186_v48 = vrot.slane %v2966_v42, 5  ;;  %v2967_v50 = vld [vmem:[%s3526_s25 + $0x2c] sm:$0x1] }
  0xda   : > { %v771_v53 = vpop.permute.xlu2 %770 }
  0xdb   : > { %861 = vst.msk [vmem:[#allocation2 + $0x18] sm:$0xf] %vm854_vm8, %v771_v53 }
  0xdc   : > { %970 = vrot.lane.b32.xlu1 %v2939_v49, %s3452_s28  ;;  %v2965_v49 = vld [vmem:[%s3526_s25 + $0x24] sm:$0xe] }
  0xdd   : > { %968 = vrot.lane.b32.xlu0 %v2938_v51, %s3452_s28  ;;  %v3012_v51 = vrot.slane %v2968_v44, 9  ;;  %v3011_v53 = vrot.slane %v2965_v49, 9  ;;  %v2984_v44 = vld [vmem:[%s3526_s25 + $0x70] sm:$0xf] }
  0xde   : > { %v481_v52 = vpop.permute.xlu1 %480 }
  0xdf   : > { %546 = vst.msk [vmem:[#allocation2 + $0x7c] sm:$0xf] %vm514_vm7, %v481_v52  ;;  %v479_v54 = vpop.permute.xlu0 %478  ;;  %v1193_v52 = vrot.slane %v2969_v47, 5 }
  0xe0   : > { %545 = vst.msk [vmem:[#allocation2 + $0x78] sm:$0xf] %vm514_vm7, %v479_v54  ;;  %972 = vrot.lane.b32.xlu2 %v2940_v56, %s3452_s28  ;;  %v1189_v56 = vrot.slane %v2967_v50, 5 }
  0xe2   : > { %v777_v59 = vpop.permute.xlu2 %776 }
  0xe3   : > { %864 = vst.msk [vmem:[#allocation2 + $0x24] sm:$0xf] %vm854_vm8, %v777_v59 }
  0xe4   : > { %976 = vrot.lane.b32.xlu1 %v2942_v55, %s3452_s28  ;;  %v1188_v55 = vrot.slane %v1186_v48, 4 }
  0xe5   : > { %974 = vrot.lane.b32.xlu0 %v2941_v57, %s3452_s28  ;;  %v2972_v57 = vld [vmem:[%s3526_s25 + $0x40] sm:$0xf] }
  0xe6   : > { %v763_v58 = vpop.permute.xlu1 %762 }
  0xe7   : > { %857 = vst.msk [vmem:[#allocation2 + $0x8] sm:$0xf] %vm854_vm8, %v763_v58  ;;  %v761_v60 = vpop.permute.xlu0 %760 }
  0xe8   : > { %856 = vst.msk [vmem:[#allocation2 + $0x4] sm:$0xf] %vm854_vm8, %v761_v60  ;;  %978 = vrot.lane.b32.xlu2 %v2943_v62, %s3452_s28  ;;  %v1194_v60 = vsel %vm3528_vm2, %v3012_v51, %v1193_v52  ;;  %v1187_v62 = vsel %vm3528_vm2, %v3011_v53, %v1186_v48  ;;  %v1228_v48 = vrot.slane %v2984_v44, 5  ;;  %v2986_v51 = vld [vmem:[%s3526_s25 + $0x78] sm:$0xe] }
  0xe9   : > { %v2983_v53 = vld [vmem:[%s3526_s25 + $0x6c] sm:$0xe] }
  0xea   : > { %v783_v2 = vpop.permute.xlu2 %782 }
  0xeb   : > { %867 = vst.msk [vmem:[#allocation2 + $0x30] sm:$0xf] %vm854_vm8, %v783_v2  ;;  %v2970_v2 = vld [vmem:[%s3526_s25 + $0x38] sm:$0x1] }
  0xec   : > { %982 = vrot.lane.b32.xlu1 %v2945_v61, %s3452_s28  ;;  %v1200_v61 = vrot.slane %v2972_v57, 5  ;;  %v3017_v57 = vrot.slane %v2983_v53, 9 }
  0xed   : > { %980 = vrot.lane.b32.xlu0 %v2944_v63, %s3452_s28  ;;  %v1190_v63 = vsel %vm3528_vm2, %v1188_v55, %v1189_v56  ;;  %v3018_v55 = vrot.slane %v2986_v51, 9 }
  0xee   : > { %v769_v1 = vpop.permute.xlu1 %768 }
  0xef   : > { %860 = vst.msk [vmem:[#allocation2 + $0x14] sm:$0xf] %vm854_vm8, %v769_v1  ;;  %v767_v3 = vpop.permute.xlu0 %766  ;;  %v2973_v1 = vld [vmem:[%s3526_s25 + $0x44] sm:$0x1] }
  0xf0   : > { %859 = vst.msk [vmem:[#allocation2 + $0x10] sm:$0xf] %vm854_vm8, %v767_v3  ;;  %984 = vrot.lane.b32.xlu2 %v2946_v5, %s3452_s28  ;;  %v2971_v3 = vld [vmem:[%s3526_s25 + $0x3c] sm:$0xe]  ;;  %v1203_v5 = vrot.slane %v2973_v1, 5 }
  0xf2   : > { %v789_v8 = vpop.permute.xlu2 %788 }
  0xf3   : > { %870 = vst.msk [vmem:[#allocation2 + $0x3c] sm:$0xf] %vm854_vm8, %v789_v8 }
  0xf4   : > { %988 = vrot.lane.b32.xlu1 %v2948_v4, %s3452_s28  ;;  %v1202_v4 = vrot.slane %v1200_v61, 4 }
  0xf5   : > { %986 = vrot.lane.b32.xlu0 %v2947_v6, %s3452_s28  ;;  %v1195_v6 = vrot.slane %v1193_v52, 4  ;;  %v2987_v52 = vld [vmem:[%s3526_s25 + $0x7c] sm:$0xf] }
  0xf6   : > { %v775_v7 = vpop.permute.xlu1 %774  ;;  %v1235_v56 = vrot.slane %v2987_v52, 5 }
  0xf7   : > { %863 = vst.msk [vmem:[#allocation2 + $0x20] sm:$0xf] %vm854_vm8, %v775_v7  ;;  %v773_v9 = vpop.permute.xlu0 %772  ;;  %v1196_v7 = vrot.slane %v2970_v2, 5 }
  0xf8   : > { %862 = vst.msk [vmem:[#allocation2 + $0x1c] sm:$0xf] %vm854_vm8, %v773_v9  ;;  %990 = vrot.lane.b32.xlu2 %v2949_v11, %s3452_s28  ;;  %v3013_v9 = vrot.slane %v2971_v3, 9  ;;  %v1236_v1 = vsel %vm3528_vm2, %v3018_v55, %v1235_v56  ;;  %v1229_v3 = vsel %vm3528_vm2, %v3017_v57, %v1228_v48  ;;  %v3004_v55 = vld [vmem:[%s3526_s25 + $0xc0] sm:$0xe] }
  0xf9   : > { %v3001_v57 = vld [vmem:[%s3526_s25 + $0xb4] sm:$0xe] }
  0xfa   : > { %v795_v14 = vpop.permute.xlu2 %794 }
  0xfb   : > { %873 = vst.msk [vmem:[#allocation2 + $0x48] sm:$0xf] %vm854_vm8, %v795_v14  ;;  %v2977_v14 = vld [vmem:[%s3526_s25 + $0x54] sm:$0xe] }
  0xfc   : > { %994 = vrot.lane.b32.xlu1 %v2951_v10, %s3452_s28 }
  0xfd   : > { %992 = vrot.lane.b32.xlu0 %v2950_v12, %s3452_s28  ;;  %v2975_v12 = vld [vmem:[%s3526_s25 + $0x4c] sm:$0xf] }
  0xfe   : > { %v781_v13 = vpop.permute.xlu1 %780 }
  0xff   : > { %866 = vst.msk [vmem:[#allocation2 + $0x2c] sm:$0xf] %vm854_vm8, %v781_v13  ;;  %v779_v15 = vpop.permute.xlu0 %778  ;;  %v1204_v13 = vsel %vm3528_vm2, %v1202_v4, %v1203_v5  ;;  %v2991_v5 = vld [vmem:[%s3526_s25 + $0x8c] sm:$0x1] }
 0x100   : > { %865 = vst.msk [vmem:[#allocation2 + $0x28] sm:$0xf] %vm854_vm8, %v779_v15  ;;  %996 = vrot.lane.b32.xlu2 %v2952_v17, %s3452_s28  ;;  %v1197_v15 = vsel %vm3528_vm2, %v1195_v6, %v1196_v7  ;;  %v2978_v17 = vld [vmem:[%s3526_s25 + $0x58] sm:$0xf]  ;;  %v2988_v6 = vld [vmem:[%s3526_s25 + $0x80] sm:$0x1] }
 0x101   : > { %v2989_v7 = vld [vmem:[%s3526_s25 + $0x84] sm:$0xe] }
 0x102   : > { %v801_v20 = vpop.permute.xlu2 %800 }
 0x103   : > { %876 = vst.msk [vmem:[#allocation2 + $0x54] sm:$0xf] %vm854_vm8, %v801_v20  ;;  %v2976_v20 = vld [vmem:[%s3526_s25 + $0x50] sm:$0x1] }
 0x104   : > { %1000 = vrot.lane.b32.xlu1 %v2954_v16, %s3452_s28  ;;  %v1201_v16 = vsel %vm3528_vm2, %v3013_v9, %v1200_v61  ;;  %v1210_v26 = vrot.slane %v2976_v20, 5  ;;  %v2990_v61 = vld [vmem:[%s3526_s25 + $0x88] sm:$0xf]  ;;  %v1245_v9 = vrot.slane %v2991_v5, 5 }
 0x105   : > { %998 = vrot.lane.b32.xlu0 %v2953_v18, %s3452_s28  ;;  %v1207_v18 = vrot.slane %v2975_v12, 5  ;;  %v1242_v2 = vrot.slane %v2990_v61, 5  ;;  %v3023_v61 = vrot.slane %v3001_v57, 9 }
 0x106   : > { %v787_v19 = vpop.permute.xlu1 %786 }
 0x107   : > { %869 = vst.msk [vmem:[#allocation2 + $0x38] sm:$0xf] %vm854_vm8, %v787_v19  ;;  %v785_v21 = vpop.permute.xlu0 %784  ;;  %v2974_v19 = vld [vmem:[%s3526_s25 + $0x48] sm:$0xe] }
 0x108   : > { %868 = vst.msk [vmem:[#allocation2 + $0x34] sm:$0xf] %vm854_vm8, %v785_v21  ;;  %1002 = vrot.lane.b32.xlu2 %v2955_v23, %s3452_s28  ;;  %v3015_v21 = vrot.slane %v2977_v14, 9  ;;  %v3014_v23 = vrot.slane %v2974_v19, 9  ;;  %v2993_v14 = vld [vmem:[%s3526_s25 + $0x94] sm:$0xf] }
 0x10a   : > { %v807_v27 = vpop.permute.xlu2 %806 }
 0x10b   : > { %879 = vst.msk [vmem:[#allocation2 + $0x60] sm:$0xf] %vm854_vm8, %v807_v27  ;;  %v2981_v27 = vld [vmem:[%s3526_s25 + $0x64] sm:$0xf] }
 0x10c   : > { %1006 = vrot.lane.b32.xlu1 %v2957_v22, %s3452_s28  ;;  %v1214_v22 = vrot.slane %v2978_v17, 5 }
 0x10d   : > { %1004 = vrot.lane.b32.xlu0 %v2956_v24, %s3452_s28 }
 0x10e   : > { %v793_v25 = vpop.permute.xlu1 %792  ;;  %v1215_v31 = vsel %vm3528_vm2, %v3015_v21, %v1214_v22  ;;  %v2995_v21 = vld [vmem:[%s3526_s25 + $0x9c] sm:$0xe] }
 0x10f   : > { %872 = vst.msk [vmem:[#allocation2 + $0x44] sm:$0xf] %vm854_vm8, %v793_v25  ;;  %v791_v28 = vpop.permute.xlu0 %790  ;;  %v1209_v25 = vrot.slane %v1207_v18, 4 }
 0x110   : > { %871 = vst.msk [vmem:[#allocation2 + $0x40] sm:$0xf] %vm854_vm8, %v791_v28  ;;  %1008 = vrot.lane.b32.xlu2 %v2958_v32, %s3452_s28  ;;  %v1221_v32 = vrot.slane %v2981_v27, 5 }
 0x111   : > { %v1211_v34 = vsel %vm3528_vm2, %v1209_v25, %v1210_v26  ;;  %v3021_v25 = vrot.slane %v2995_v21, 9 }
 0x112   : > { %v813_v40 = vpop.permute.xlu2 %812 }
 0x113   : > { %882 = vst.msk [vmem:[#allocation2 + $0x6c] sm:$0xf] %vm854_vm8, %v813_v40  ;;  %v1216_v40 = vrot.slane %v1214_v22, 4  ;;  %v2996_v22 = vld [vmem:[%s3526_s25 + $0xa0] sm:$0xf] }
 0x114   : > { %1012 = vrot.lane.b32.xlu1 %v2960_v30, %s3452_s28  ;;  %v1256_v26 = vrot.slane %v2996_v22, 5 }
 0x115   : > { %1010 = vrot.lane.b32.xlu0 %v2959_v33, %s3452_s28  ;;  %v1208_v33 = vsel %vm3528_vm2, %v3014_v23, %v1207_v18  ;;  %v1249_v18 = vrot.slane %v2993_v14, 5  ;;  %v2992_v23 = vld [vmem:[%s3526_s25 + $0x90] sm:$0xe] }
 0x116   : > { %v799_v38 = vpop.permute.xlu1 %798  ;;  %v3020_v27 = vrot.slane %v2992_v23, 9  ;;  %v1257_v35 = vsel %vm3528_vm2, %v3021_v25, %v1256_v26  ;;  %v1258_v44 = vrot.slane %v1256_v26, 4  ;;  %v3029_v25 = vld [vmem:[%s3526_s25 + $0x24] sm:$0xc]  ;;  %v3030_v26 = vld [vmem:[%s3526_s25 + $0x28] sm:$0xf] }
 0x117   : > { %875 = vst.msk [vmem:[#allocation2 + $0x50] sm:$0xf] %vm854_vm8, %v799_v38  ;;  %v797_v41 = vpop.permute.xlu0 %796  ;;  %v1223_v38 = vrot.slane %v1221_v32, 4 }
 0x118   : > { %874 = vst.msk [vmem:[#allocation2 + $0x4c] sm:$0xf] %vm854_vm8, %v797_v41  ;;  %1014 = vrot.lane.b32.xlu2 %v2961_v45, %s3452_s28  ;;  %v1217_v41 = vrot.slane %v2979_v36, 5 }
 0x119   : > { %v1225_v47 = vsel %vm3528_vm2, %v1223_v38, %v1224_v39  ;;  %v3000_v39 = vld [vmem:[%s3526_s25 + $0xb0] sm:$0x1] }
 0x11a   : > { %v819_v58 = vpop.permute.xlu2 %818  ;;  %v1218_v49 = vsel %vm3528_vm2, %v1216_v40, %v1217_v41  ;;  %v2997_v40 = vld [vmem:[%s3526_s25 + $0xa4] sm:$0x1]  ;;  %v2998_v41 = vld [vmem:[%s3526_s25 + $0xa8] sm:$0xe] }
 0x11b   : > { %885 = vst.msk [vmem:[#allocation2 + $0x78] sm:$0xf] %vm854_vm8, %v819_v58 }
 0x11c   : > { %1291 = vrot.lane.b32.xlu1 %v1183_v43, %s3453_s29  ;;  %v3016_v43 = vrot.slane %v2980_v37, 9  ;;  %v1250_v37 = vsel %vm3528_vm2, %v3020_v27, %v1249_v18  ;;  %v3026_v27 = vld [vmem:[%s3526_s25 + $0x18] sm:$0xc] }
 0x11d   : > { %1289 = vrot.lane.b32.xlu0 %v1180_v46, %s3453_s29 }
 0x11e   : > { %v805_v54 = vpop.permute.xlu1 %804  ;;  %v1222_v50 = vsel %vm3528_vm2, %v3016_v43, %v1221_v32  ;;  %v2999_v32 = vld [vmem:[%s3526_s25 + $0xac] sm:$0xf]  ;;  %v1266_v43 = vrot.slane %v3000_v39, 5 }
 0x11f   : > { %878 = vst.msk [vmem:[#allocation2 + $0x5c] sm:$0xf] %vm854_vm8, %v805_v54  ;;  %v803_v59 = vpop.permute.xlu0 %802  ;;  %v2985_v54 = vld [vmem:[%s3526_s25 + $0x74] sm:$0x1]  ;;  %v1263_v36 = vrot.slane %v2999_v32, 5  ;;  %v3074_v32 = vrot.slane %v3026_v27, 10 }
 0x120   : > { %877 = vst.msk [vmem:[#allocation2 + $0x58] sm:$0xf] %vm854_vm8, %v803_v59  ;;  %1293 = vrot.lane.b32.xlu2 %v1187_v62, %s3453_s29  ;;  %v1230_v59 = vrot.slane %v1228_v48, 4  ;;  %v3002_v48 = vld [vmem:[%s3526_s25 + $0xb8] sm:$0xf] }
 0x121   : > { %v1270_v52 = vrot.slane %v3002_v48, 5 }
 0x122   : > { %v955_v10 = vpop.permute.xlu2 %954 }
 0x123   : > { %1050 = vst.msk [vmem:[#allocation2 + $0x4] sm:$0xf] %vm1048_vm9, %v955_v10  ;;  %v1237_v10 = vrot.slane %v1235_v56, 4  ;;  %v3005_v56 = vld [vmem:[%s3526_s25 + $0xc4] sm:$0xf] }
 0x124   : > { %1297 = vrot.lane.b32.xlu1 %v1194_v60, %s3453_s29  ;;  %v1231_v60 = vrot.slane %v2985_v54, 5 }
 0x125   : > { %1295 = vrot.lane.b32.xlu0 %v1190_v63, %s3453_s29 }
 0x126   : > { %v811_v8 = vpop.permute.xlu1 %810  ;;  %v1232_v4 = vsel %vm3528_vm2, %v1230_v59, %v1231_v60  ;;  %v3024_v59 = vrot.slane %v3004_v55, 9  ;;  %v1277_v60 = vrot.slane %v3005_v56, 5 }
 0x127   : > { %881 = vst.msk [vmem:[#allocation2 + $0x68] sm:$0xf] %vm854_vm8, %v811_v8  ;;  %v809_v11 = vpop.permute.xlu0 %808  ;;  %v1244_v8 = vrot.slane %v1242_v2, 4 }
 0x128   : > { %880 = vst.msk [vmem:[#allocation2 + $0x64] sm:$0xf] %vm854_vm8, %v809_v11  ;;  %1299 = vrot.lane.b32.xlu2 %v1197_v15, %s3453_s29  ;;  %v1238_v11 = vrot.slane %v2988_v6, 5  ;;  %v1278_v5 = vsel %vm3528_vm2, %v3024_v59, %v1277_v60  ;;  %v1279_v14 = vrot.slane %v1277_v60, 4  ;;  %v3038_v59 = vld [vmem:[%s3526_s25 + $0x48] sm:$0xc] }
 0x129   : > { %v1246_v17 = vsel %vm3528_vm2, %v1244_v8, %v1245_v9  ;;  %v3009_v9 = vld [vmem:[%s3526_s25 + $0xd4] sm:$0x1]  ;;  %v3039_v60 = vld [vmem:[%s3526_s25 + $0x4c] sm:$0xf] }
 0x12a   : > { %v961_v28 = vpop.permute.xlu2 %960  ;;  %v1239_v19 = vsel %vm3528_vm2, %v1237_v10, %v1238_v11  ;;  %v3006_v10 = vld [vmem:[%s3526_s25 + $0xc8] sm:$0x1]  ;;  %v3007_v11 = vld [vmem:[%s3526_s25 + $0xcc] sm:$0xe] }
 0x12b   : > { %1053 = vst.msk [vmem:[#allocation2 + $0x10] sm:$0xf] %vm1048_vm9, %v961_v28 }
 0x12c   : > { %1303 = vrot.lane.b32.xlu1 %v1204_v13, %s3453_s29  ;;  %v3019_v13 = vrot.slane %v2989_v7, 9  ;;  %v1271_v7 = vsel %vm3528_vm2, %v3023_v61, %v1270_v52  ;;  %v3035_v61 = vld [vmem:[%s3526_s25 + $0x3c] sm:$0xc] }
 0x12d   : > { %1301 = vrot.lane.b32.xlu0 %v1201_v16, %s3453_s29 }
 0x12e   : > { %v817_v24 = vpop.permute.xlu1 %816  ;;  %v1243_v20 = vsel %vm3528_vm2, %v3019_v13, %v1242_v2  ;;  %v3008_v2 = vld [vmem:[%s3526_s25 + $0xd0] sm:$0xf]  ;;  %v1287_v13 = vrot.slane %v3009_v9, 5 }
 0x12f   : > { %884 = vst.msk [vmem:[#allocation2 + $0x74] sm:$0xf] %vm854_vm8, %v817_v24  ;;  %v815_v30 = vpop.permute.xlu0 %814  ;;  %v2994_v24 = vld [vmem:[%s3526_s25 + $0x98] sm:$0x1]  ;;  %v1284_v6 = vrot.slane %v3008_v2, 5  ;;  %v3077_v2 = vrot.slane %v3035_v61, 10 }
 0x130   : > { %883 = vst.msk [vmem:[#allocation2 + $0x70] sm:$0xf] %vm854_vm8, %v815_v30  ;;  %1305 = vrot.lane.b32.xlu2 %v1208_v33, %s3453_s29  ;;  %v1251_v30 = vrot.slane %v1249_v18, 4  ;;  %v3027_v18 = vld [vmem:[%s3526_s25 + $0x1c] sm:$0xf] }
 0x131   : > { %v1516_v22 = vrot.slane %v3027_v18, 6 }
 0x132   : > { %v967_v45 = vpop.permute.xlu2 %966 }
 0x133   : > { %1056 = vst.msk [vmem:[#allocation2 + $0x1c] sm:$0xf] %vm1048_vm9, %v967_v45  ;;  %v1259_v45 = vrot.slane %v2997_v40, 5 }
 0x134   : > { %1309 = vrot.lane.b32.xlu1 %v1215_v31, %s3453_s29  ;;  %v1252_v31 = vrot.slane %v2994_v24, 5 }
 0x135   : > { %1307 = vrot.lane.b32.xlu0 %v1211_v34, %s3453_s29  ;;  %v1260_v53 = vsel %vm3528_vm2, %v1258_v44, %v1259_v45  ;;  %v3031_v44 = vld [vmem:[%s3526_s25 + $0x2c] sm:$0x3]  ;;  %v3032_v45 = vld [vmem:[%s3526_s25 + $0x30] sm:$0xc] }
 0x136   : > { %v953_v42 = vpop.permute.xlu1 %952  ;;  %v1253_v38 = vsel %vm3528_vm2, %v1251_v30, %v1252_v31  ;;  %v3075_v30 = vrot.slane %v3029_v25, 10  ;;  %v1523_v31 = vrot.slane %v3030_v26, 6 }
 0x137   : > { %1049 = vst.msk [vmem:[#allocation2] sm:$0xf] %vm1048_vm9, %v953_v42  ;;  %v821_v46 = vpop.permute.xlu0 %820  ;;  %v1265_v42 = vrot.slane %v1263_v36, 4 }
 0x138   : > { %886 = vst.msk [vmem:[#allocation2 + $0x7c] sm:$0xf] %vm854_vm8, %v821_v46  ;;  %1311 = vrot.lane.b32.xlu2 %v1218_v49, %s3453_s29  ;;  %v1524_v39 = vsel %vm3682_vm6, %v3075_v30, %v1523_v31  ;;  %v1525_v48 = vrot.slane %v1523_v31, 4  ;;  %v3047_v30 = vld [vmem:[%s3526_s25 + $0x6c] sm:$0xc] }
 0x139   : > { %v1267_v51 = vsel %vm3528_vm2, %v1265_v42, %v1266_v43  ;;  %v3034_v43 = vld [vmem:[%s3526_s25 + $0x38] sm:$0x3]  ;;  %v3048_v31 = vld [vmem:[%s3526_s25 + $0x70] sm:$0xf] }
 0x13a   : > { %v973_v62 = vpop.permute.xlu2 %972 }
 0x13b   : > { %1059 = vst.msk [vmem:[#allocation2 + $0x28] sm:$0xf] %vm1048_vm9, %v973_v62 }
 0x13c   : > { %1315 = vrot.lane.b32.xlu1 %v1225_v47, %s3453_s29  ;;  %v3022_v47 = vrot.slane %v2998_v41, 9  ;;  %v1517_v41 = vsel %vm3682_vm6, %v3074_v32, %v1516_v22  ;;  %v3044_v32 = vld [vmem:[%s3526_s25 + $0x60] sm:$0xc] }
 0x13d   : > { %1313 = vrot.lane.b32.xlu0 %v1222_v50, %s3453_s29 }
 0x13e   : > { %v959_v58 = vpop.permute.xlu1 %958  ;;  %v1264_v54 = vsel %vm3528_vm2, %v3022_v47, %v1263_v36  ;;  %v3033_v36 = vld [vmem:[%s3526_s25 + $0x34] sm:$0xf]  ;;  %v1533_v47 = vrot.slane %v3034_v43, 6 }
 0x13f   : > { %1052 = vst.msk [vmem:[#allocation2 + $0xc] sm:$0xf] %vm1048_vm9, %v959_v58  ;;  %v957_v63 = vpop.permute.xlu0 %956  ;;  %v3003_v58 = vld [vmem:[%s3526_s25 + $0xbc] sm:$0x1]  ;;  %v1530_v40 = vrot.slane %v3033_v36, 6  ;;  %v3080_v36 = vrot.slane %v3044_v32, 10 }
 0x140   : > { %1051 = vst.msk [vmem:[#allocation2 + $0x8] sm:$0xf] %vm1048_vm9, %v957_v63  ;;  %1317 = vrot.lane.b32.xlu2 %v1229_v3, %s3453_s29  ;;  %v1272_v63 = vrot.slane %v1270_v52, 4  ;;  %v3036_v52 = vld [vmem:[%s3526_s25 + $0x40] sm:$0xf] }
 0x141   : > { %v1537_v56 = vrot.slane %v3036_v52, 6 }
 0x142   : > { %v979_v15 = vpop.permute.xlu2 %978 }
 0x143   : > { %1062 = vst.msk [vmem:[#allocation2 + $0x34] sm:$0xf] %vm1048_vm9, %v979_v15  ;;  %v1280_v15 = vrot.slane %v3006_v10, 5 }
 0x144   : > { %1321 = vrot.lane.b32.xlu1 %v1236_v1, %s3453_s29  ;;  %v1273_v1 = vrot.slane %v3003_v58, 5 }
 0x145   : > { %1319 = vrot.lane.b32.xlu0 %v1232_v4, %s3453_s29  ;;  %v1281_v23 = vsel %vm3528_vm2, %v1279_v14, %v1280_v15  ;;  %v3040_v14 = vld [vmem:[%s3526_s25 + $0x50] sm:$0x3]  ;;  %v3041_v15 = vld [vmem:[%s3526_s25 + $0x54] sm:$0xc] }
 0x146   : > { %v965_v12 = vpop.permute.xlu1 %964  ;;  %v1274_v8 = vsel %vm3528_vm2, %v1272_v63, %v1273_v1  ;;  %v3078_v63 = vrot.slane %v3038_v59, 10  ;;  %v1544_v1 = vrot.slane %v3039_v60, 6 }
 0x147   : > { %1055 = vst.msk [vmem:[#allocation2 + $0x18] sm:$0xf] %vm1048_vm9, %v965_v12  ;;  %v963_v16 = vpop.permute.xlu0 %962  ;;  %v1286_v12 = vrot.slane %v1284_v6, 4 }
 0x148   : > { %1054 = vst.msk [vmem:[#allocation2 + $0x14] sm:$0xf] %vm1048_vm9, %v963_v16  ;;  %1323 = vrot.lane.b32.xlu2 %v1239_v19, %s3453_s29  ;;  %v1545_v9 = vsel %vm3682_vm6, %v3078_v63, %v1544_v1  ;;  %v1546_v18 = vrot.slane %v1544_v1, 4  ;;  %v3056_v63 = vld [vmem:[%s3526_s25 + $0x90] sm:$0xc] }
 0x149   : > { %v1288_v21 = vsel %vm3528_vm2, %v1286_v12, %v1287_v13  ;;  %v3043_v13 = vld [vmem:[%s3526_s25 + $0x5c] sm:$0x3]  ;;  %v3057_v1 = vld [vmem:[%s3526_s25 + $0x94] sm:$0xf] }
 0x14a   : > { %v985_v33 = vpop.permute.xlu2 %984 }
 0x14b   : > { %1065 = vst.msk [vmem:[#allocation2 + $0x40] sm:$0xf] %vm1048_vm9, %v985_v33 }
 0x14c   : > { %1327 = vrot.lane.b32.xlu1 %v1246_v17, %s3453_s29  ;;  %v3025_v17 = vrot.slane %v3007_v11, 9  ;;  %v1538_v11 = vsel %vm3682_vm6, %v3077_v2, %v1537_v56  ;;  %v3053_v2 = vld [vmem:[%s3526_s25 + $0x84] sm:$0xc] }
 0x14d   : > { %1325 = vrot.lane.b32.xlu0 %v1243_v20, %s3453_s29 }
 0x14e   : > { %v971_v28 = vpop.permute.xlu1 %970  ;;  %v1285_v24 = vsel %vm3528_vm2, %v3025_v17, %v1284_v6  ;;  %v3042_v6 = vld [vmem:[%s3526_s25 + $0x58] sm:$0xf]  ;;  %v1554_v17 = vrot.slane %v3043_v13, 6 }
 0x14f   : > { %1058 = vst.msk [vmem:[#allocation2 + $0x24] sm:$0xf] %vm1048_vm9, %v971_v28  ;;  %v969_v34 = vpop.permute.xlu0 %968  ;;  %v3028_v28 = vld [vmem:[%s3526_s25 + $0x20] sm:$0x3]  ;;  %v1551_v10 = vrot.slane %v3042_v6, 6  ;;  %v3083_v6 = vrot.slane %v3053_v2, 10 }
 0x150   : > { %1057 = vst.msk [vmem:[#allocation2 + $0x20] sm:$0xf] %vm1048_vm9, %v969_v34  ;;  %1329 = vrot.lane.b32.xlu2 %v1250_v37, %s3453_s29  ;;  %v1518_v34 = vrot.slane %v1516_v22, 4  ;;  %v3045_v22 = vld [vmem:[%s3526_s25 + $0x64] sm:$0xf] }
 0x151   : > { %v1558_v26 = vrot.slane %v3045_v22, 6 }
 0x152   : > { %v991_v49 = vpop.permute.xlu2 %990 }
 0x153   : > { %1068 = vst.msk [vmem:[#allocation2 + $0x4c] sm:$0xf] %vm1048_vm9, %v991_v49  ;;  %v1526_v49 = vrot.slane %v3031_v44, 6 }
 0x154   : > { %1333 = vrot.lane.b32.xlu1 %v1257_v35, %s3453_s29  ;;  %v1519_v35 = vrot.slane %v3028_v28, 6 }
 0x155   : > { %1331 = vrot.lane.b32.xlu0 %v1253_v38, %s3453_s29  ;;  %v1527_v57 = vsel %vm3682_vm6, %v1525_v48, %v1526_v49  ;;  %v3049_v48 = vld [vmem:[%s3526_s25 + $0x74] sm:$0x3]  ;;  %v3050_v49 = vld [vmem:[%s3526_s25 + $0x78] sm:$0xc] }
 0x156   : > { %v977_v46 = vpop.permute.xlu1 %976  ;;  %v1520_v42 = vsel %vm3682_vm6, %v1518_v34, %v1519_v35  ;;  %v3081_v34 = vrot.slane %v3047_v30, 10  ;;  %v1565_v35 = vrot.slane %v3048_v31, 6 }
 0x157   : > { %1061 = vst.msk [vmem:[#allocation2 + $0x30] sm:$0xf] %vm1048_vm9, %v977_v46  ;;  %v975_v50 = vpop.permute.xlu0 %974  ;;  %v1532_v46 = vrot.slane %v1530_v40, 4 }
 0x158   : > { %1060 = vst.msk [vmem:[#allocation2 + $0x2c] sm:$0xf] %vm1048_vm9, %v975_v50  ;;  %1335 = vrot.lane.b32.xlu2 %v1260_v53, %s3453_s29  ;;  %v1566_v43 = vsel %vm3682_vm6, %v3081_v34, %v1565_v35  ;;  %v1567_v52 = vrot.slane %v1565_v35, 4  ;;  %v3065_v34 = vld [vmem:[%s3526_s25 + $0xb4] sm:$0xc] }
 0x159   : > { %v1534_v55 = vsel %vm3682_vm6, %v1532_v46, %v1533_v47  ;;  %v3052_v47 = vld [vmem:[%s3526_s25 + $0x80] sm:$0x3]  ;;  %v3066_v35 = vld [vmem:[%s3526_s25 + $0xb8] sm:$0xf] }
 0x15a   : > { %v997_v3 = vpop.permute.xlu2 %996 }
 0x15b   : > { %1071 = vst.msk [vmem:[#allocation2 + $0x58] sm:$0xf] %vm1048_vm9, %v997_v3 }
 0x15c   : > { %1339 = vrot.lane.b32.xlu1 %v1267_v51, %s3453_s29  ;;  %v3076_v51 = vrot.slane %v3032_v45, 10  ;;  %v1559_v45 = vsel %vm3682_vm6, %v3080_v36, %v1558_v26  ;;  %v3062_v36 = vld [vmem:[%s3526_s25 + $0xa8] sm:$0xc] }
 0x15d   : > { %1337 = vrot.lane.b32.xlu0 %v1264_v54, %s3453_s29 }
 0x15e   : > { %v983_v62 = vpop.permute.xlu1 %982  ;;  %v1531_v58 = vsel %vm3682_vm6, %v3076_v51, %v1530_v40  ;;  %v3051_v40 = vld [vmem:[%s3526_s25 + $0x7c] sm:$0xf]  ;;  %v1575_v51 = vrot.slane %v3052_v47, 6 }
 0x15f   : > { %1064 = vst.msk [vmem:[#allocation2 + $0x3c] sm:$0xf] %vm1048_vm9, %v983_v62  ;;  %v981_v4 = vpop.permute.xlu0 %980  ;;  %v3037_v62 = vld [vmem:[%s3526_s25 + $0x44] sm:$0x3]  ;;  %v1572_v44 = vrot.slane %v3051_v40, 6  ;;  %v3086_v40 = vrot.slane %v3062_v36, 10 }
 0x160   : > { %1063 = vst.msk [vmem:[#allocation2 + $0x38] sm:$0xf] %vm1048_vm9, %v981_v4  ;;  %1341 = vrot.lane.b32.xlu2 %v1271_v7, %s3453_s29  ;;  %v1539_v4 = vrot.slane %v1537_v56, 4  ;;  %v3054_v56 = vld [vmem:[%s3526_s25 + $0x88] sm:$0xf] }
 0x161   : > { %v1579_v60 = vrot.slane %v3054_v56, 6 }
 0x162   : > { %v1003_v19 = vpop.permute.xlu2 %1002 }
 0x163   : > { %1074 = vst.msk [vmem:[#allocation2 + $0x64] sm:$0xf] %vm1048_vm9, %v1003_v19  ;;  %v1547_v19 = vrot.slane %v3040_v14, 6 }
 0x164   : > { %1345 = vrot.lane.b32.xlu1 %v1278_v5, %s3453_s29  ;;  %v1540_v5 = vrot.slane %v3037_v62, 6 }
 0x165   : > { %1343 = vrot.lane.b32.xlu0 %v1274_v8, %s3453_s29  ;;  %v1548_v27 = vsel %vm3682_vm6, %v1546_v18, %v1547_v19  ;;  %v3058_v18 = vld [vmem:[%s3526_s25 + $0x98] sm:$0x3]  ;;  %v3059_v19 = vld [vmem:[%s3526_s25 + $0x9c] sm:$0xc] }
 0x166   : > { %v989_v16 = vpop.permute.xlu1 %988  ;;  %v1541_v12 = vsel %vm3682_vm6, %v1539_v4, %v1540_v5  ;;  %v3084_v4 = vrot.slane %v3056_v63, 10  ;;  %v1586_v5 = vrot.slane %v3057_v1, 6 }
 0x167   : > { %1067 = vst.msk [vmem:[#allocation2 + $0x48] sm:$0xf] %vm1048_vm9, %v989_v16  ;;  %v987_v20 = vpop.permute.xlu0 %986  ;;  %v1553_v16 = vrot.slane %v1551_v10, 4 }
 0x168   : > { %1066 = vst.msk [vmem:[#allocation2 + $0x44] sm:$0xf] %vm1048_vm9, %v987_v20  ;;  %1347 = vrot.lane.b32.xlu2 %v1281_v23, %s3453_s29  ;;  %v1587_v13 = vsel %vm3682_vm6, %v3084_v4, %v1586_v5  ;;  %v1588_v22 = vrot.slane %v1586_v5, 4  ;;  %v3071_v4 = vld [vmem:[%s3526_s25 + $0xcc] sm:$0xc] }
 0x169   : > { %v1555_v25 = vsel %vm3682_vm6, %v1553_v16, %v1554_v17  ;;  %v3061_v17 = vld [vmem:[%s3526_s25 + $0xa4] sm:$0x3]  ;;  %v3073_v5 = vld [vmem:[%s3526_s25 + $0xd4] sm:$0x3] }
 0x16a   : > { %v1009_v37 = vpop.permute.xlu2 %1008 }
 0x16b   : > { %1077 = vst.msk [vmem:[#allocation2 + $0x70] sm:$0xf] %vm1048_vm9, %v1009_v37 }
 0x16c   : > { %1351 = vrot.lane.b32.xlu1 %v1288_v21, %s3453_s29  ;;  %v3079_v21 = vrot.slane %v3041_v15, 10  ;;  %v1580_v15 = vsel %vm3682_vm6, %v3083_v6, %v1579_v60  ;;  %v3089_v6 = vrot.slane %v3071_v4, 10 }
 0x16d   : > { %1349 = vrot.lane.b32.xlu0 %v1285_v24, %s3453_s29 }
 0x16e   : > { %v995_v33 = vpop.permute.xlu1 %994  ;;  %v1552_v28 = vsel %vm3682_vm6, %v3079_v21, %v1551_v10  ;;  %v3060_v10 = vld [vmem:[%s3526_s25 + $0xa0] sm:$0xf]  ;;  %v1596_v21 = vrot.slane %v3061_v17, 6 }
 0x16f   : > { %1070 = vst.msk [vmem:[#allocation2 + $0x54] sm:$0xf] %vm1048_vm9, %v995_v33  ;;  %v993_v38 = vpop.permute.xlu0 %992  ;;  %v3046_v33 = vld [vmem:[%s3526_s25 + $0x68] sm:$0x3]  ;;  %v1593_v14 = vrot.slane %v3060_v10, 6 }
 0x170   : > { %1069 = vst.msk [vmem:[#allocation2 + $0x50] sm:$0xf] %vm1048_vm9, %v993_v38  ;;  %1626 = vrot.lane.b32.xlu2 %v1517_v41, %s3454_s30  ;;  %v1560_v38 = vrot.slane %v1558_v26, 4  ;;  %v3063_v26 = vld [vmem:[%s3526_s25 + $0xac] sm:$0xf] }
 0x171   : > { %v1600_v31 = vrot.slane %v3063_v26, 6  ;;  %v3095_v26 = vld [vmem:[%s3526_s25 + $0x4c] sm:$0xf] }
 0x172   : > { %v1015_v53 = vpop.permute.xlu2 %1014 }
 0x173   : > { %1080 = vst.msk [vmem:[#allocation2 + $0x7c] sm:$0xf] %vm1048_vm9, %v1015_v53  ;;  %v1568_v53 = vrot.slane %v3049_v48, 6 }
 0x174   : > { %1630 = vrot.lane.b32.xlu1 %v1524_v39, %s3454_s30  ;;  %v1561_v39 = vrot.slane %v3046_v33, 6 }
 0x175   : > { %1628 = vrot.lane.b32.xlu0 %v1520_v42, %s3454_s30  ;;  %v1569_v61 = vsel %vm3682_vm6, %v1567_v52, %v1568_v53  ;;  %v3067_v52 = vld [vmem:[%s3526_s25 + $0xbc] sm:$0x3]  ;;  %v3068_v53 = vld [vmem:[%s3526_s25 + $0xc0] sm:$0xc] }
 0x176   : > { %v1001_v50 = vpop.permute.xlu1 %1000  ;;  %v1562_v46 = vsel %vm3682_vm6, %v1560_v38, %v1561_v39  ;;  %v3087_v38 = vrot.slane %v3065_v34, 10  ;;  %v1607_v39 = vrot.slane %v3066_v35, 6 }
 0x177   : > { %1073 = vst.msk [vmem:[#allocation2 + $0x60] sm:$0xf] %vm1048_vm9, %v1001_v50  ;;  %v999_v54 = vpop.permute.xlu0 %998  ;;  %v1574_v50 = vrot.slane %v1572_v44, 4 }
 0x178   : > { %1072 = vst.msk [vmem:[#allocation2 + $0x5c] sm:$0xf] %vm1048_vm9, %v999_v54  ;;  %1632 = vrot.lane.b32.xlu2 %v1527_v57, %s3454_s30  ;;  %v1608_v47 = vsel %vm3682_vm6, %v3087_v38, %v1607_v39  ;;  %v1609_v56 = vrot.slane %v1607_v39, 4  ;;  %v3100_v38 = vld [vmem:[%s3526_s25 + $0x6c] sm:$0xf] }
 0x179   : > { %v1576_v59 = vsel %vm3682_vm6, %v1574_v50, %v1575_v51  ;;  %v3070_v51 = vld [vmem:[%s3526_s25 + $0xc8] sm:$0x3]  ;;  %v3101_v39 = vld [vmem:[%s3526_s25 + $0x70] sm:$0xf] }
 0x17a   : > { %v1294_v7 = vpop.permute.xlu2 %1293 }
 0x17b   : > { %1388 = vst.msk [vmem:[#allocation2 + $0x8] sm:$0xf] %vm1385_vm10, %v1294_v7 }
 0x17c   : > { %1636 = vrot.lane.b32.xlu1 %v1534_v55, %s3454_s30  ;;  %v3082_v55 = vrot.slane %v3050_v49, 10  ;;  %v1601_v49 = vsel %vm3682_vm6, %v3086_v40, %v1600_v31 }
 0x17d   : > { %1634 = vrot.lane.b32.xlu0 %v1531_v58, %s3454_s30 }
 0x17e   : > { %v1007_v3 = vpop.permute.xlu1 %1006  ;;  %v1573_v62 = vsel %vm3682_vm6, %v3082_v55, %v1572_v44  ;;  %v3069_v44 = vld [vmem:[%s3526_s25 + $0xc4] sm:$0xf]  ;;  %v1617_v55 = vrot.slane %v3070_v51, 6  ;;  %v3168_v51 = vld [vmem:[%s3526_s25 + $0xe8] sm:$0xf] }
 0x17f   : > { %1076 = vst.msk [vmem:[#allocation2 + $0x6c] sm:$0xf] %vm1048_vm9, %v1007_v3  ;;  %v1005_v8 = vpop.permute.xlu0 %1004  ;;  %v3055_v3 = vld [vmem:[%s3526_s25 + $0x8c] sm:$0x3]  ;;  %v1614_v48 = vrot.slane %v3069_v44, 6 }
 0x180   : > { %1075 = vst.msk [vmem:[#allocation2 + $0x68] sm:$0xf] %vm1048_vm9, %v1005_v8  ;;  %1638 = vrot.lane.b32.xlu2 %v1538_v11, %s3454_s30  ;;  %v1581_v8 = vrot.slane %v1579_v60, 4  ;;  %v3103_v44 = vld [vmem:[%s3526_s25 + $0x7c] sm:$0xf] }
 0x182   : > { %v1300_v23 = vpop.permute.xlu2 %1299 }
 0x183   : > { %1391 = vst.msk [vmem:[#allocation2 + $0x14] sm:$0xf] %vm1385_vm10, %v1300_v23  ;;  %v1589_v23 = vrot.slane %v3058_v18, 6  ;;  %v3093_v18 = vld [vmem:[%s3526_s25 + $0x40] sm:$0xf] }
 0x184   : > { %1642 = vrot.lane.b32.xlu1 %v1545_v9, %s3454_s30  ;;  %v1582_v9 = vrot.slane %v3055_v3, 6 }
 0x185   : > { %1640 = vrot.lane.b32.xlu0 %v1541_v12, %s3454_s30  ;;  %v1590_v32 = vsel %vm3682_vm6, %v1588_v22, %v1589_v23 }
 0x186   : > { %v1013_v20 = vpop.permute.xlu1 %1012  ;;  %v1583_v16 = vsel %vm3682_vm6, %v1581_v8, %v1582_v9  ;;  %v1624_v9 = vrot.slane %v3073_v5, 6 }
 0x187   : > { %1079 = vst.msk [vmem:[#allocation2 + $0x78] sm:$0xf] %vm1048_vm9, %v1013_v20  ;;  %v1011_v24 = vpop.permute.xlu0 %1010  ;;  %v1595_v20 = vrot.slane %v1593_v14, 4 }
 0x188   : > { %1078 = vst.msk [vmem:[#allocation2 + $0x74] sm:$0xf] %vm1048_vm9, %v1011_v24  ;;  %1644 = vrot.lane.b32.xlu2 %v1548_v27, %s3454_s30 }
 0x189   : > { %v1597_v30 = vsel %vm3682_vm6, %v1595_v20, %v1596_v21  ;;  %v3092_v20 = vld [vmem:[%s3526_s25 + $0x3c] sm:$0xf] }
 0x18a   : > { %v1306_v41 = vpop.permute.xlu2 %1305 }
 0x18b   : > { %1394 = vst.msk [vmem:[#allocation2 + $0x20] sm:$0xf] %vm1385_vm10, %v1306_v41 }
 0x18c   : > { %1648 = vrot.lane.b32.xlu1 %v1555_v25, %s3454_s30  ;;  %v3085_v25 = vrot.slane %v3059_v19, 10  ;;  %v3091_v19 = vld [vmem:[%s3526_s25 + $0x34] sm:$0xf] }
 0x18d   : > { %1646 = vrot.lane.b32.xlu0 %v1552_v28, %s3454_s30 }
 0x18e   : > { %v1292_v37 = vpop.permute.xlu1 %1291  ;;  %v1594_v33 = vsel %vm3682_vm6, %v3085_v25, %v1593_v14  ;;  %v3094_v25 = vld [vmem:[%s3526_s25 + $0x48] sm:$0xf] }
 0x18f   : > { %1387 = vst.msk [vmem:[#allocation2 + $0x4] sm:$0xf] %vm1385_vm10, %v1292_v37  ;;  %v1290_v42 = vpop.permute.xlu0 %1289  ;;  %v3064_v37 = vld [vmem:[%s3526_s25 + $0xb0] sm:$0x3] }
 0x190   : > { %1386 = vst.msk [vmem:[#allocation2] sm:$0xf] %vm1385_vm10, %v1290_v42  ;;  %1650 = vrot.lane.b32.xlu2 %v1559_v45, %s3454_s30  ;;  %v1602_v42 = vrot.slane %v1600_v31, 4  ;;  %v3099_v31 = vld [vmem:[%s3526_s25 + $0x64] sm:$0xf] }
 0x192   : > { %v1312_v57 = vpop.permute.xlu2 %1311 }
 0x193   : > { %1397 = vst.msk [vmem:[#allocation2 + $0x2c] sm:$0xf] %vm1385_vm10, %v1312_v57  ;;  %v1610_v57 = vrot.slane %v3067_v52, 6 }
 0x194   : > { %1654 = vrot.lane.b32.xlu1 %v1566_v43, %s3454_s30  ;;  %v1603_v43 = vrot.slane %v3064_v37, 6  ;;  %v3102_v37 = vld [vmem:[%s3526_s25 + $0x78] sm:$0xf] }
 0x195   : > { %1652 = vrot.lane.b32.xlu0 %v1562_v46, %s3454_s30  ;;  %v1611_v1 = vsel %vm3682_vm6, %v1609_v56, %v1610_v57  ;;  %v3120_v56 = vld [vmem:[%s3526_s25 + $0xe4] sm:$0xf]  ;;  %v3121_v57 = vld [vmem:[%s3526_s25 + $0xe8] sm:$0xf] }
 0x196   : > { %v1298_v54 = vpop.permute.xlu1 %1297  ;;  %v1604_v50 = vsel %vm3682_vm6, %v1602_v42, %v1603_v43  ;;  %v3105_v43 = vld [vmem:[%s3526_s25 + $0x88] sm:$0xf] }
 0x197   : > { %1390 = vst.msk [vmem:[#allocation2 + $0x10] sm:$0xf] %vm1385_vm10, %v1298_v54  ;;  %v1296_v58 = vpop.permute.xlu0 %1295  ;;  %v1616_v54 = vrot.slane %v1614_v48, 4 }
 0x198   : > { %1389 = vst.msk [vmem:[#allocation2 + $0xc] sm:$0xf] %vm1385_vm10, %v1296_v58  ;;  %1656 = vrot.lane.b32.xlu2 %v1569_v61, %s3454_s30 }
 0x199   : > { %v1618_v63 = vsel %vm3682_vm6, %v1616_v54, %v1617_v55  ;;  %v2152_v55 = vrot.slane %v3168_v51, 5 }
 0x19a   : > { %v1318_v11 = vpop.permute.xlu2 %1317 }
 0x19b   : > { %1400 = vst.msk [vmem:[#allocation2 + $0x38] sm:$0xf] %vm1385_vm10, %v1318_v11 }
 0x19c   : > { %1660 = vrot.lane.b32.xlu1 %v1576_v59, %s3454_s30  ;;  %v3088_v59 = vrot.slane %v3068_v53, 10 }
 0x19d   : > { %1658 = vrot.lane.b32.xlu0 %v1573_v62, %s3454_s30  ;;  %v3072_v62 = vld [vmem:[%s3526_s25 + $0xd0] sm:$0xf] }
 0x19e   : > { %v1304_v7 = vpop.permute.xlu1 %1303  ;;  %v1615_v2 = vsel %vm3682_vm6, %v3088_v59, %v1614_v48  ;;  %v1621_v3 = vrot.slane %v3072_v62, 6  ;;  %v3145_v59 = vld [vmem:[%s3526_s25 + $0x8c] sm:$0x1] }
 0x19f   : > { %1393 = vst.msk [vmem:[#allocation2 + $0x1c] sm:$0xf] %vm1385_vm10, %v1304_v7  ;;  %v1302_v12 = vpop.permute.xlu0 %1301 }
 0x1a0   : > { %1392 = vst.msk [vmem:[#allocation2 + $0x18] sm:$0xf] %vm1385_vm10, %v1302_v12  ;;  %1662 = vrot.lane.b32.xlu2 %v1580_v15, %s3454_s30  ;;  %v1623_v8 = vrot.slane %v1621_v3, 4  ;;  %v3090_v12 = vld [vmem:[%s3526_s25 + $0x30] sm:$0xf] }
 0x1a2   : > { %v1324_v27 = vpop.permute.xlu2 %1323  ;;  %v1625_v14 = vsel %vm3682_vm6, %v1623_v8, %v1624_v9  ;;  %v3231_v8 = vld [vmem:[%s3526_s25 + $0xe4] sm:$0xc] }
 0x1a3   : > { %1403 = vst.msk [vmem:[#allocation2 + $0x44] sm:$0xf] %vm1385_vm10, %v1324_v27 }
 0x1a4   : > { %1666 = vrot.lane.b32.xlu1 %v1587_v13, %s3454_s30  ;;  %v1622_v13 = vsel %vm3682_vm6, %v3089_v6, %v1621_v3  ;;  %v3208_v6 = vld [vmem:[%s3526_s25 + $0x88] sm:$0xf] }
 0x1a5   : > { %1664 = vrot.lane.b32.xlu0 %v1583_v16, %s3454_s30 }
 0x1a6   : > { %v1310_v24 = vpop.permute.xlu1 %1309 }
 0x1a7   : > { %1396 = vst.msk [vmem:[#allocation2 + $0x28] sm:$0xf] %vm1385_vm10, %v1310_v24  ;;  %v1308_v28 = vpop.permute.xlu0 %1307  ;;  %v3096_v24 = vld [vmem:[%s3526_s25 + $0x54] sm:$0xf] }
 0x1a8   : > { %1395 = vst.msk [vmem:[#allocation2 + $0x24] sm:$0xf] %vm1385_vm10, %v1308_v28  ;;  %1668 = vrot.lane.b32.xlu2 %v1590_v32, %s3454_s30  ;;  %v3097_v32 = vld [vmem:[%s3526_s25 + $0x58] sm:$0xf] }
 0x1aa   : > { %v1330_v45 = vpop.permute.xlu2 %1329 }
 0x1ab   : > { %1406 = vst.msk [vmem:[#allocation2 + $0x50] sm:$0xf] %vm1385_vm10, %v1330_v45  ;;  %v3104_v45 = vld [vmem:[%s3526_s25 + $0x84] sm:$0xf] }
 0x1ac   : > { %1672 = vrot.lane.b32.xlu1 %v1597_v30, %s3454_s30 }
 0x1ad   : > { %1670 = vrot.lane.b32.xlu0 %v1594_v33, %s3454_s30  ;;  %v3098_v33 = vld [vmem:[%s3526_s25 + $0x60] sm:$0xf] }
 0x1ae   : > { %v1316_v41 = vpop.permute.xlu1 %1315 }
 0x1af   : > { %1399 = vst.msk [vmem:[#allocation2 + $0x34] sm:$0xf] %vm1385_vm10, %v1316_v41  ;;  %v1314_v46 = vpop.permute.xlu0 %1313 }
 0x1b0   : > { %1398 = vst.msk [vmem:[#allocation2 + $0x30] sm:$0xf] %vm1385_vm10, %v1314_v46  ;;  %1674 = vrot.lane.b32.xlu2 %v1601_v49, %s3454_s30  ;;  %v3143_v46 = vld [vmem:[%s3526_s25 + $0x84] sm:$0xe] }
 0x1b1   : > { %v3177_v48 = vrot.slane %v3143_v46, 9 }
 0x1b2   : > { %v1336_v60 = vpop.permute.xlu2 %1335 }
 0x1b3   : > { %1409 = vst.msk [vmem:[#allocation2 + $0x5c] sm:$0xf] %vm1385_vm10, %v1336_v60  ;;  %v3167_v60 = vld [vmem:[%s3526_s25 + $0xe4] sm:$0xe] }
 0x1b4   : > { %1678 = vrot.lane.b32.xlu1 %v1608_v47, %s3454_s30  ;;  %v3144_v47 = vld [vmem:[%s3526_s25 + $0x88] sm:$0xf]  ;;  %v3185_v3 = vrot.slane %v3167_v60, 9 }
 0x1b5   : > { %1676 = vrot.lane.b32.xlu0 %v1604_v50, %s3454_s30  ;;  %v2096_v49 = vrot.slane %v3144_v47, 5 }
 0x1b6   : > { %v1322_v58 = vpop.permute.xlu1 %1321 }
 0x1b7   : > { %1402 = vst.msk [vmem:[#allocation2 + $0x40] sm:$0xf] %vm1385_vm10, %v1322_v58  ;;  %v1320_v61 = vpop.permute.xlu0 %1319  ;;  %v2097_v54 = vsel %vm3528_vm2, %v3177_v48, %v2096_v49  ;;  %v3169_v58 = vld [vmem:[%s3526_s25 + $0xec] sm:$0x1]  ;;  %v3205_v48 = vld [vmem:[%s3526_s25 + $0x7c] sm:$0xf] }
 0x1b8   : > { %1401 = vst.msk [vmem:[#allocation2 + $0x3c] sm:$0xf] %vm1385_vm10, %v1320_v61  ;;  %1680 = vrot.lane.b32.xlu2 %v1611_v1, %s3454_s30  ;;  %v2154_v61 = vrot.slane %v2152_v55, 4  ;;  %v2155_v62 = vrot.slane %v3169_v58, 5  ;;  %v2099_v1 = vrot.slane %v3145_v59, 5 }
 0x1ba   : > { %v1342_v10 = vpop.permute.xlu2 %1341 }
 0x1bb   : > { %1412 = vst.msk [vmem:[#allocation2 + $0x68] sm:$0xf] %vm1385_vm10, %v1342_v10  ;;  %v2153_v10 = vsel %vm3528_vm2, %v3185_v3, %v2152_v55  ;;  %v3206_v55 = vld [vmem:[%s3526_s25 + $0x80] sm:$0x3]  ;;  %v3229_v3 = vld [vmem:[%s3526_s25 + $0xdc] sm:$0xf] }
 0x1bc   : > { %1684 = vrot.lane.b32.xlu1 %v1618_v63, %s3454_s30  ;;  %v2098_v63 = vrot.slane %v2096_v49, 4  ;;  %v2429_v59 = vrot.slane %v3206_v55, 6 }
 0x1bd   : > { %1682 = vrot.lane.b32.xlu0 %v1615_v2, %s3454_s30 }
 0x1be   : > { %v1328_v7 = vpop.permute.xlu1 %1327  ;;  %v2100_v9 = vsel %vm3528_vm2, %v2098_v63, %v2099_v1 }
 0x1bf   : > { %1405 = vst.msk [vmem:[#allocation2 + $0x4c] sm:$0xf] %vm1385_vm10, %v1328_v7  ;;  %v1326_v11 = vpop.permute.xlu0 %1325  ;;  %v2156_v7 = vsel %vm3528_vm2, %v2154_v61, %v2155_v62 }
 0x1c0   : > { %1404 = vst.msk [vmem:[#allocation2 + $0x48] sm:$0xf] %vm1385_vm10, %v1326_v11  ;;  %1686 = vrot.lane.b32.xlu2 %v1622_v13, %s3454_s30  ;;  %v3232_v11 = vld [vmem:[%s3526_s25 + $0xe8] sm:$0xf]  ;;  %v3207_v13 = vld [vmem:[%s3526_s25 + $0x84] sm:$0xc] }
 0x1c2   : > { %v1348_v16 = vpop.permute.xlu2 %1347 }
 0x1c3   : > { %1415 = vst.msk [vmem:[#allocation2 + $0x74] sm:$0xf] %vm1385_vm10, %v1348_v16  ;;  %v2489_v16 = vrot.slane %v3232_v11, 6 }
 0x1c4   : > { %1820 = vrot.lane.b32.xlu1 %v3090_v12, %s3455_s3  ;;  %v2433_v12 = vrot.slane %v3208_v6, 6 }
 0x1c5   : > { %1688 = vrot.lane.b32.xlu0 %v1625_v14, %s3454_s30  ;;  %v3209_v14 = vld [vmem:[%s3526_s25 + $0x8c] sm:$0x3]  ;;  %s3406_s30 = scalar_lea.hbm %s4903_s2, 32 }
 0x1c6   : > { %v1334_v15 = vpop.permute.xlu1 %1333 }
 0x1c7   : > { %1408 = vst.msk [vmem:[#allocation2 + $0x58] sm:$0xf] %vm1385_vm10, %v1334_v15  ;;  %v1332_v17 = vpop.permute.xlu0 %1331  ;;  %v3249_v15 = vrot.slane %v3231_v8, 10  ;;  %v3228_v8 = vld [vmem:[%s3526_s25 + $0xd8] sm:$0xc] }
 0x1c8   : > { %1407 = vst.msk [vmem:[#allocation2 + $0x54] sm:$0xf] %vm1385_vm10, %v1332_v17  ;;  %1822 = vrot.lane.b32.xlu2 %v3091_v19, %s3455_s3  ;;  %v3241_v17 = vrot.slane %v3207_v13, 10  ;;  %v2435_v19 = vrot.slane %v2433_v12, 4 }
 0x1ca   : > { %v1627_v22 = vpop.permute.xlu2 %1626 }
 0x1cb   : > { %1723 = vst.msk [vmem:[#allocation2] sm:$0xf] %vm1722_vm11, %v1627_v22 }
 0x1cc   : > { %1826 = vrot.lane.b32.xlu1 %v3093_v18, %s3455_s3 }
 0x1cd   : > { %1824 = vrot.lane.b32.xlu0 %v3092_v20, %s3455_s3  ;;  %v2436_v20 = vrot.slane %v3209_v14, 6  ;;  %v3138_v14 = vld [vmem:[%s3526_s25 + $0x70] sm:$0xf] }
 0x1ce   : > { %v1340_v21 = vpop.permute.xlu1 %1339 }
 0x1cf   : > { %1411 = vst.msk [vmem:[#allocation2 + $0x64] sm:$0xf] %vm1385_vm10, %v1340_v21  ;;  %v1338_v23 = vpop.permute.xlu0 %1337 }
 0x1d0   : > { %1410 = vst.msk [vmem:[#allocation2 + $0x60] sm:$0xf] %vm1385_vm10, %v1338_v23  ;;  %1828 = vrot.lane.b32.xlu2 %v3094_v25, %s3455_s3  ;;  %v2490_v23 = vsel %vm3682_vm6, %v3249_v15, %v2489_v16  ;;  %v2437_v25 = vsel %vm3682_vm6, %v2435_v19, %v2436_v20 }
 0x1d2   : > { %v1633_v28 = vpop.permute.xlu2 %1632 }
 0x1d3   : > { %1726 = vst.msk [vmem:[#allocation2 + $0xc] sm:$0xf] %vm1722_vm11, %v1633_v28 }
 0x1d4   : > { %1832 = vrot.lane.b32.xlu1 %v3096_v24, %s3455_s3  ;;  %v2434_v24 = vsel %vm3682_vm6, %v3241_v17, %v2433_v12  ;;  %v3116_v17 = vld [vmem:[%s3526_s25 + $0xcc] sm:$0xf] }
 0x1d5   : > { %1830 = vrot.lane.b32.xlu0 %v3095_v26, %s3455_s3  ;;  %v3233_v26 = vld [vmem:[%s3526_s25 + $0xec] sm:$0x3] }
 0x1d6   : > { %v1346_v27 = vpop.permute.xlu1 %1345  ;;  %v2492_v28 = vrot.slane %v3233_v26, 6 }
 0x1d7   : > { %1414 = vst.msk [vmem:[#allocation2 + $0x70] sm:$0xf] %vm1385_vm10, %v1346_v27  ;;  %v1344_v30 = vpop.permute.xlu0 %1343  ;;  %v2491_v27 = vrot.slane %v2489_v16, 4 }
 0x1d8   : > { %1413 = vst.msk [vmem:[#allocation2 + $0x6c] sm:$0xf] %vm1385_vm10, %v1344_v30  ;;  %1834 = vrot.lane.b32.xlu2 %v3097_v32, %s3455_s3 }
 0x1da   : > { %v1639_v35 = vpop.permute.xlu2 %1638 }
 0x1db   : > { %1729 = vst.msk [vmem:[#allocation2 + $0x18] sm:$0xf] %vm1722_vm11, %v1639_v35  ;;  %v3118_v35 = vld [vmem:[%s3526_s25 + $0xd8] sm:$0xf] }
 0x1dc   : > { %1838 = vrot.lane.b32.xlu1 %v3099_v31, %s3455_s3  ;;  %v3141_v31 = vld [vmem:[%s3526_s25 + $0x7c] sm:$0xf] }
 0x1dd   : > { %1836 = vrot.lane.b32.xlu0 %v3098_v33, %s3455_s3 }
 0x1de   : > { %v1352_v34 = vpop.permute.xlu1 %1351 }
 0x1df   : > { %1417 = vst.msk [vmem:[#allocation2 + $0x7c] sm:$0xf] %vm1385_vm10, %v1352_v34  ;;  %v1350_v36 = vpop.permute.xlu0 %1349  ;;  %v3119_v34 = vld [vmem:[%s3526_s25 + $0xdc] sm:$0xf] }
 0x1e0   : > { %1416 = vst.msk [vmem:[#allocation2 + $0x78] sm:$0xf] %vm1385_vm10, %v1350_v36  ;;  %1840 = vrot.lane.b32.xlu2 %v3100_v38, %s3455_s3  ;;  %v2089_v36 = vrot.slane %v3141_v31, 5  ;;  %v3164_v38 = vld [vmem:[%s3526_s25 + $0xd8] sm:$0xe] }
 0x1e2   : > { %v1645_v41 = vpop.permute.xlu2 %1644  ;;  %v2091_v46 = vrot.slane %v2089_v36, 4 }
 0x1e3   : > { %1732 = vst.msk [vmem:[#allocation2 + $0x24] sm:$0xf] %vm1722_vm11, %v1645_v41  ;;  %v3142_v41 = vld [vmem:[%s3526_s25 + $0x80] sm:$0x1] }
 0x1e4   : > { %1844 = vrot.lane.b32.xlu1 %v3102_v37, %s3455_s3  ;;  %v2493_v37 = vsel %vm3682_vm6, %v2491_v27, %v2492_v28  ;;  %v2092_v47 = vrot.slane %v3142_v41, 5  ;;  %v3162_v27 = vld [vmem:[%s3526_s25 + $0xd0] sm:$0xf] }
 0x1e5   : > { %1842 = vrot.lane.b32.xlu0 %v3101_v39, %s3455_s3  ;;  %v3165_v39 = vld [vmem:[%s3526_s25 + $0xdc] sm:$0xf] }
 0x1e6   : > { %v1631_v40 = vpop.permute.xlu1 %1630 }
 0x1e7   : > { %1725 = vst.msk [vmem:[#allocation2 + $0x8] sm:$0xf] %vm1722_vm11, %v1631_v40  ;;  %v1629_v42 = vpop.permute.xlu0 %1628  ;;  %v3140_v40 = vld [vmem:[%s3526_s25 + $0x78] sm:$0xe] }
 0x1e8   : > { %1724 = vst.msk [vmem:[#allocation2 + $0x4] sm:$0xf] %vm1722_vm11, %v1629_v42  ;;  %1846 = vrot.lane.b32.xlu2 %v3103_v44, %s3455_s3  ;;  %v3184_v42 = vrot.slane %v3164_v38, 9  ;;  %v3176_v44 = vrot.slane %v3140_v40, 9  ;;  %v3163_v38 = vld [vmem:[%s3526_s25 + $0xd4] sm:$0x1] }
 0x1ea   : > { %v1651_v52 = vpop.permute.xlu2 %1650 }
 0x1eb   : > { %1735 = vst.msk [vmem:[#allocation2 + $0x30] sm:$0xf] %vm1722_vm11, %v1651_v52  ;;  %v2426_v52 = vrot.slane %v3205_v48, 6 }
 0x1ec   : > { %1850 = vrot.lane.b32.xlu1 %v3105_v43, %s3455_s3  ;;  %v2145_v43 = vrot.slane %v3165_v39, 5 }
 0x1ed   : > { %1848 = vrot.lane.b32.xlu0 %v3104_v45, %s3455_s3  ;;  %v2428_v58 = vrot.slane %v2426_v52, 4 }
 0x1ee   : > { %v1637_v50 = vpop.permute.xlu1 %1636  ;;  %v2146_v51 = vsel %vm3528_vm2, %v3184_v42, %v2145_v43  ;;  %v2147_v60 = vrot.slane %v2145_v43, 4 }
 0x1ef   : > { %1728 = vst.msk [vmem:[#allocation2 + $0x14] sm:$0xf] %vm1722_vm11, %v1637_v50  ;;  %v1635_v53 = vpop.permute.xlu0 %1634 }
 0x1f0   : > { %1727 = vst.msk [vmem:[#allocation2 + $0x10] sm:$0xf] %vm1722_vm11, %v1635_v53  ;;  %1880 = vrot.lane.b32.xlu2 %v3120_v56, %s3455_s3  ;;  %v2090_v53 = vsel %vm3528_vm2, %v3176_v44, %v2089_v36  ;;  %v3166_v56 = vld [vmem:[%s3526_s25 + $0xe0] sm:$0x1]  ;;  %v3202_v36 = vld [vmem:[%s3526_s25 + $0x70] sm:$0xf] }
 0x1f1   : > { %v2148_v61 = vrot.slane %v3166_v56, 5  ;;  %v2419_v40 = vrot.slane %v3202_v36, 6  ;;  %v2141_v44 = vrot.slane %v3163_v38, 5 }
 0x1f2   : > { %v1657_v4 = vpop.permute.xlu2 %1656 }
 0x1f3   : > { %1738 = vst.msk [vmem:[#allocation2 + $0x3c] sm:$0xf] %vm1722_vm11, %v1657_v4  ;;  %v2430_v4 = vsel %vm3682_vm6, %v2428_v58, %v2429_v59 }
 0x1f4   : > { %2185 = vrot.lane.b32.xlu1 %v2097_v54, %s3456_s4  ;;  %v2093_v54 = vsel %vm3528_vm2, %v2091_v46, %v2092_v47 }
 0x1f5   : > { %1882 = vrot.lane.b32.xlu0 %v3121_v57, %s3455_s3  ;;  %v3204_v57 = vld [vmem:[%s3526_s25 + $0x78] sm:$0xc] }
 0x1f6   : > { %v1643_v2 = vpop.permute.xlu1 %1642  ;;  %v3240_v63 = vrot.slane %v3204_v57, 10  ;;  %v2421_v57 = vrot.slane %v2419_v40, 4 }
 0x1f7   : > { %1731 = vst.msk [vmem:[#allocation2 + $0x20] sm:$0xf] %vm1722_vm11, %v1643_v2  ;;  %v1641_v5 = vpop.permute.xlu0 %1640 }
 0x1f8   : > { %1730 = vst.msk [vmem:[#allocation2 + $0x1c] sm:$0xf] %vm1722_vm11, %v1641_v5  ;;  %2187 = vrot.lane.b32.xlu2 %v2100_v9, %s3456_s4  ;;  %v2149_v5 = vsel %vm3528_vm2, %v2147_v60, %v2148_v61  ;;  %v2427_v6 = vsel %vm3682_vm6, %v3240_v63, %v2426_v52  ;;  %v3230_v9 = vld [vmem:[%s3526_s25 + $0xe0] sm:$0x3]  ;;  %v3227_v52 = vld [vmem:[%s3526_s25 + $0xd4] sm:$0x3] }
 0x1f9   : > { %v2485_v13 = vrot.slane %v3230_v9, 6  ;;  %v2478_v56 = vrot.slane %v3227_v52, 6 }
 0x1fa   : > { %v1663_v21 = vpop.permute.xlu2 %1662 }
 0x1fb   : > { %1741 = vst.msk [vmem:[#allocation2 + $0x48] sm:$0xf] %vm1722_vm11, %v1663_v21  ;;  %v3139_v21 = vld [vmem:[%s3526_s25 + $0x74] sm:$0x1] }
 0x1fc   : > { %2219 = vrot.lane.b32.xlu1 %v2156_v7, %s3456_s4  ;;  %v2482_v7 = vrot.slane %v3229_v3, 6  ;;  %v3134_v3 = vld [vmem:[%s3526_s25 + $0x60] sm:$0xe] }
 0x1fd   : > { %2217 = vrot.lane.b32.xlu0 %v2153_v10, %s3456_s4  ;;  %v3248_v10 = vrot.slane %v3228_v8, 10  ;;  %v3159_v8 = vld [vmem:[%s3526_s25 + $0xc4] sm:$0xf] }
 0x1fe   : > { %v1649_v18 = vpop.permute.xlu1 %1648  ;;  %v2484_v12 = vrot.slane %v2482_v7, 4 }
 0x1ff   : > { %1734 = vst.msk [vmem:[#allocation2 + $0x2c] sm:$0xf] %vm1722_vm11, %v1649_v18  ;;  %v1647_v22 = vpop.permute.xlu0 %1646  ;;  %v2082_v18 = vrot.slane %v3138_v14, 5  ;;  %v2483_v19 = vsel %vm3682_vm6, %v3248_v10, %v2482_v7  ;;  %v3115_v14 = vld [vmem:[%s3526_s25 + $0xc4] sm:$0xf] }
 0x200   : > { %1733 = vst.msk [vmem:[#allocation2 + $0x28] sm:$0xf] %vm1722_vm11, %v1647_v22  ;;  %2522 = vrot.lane.b32.xlu2 %v2434_v24, %s3457_s5  ;;  %v2486_v20 = vsel %vm3682_vm6, %v2484_v12, %v2485_v13  ;;  %v3137_v22 = vld [vmem:[%s3526_s25 + $0x6c] sm:$0xe]  ;;  %v2085_v24 = vrot.slane %v3139_v21, 5  ;;  %v2131_v12 = vrot.slane %v3159_v8, 5 }
 0x201   : > { %v3175_v26 = vrot.slane %v3137_v22, 9  ;;  %v3114_v13 = vld [vmem:[%s3526_s25 + $0xc0] sm:$0xf] }
 0x202   : > { %v1669_v32 = vpop.permute.xlu2 %1668 }
 0x203   : > { %1744 = vst.msk [vmem:[#allocation2 + $0x54] sm:$0xf] %vm1722_vm11, %v1669_v32  ;;  %v2138_v32 = vrot.slane %v3162_v27, 5 }
 0x204   : > { %2554 = vrot.lane.b32.xlu1 %v2490_v23, %s3457_s5  ;;  %v2084_v23 = vrot.slane %v2082_v18, 4 }
 0x205   : > { %2524 = vrot.lane.b32.xlu0 %v2437_v25, %s3457_s5  ;;  %v2140_v43 = vrot.slane %v2138_v32, 4 }
 0x206   : > { %v1655_v30 = vpop.permute.xlu1 %1654  ;;  %v2086_v31 = vsel %vm3528_vm2, %v2084_v23, %v2085_v24  ;;  %v3199_v24 = vld [vmem:[%s3526_s25 + $0x64] sm:$0xf] }
 0x207   : > { %1737 = vst.msk [vmem:[#allocation2 + $0x38] sm:$0xf] %vm1722_vm11, %v1655_v30  ;;  %v1653_v33 = vpop.permute.xlu0 %1652 }
 0x208   : > { %1736 = vst.msk [vmem:[#allocation2 + $0x34] sm:$0xf] %vm1722_vm11, %v1653_v33  ;;  %2556 = vrot.lane.b32.xlu2 %v2493_v37, %s3457_s5  ;;  %v3117_v33 = vld [vmem:[%s3526_s25 + $0xd0] sm:$0xf]  ;;  %v3161_v37 = vld [vmem:[%s3526_s25 + $0xcc] sm:$0xe] }
 0x209   : > { %v3183_v41 = vrot.slane %v3161_v37, 9 }
 0x20a   : > { %v1675_v49 = vpop.permute.xlu2 %1674 }
 0x20b   : > { %1747 = vst.msk [vmem:[#allocation2 + $0x60] sm:$0xf] %vm1722_vm11, %v1675_v49 }
 0x20c   : > { %1878 = vrot.lane.b32.xlu1 %v3119_v34, %s3455_s3  ;;  %v2083_v34 = vsel %vm3528_vm2, %v3175_v26, %v2082_v18  ;;  %v2133_v18 = vrot.slane %v2131_v12, 4 }
 0x20d   : > { %1876 = vrot.lane.b32.xlu0 %v3118_v35, %s3455_s3  ;;  %v3201_v35 = vld [vmem:[%s3526_s25 + $0x6c] sm:$0xc] }
 0x20e   : > { %v1661_v45 = vpop.permute.xlu1 %1660  ;;  %v3239_v39 = vrot.slane %v3201_v35, 10  ;;  %v3200_v35 = vld [vmem:[%s3526_s25 + $0x68] sm:$0x3] }
 0x20f   : > { %1740 = vst.msk [vmem:[#allocation2 + $0x44] sm:$0xf] %vm1722_vm11, %v1661_v45  ;;  %v1659_v50 = vpop.permute.xlu0 %1658  ;;  %v3226_v45 = vld [vmem:[%s3526_s25 + $0xd0] sm:$0xf] }
 0x210   : > { %1739 = vst.msk [vmem:[#allocation2 + $0x40] sm:$0xf] %vm1722_vm11, %v1659_v50  ;;  %2181 = vrot.lane.b32.xlu2 %v2090_v53, %s3456_s4  ;;  %v2420_v48 = vsel %vm3682_vm6, %v3239_v39, %v2419_v40  ;;  %v2475_v49 = vrot.slane %v3226_v45, 6  ;;  %v2139_v50 = vsel %vm3528_vm2, %v3183_v41, %v2138_v32  ;;  %v3203_v53 = vld [vmem:[%s3526_s25 + $0x74] sm:$0x3]  ;;  %v2415_v41 = vrot.slane %v3200_v35, 6 }
 0x211   : > { %v2422_v58 = vrot.slane %v3203_v53, 6  ;;  %v3222_v32 = vld [vmem:[%s3526_s25 + $0xc0] sm:$0xc]  ;;  %v3129_v35 = vld [vmem:[%s3526_s25 + $0x4c] sm:$0xf] }
 0x212   : > { %v1681_v1 = vpop.permute.xlu2 %1680  ;;  %v2477_v55 = vrot.slane %v2475_v49, 4  ;;  %v3246_v36 = vrot.slane %v3222_v32, 10 }
 0x213   : > { %1750 = vst.msk [vmem:[#allocation2 + $0x6c] sm:$0xf] %vm1722_vm11, %v1681_v1  ;;  %v2423_v1 = vsel %vm3682_vm6, %v2421_v57, %v2422_v58  ;;  %v3155_v58 = vld [vmem:[%s3526_s25 + $0xb4] sm:$0xe] }
 0x214   : > { %2213 = vrot.lane.b32.xlu1 %v2146_v51, %s3456_s4  ;;  %v2142_v51 = vsel %vm3528_vm2, %v2140_v43, %v2141_v44  ;;  %v2479_v63 = vsel %vm3682_vm6, %v2477_v55, %v2478_v56  ;;  %v3112_v55 = vld [vmem:[%s3526_s25 + $0xb4] sm:$0xf] }
 0x215   : > { %2183 = vrot.lane.b32.xlu0 %v2093_v54, %s3456_s4  ;;  %v3225_v54 = vld [vmem:[%s3526_s25 + $0xcc] sm:$0xc] }
 0x216   : > { %v1667_v62 = vpop.permute.xlu1 %1666  ;;  %v3247_v60 = vrot.slane %v3225_v54, 10  ;;  %v3113_v54 = vld [vmem:[%s3526_s25 + $0xb8] sm:$0xf] }
 0x217   : > { %1743 = vst.msk [vmem:[#allocation2 + $0x50] sm:$0xf] %vm1722_vm11, %v1667_v62  ;;  %v1665_v2 = vpop.permute.xlu0 %1664 }
 0x218   : > { %1742 = vst.msk [vmem:[#allocation2 + $0x4c] sm:$0xf] %vm1722_vm11, %v1665_v2  ;;  %2215 = vrot.lane.b32.xlu2 %v2149_v5, %s3456_s4  ;;  %v2476_v2 = vsel %vm3682_vm6, %v3247_v60, %v2475_v49  ;;  %v3174_v5 = vrot.slane %v3134_v3, 9  ;;  %v3131_v60 = vld [vmem:[%s3526_s25 + $0x54] sm:$0xe] }
 0x21a   : > { %v1687_v15 = vpop.permute.xlu2 %1686 }
 0x21b   : > { %1753 = vst.msk [vmem:[#allocation2 + $0x78] sm:$0xf] %vm1722_vm11, %v1687_v15  ;;  %v3160_v15 = vld [vmem:[%s3526_s25 + $0xc8] sm:$0x1] }
 0x21c   : > { %2520 = vrot.lane.b32.xlu1 %v2430_v4, %s3457_s5  ;;  %v3135_v4 = vld [vmem:[%s3526_s25 + $0x64] sm:$0xf] }
 0x21d   : > { %2518 = vrot.lane.b32.xlu0 %v2427_v6, %s3457_s5  ;;  %v2075_v6 = vrot.slane %v3135_v4, 5 }
 0x21e   : > { %v1673_v11 = vpop.permute.xlu1 %1672 }
 0x21f   : > { %1746 = vst.msk [vmem:[#allocation2 + $0x5c] sm:$0xf] %vm1722_vm11, %v1673_v11  ;;  %v1671_v16 = vpop.permute.xlu0 %1670  ;;  %v2076_v11 = vsel %vm3528_vm2, %v3174_v5, %v2075_v6  ;;  %v3196_v5 = vld [vmem:[%s3526_s25 + $0x58] sm:$0xf] }
 0x220   : > { %1745 = vst.msk [vmem:[#allocation2 + $0x58] sm:$0xf] %vm1722_vm11, %v1671_v16  ;;  %2550 = vrot.lane.b32.xlu2 %v2483_v19, %s3457_s5  ;;  %v3136_v16 = vld [vmem:[%s3526_s25 + $0x68] sm:$0x1]  ;;  %v2134_v19 = vrot.slane %v3160_v15, 5 }
 0x221   : > { %v2078_v21 = vrot.slane %v3136_v16, 5 }
 0x222   : > { %v1823_v28 = vpop.permute.xlu2 %1822  ;;  %v2135_v27 = vsel %vm3528_vm2, %v2133_v18, %v2134_v19 }
 0x223   : > { %1918 = vst.msk [vmem:[#allocation2 + $0x4] sm:$0xf] %vm1916_vm12, %v1823_v28  ;;  %v2412_v28 = vrot.slane %v3199_v24, 6 }
 0x224   : > { %1872 = vrot.lane.b32.xlu1 %v3116_v17, %s3455_s3  ;;  %v3158_v17 = vld [vmem:[%s3526_s25 + $0xc0] sm:$0xe] }
 0x225   : > { %2552 = vrot.lane.b32.xlu0 %v2486_v20, %s3457_s5  ;;  %v2077_v20 = vrot.slane %v2075_v6, 4  ;;  %v3182_v23 = vrot.slane %v3158_v17, 9  ;;  %v2414_v40 = vrot.slane %v2412_v28, 4 }
 0x226   : > { %v1679_v25 = vpop.permute.xlu1 %1678 }
 0x227   : > { %1749 = vst.msk [vmem:[#allocation2 + $0x68] sm:$0xf] %vm1722_vm11, %v1679_v25  ;;  %v1677_v30 = vpop.permute.xlu0 %1676 }
 0x228   : > { %1748 = vst.msk [vmem:[#allocation2 + $0x64] sm:$0xf] %vm1722_vm11, %v1677_v30  ;;  %1874 = vrot.lane.b32.xlu2 %v3117_v33, %s3455_s3  ;;  %v2079_v30 = vsel %vm3528_vm2, %v2077_v20, %v2078_v21  ;;  %v3223_v33 = vld [vmem:[%s3526_s25 + $0xc4] sm:$0xf] }
 0x229   : > { %v2468_v37 = vrot.slane %v3223_v33, 6 }
 0x22a   : > { %v1829_v46 = vpop.permute.xlu2 %1828 }
 0x22b   : > { %1921 = vst.msk [vmem:[#allocation2 + $0x10] sm:$0xf] %vm1916_vm12, %v1829_v46  ;;  %v2469_v44 = vsel %vm3682_vm6, %v3246_v36, %v2468_v37  ;;  %v2416_v46 = vsel %vm3682_vm6, %v2414_v40, %v2415_v41 }
 0x22c   : > { %2179 = vrot.lane.b32.xlu1 %v2086_v31, %s3456_s4  ;;  %v2132_v31 = vsel %vm3528_vm2, %v3182_v23, %v2131_v12  ;;  %v3197_v12 = vld [vmem:[%s3526_s25 + $0x5c] sm:$0x3]  ;;  %v3220_v23 = vld [vmem:[%s3526_s25 + $0xb8] sm:$0xf] }
 0x22d   : > { %2177 = vrot.lane.b32.xlu0 %v2083_v34, %s3456_s4  ;;  %v3198_v34 = vld [vmem:[%s3526_s25 + $0x60] sm:$0xc]  ;;  %v2408_v16 = vrot.slane %v3197_v12, 6 }
 0x22e   : > { %v1685_v42 = vpop.permute.xlu1 %1684  ;;  %v3238_v38 = vrot.slane %v3198_v34, 10 }
 0x22f   : > { %1752 = vst.msk [vmem:[#allocation2 + $0x74] sm:$0xf] %vm1722_vm11, %v1685_v42  ;;  %v1683_v47 = vpop.permute.xlu0 %1682 }
 0x230   : > { %1751 = vst.msk [vmem:[#allocation2 + $0x70] sm:$0xf] %vm1722_vm11, %v1683_v47  ;;  %2209 = vrot.lane.b32.xlu2 %v2139_v50, %s3456_s4  ;;  %v2413_v45 = vsel %vm3682_vm6, %v3238_v38, %v2412_v28  ;;  %v3224_v47 = vld [vmem:[%s3526_s25 + $0xc8] sm:$0x3]  ;;  %v3219_v28 = vld [vmem:[%s3526_s25 + $0xb4] sm:$0xc] }
 0x231   : > { %v2471_v49 = vrot.slane %v3224_v47, 6  ;;  %v3110_v38 = vld [vmem:[%s3526_s25 + $0xa8] sm:$0xf] }
 0x232   : > { %v1835_v61 = vpop.permute.xlu2 %1834 }
 0x233   : > { %1924 = vst.msk [vmem:[#allocation2 + $0x1c] sm:$0xf] %vm1916_vm12, %v1835_v61  ;;  %v3133_v61 = vld [vmem:[%s3526_s25 + $0x5c] sm:$0x1] }
 0x234   : > { %2514 = vrot.lane.b32.xlu1 %v2420_v48, %s3457_s5  ;;  %v2470_v48 = vrot.slane %v2468_v37, 4  ;;  %v2071_v4 = vrot.slane %v3133_v61, 5 }
 0x235   : > { %2211 = vrot.lane.b32.xlu0 %v2142_v51, %s3456_s4  ;;  %v3132_v51 = vld [vmem:[%s3526_s25 + $0x58] sm:$0xf] }
 0x236   : > { %v1821_v59 = vpop.permute.xlu1 %1820  ;;  %v2068_v56 = vrot.slane %v3132_v51, 5  ;;  %v2472_v57 = vsel %vm3682_vm6, %v2470_v48, %v2471_v49  ;;  %v3153_v48 = vld [vmem:[%s3526_s25 + $0xac] sm:$0xf] }
 0x237   : > { %1917 = vst.msk [vmem:[#allocation2] sm:$0xf] %vm1916_vm12, %v1821_v59  ;;  %v1689_v62 = vpop.permute.xlu0 %1688  ;;  %v3156_v59 = vld [vmem:[%s3526_s25 + $0xb8] sm:$0xf] }
 0x238   : > { %1754 = vst.msk [vmem:[#allocation2 + $0x7c] sm:$0xf] %vm1722_vm11, %v1689_v62  ;;  %2516 = vrot.lane.b32.xlu2 %v2423_v1, %s3457_s5  ;;  %v3181_v62 = vrot.slane %v3155_v58, 9  ;;  %v3173_v1 = vrot.slane %v3131_v60, 9  ;;  %v2070_v3 = vrot.slane %v2068_v56, 4 }
 0x239   : > { %v3154_v58 = vld [vmem:[%s3526_s25 + $0xb0] sm:$0x1] }
 0x23a   : > { %v1841_v9 = vpop.permute.xlu2 %1840 }
 0x23b   : > { %1927 = vst.msk [vmem:[#allocation2 + $0x28] sm:$0xf] %vm1916_vm12, %v1841_v9  ;;  %v2405_v9 = vrot.slane %v3196_v5, 6 }
 0x23c   : > { %2548 = vrot.lane.b32.xlu1 %v2479_v63, %s3457_s5  ;;  %v2124_v63 = vrot.slane %v3156_v59, 5 }
 0x23d   : > { %2546 = vrot.lane.b32.xlu0 %v2476_v2, %s3457_s5  ;;  %v2407_v15 = vrot.slane %v2405_v9, 4 }
 0x23e   : > { %v1827_v7 = vpop.permute.xlu1 %1826  ;;  %v2125_v8 = vsel %vm3528_vm2, %v3181_v62, %v2124_v63  ;;  %v2126_v17 = vrot.slane %v2124_v63, 4 }
 0x23f   : > { %1920 = vst.msk [vmem:[#allocation2 + $0xc] sm:$0xf] %vm1916_vm12, %v1827_v7  ;;  %v1825_v10 = vpop.permute.xlu0 %1824  ;;  %v2409_v24 = vsel %vm3682_vm6, %v2407_v15, %v2408_v16  ;;  %v3216_v15 = vld [vmem:[%s3526_s25 + $0xa8] sm:$0xc] }
 0x240   : > { %1919 = vst.msk [vmem:[#allocation2 + $0x8] sm:$0xf] %vm1916_vm12, %v1825_v10  ;;  %1868 = vrot.lane.b32.xlu2 %v3114_v13, %s3455_s3  ;;  %v2069_v10 = vsel %vm3528_vm2, %v3173_v1, %v2068_v56  ;;  %v3157_v13 = vld [vmem:[%s3526_s25 + $0xbc] sm:$0x1]  ;;  %v3193_v56 = vld [vmem:[%s3526_s25 + $0x4c] sm:$0xf] }
 0x241   : > { %v2127_v18 = vrot.slane %v3157_v13, 5  ;;  %v2398_v60 = vrot.slane %v3193_v56, 6  ;;  %v2120_v1 = vrot.slane %v3154_v58, 5  ;;  %v3218_v13 = vld [vmem:[%s3526_s25 + $0xb0] sm:$0x3] }
 0x242   : > { %v1847_v25 = vpop.permute.xlu2 %1846  ;;  %v3213_v58 = vld [vmem:[%s3526_s25 + $0x9c] sm:$0xc] }
 0x243   : > { %1930 = vst.msk [vmem:[#allocation2 + $0x34] sm:$0xf] %vm1916_vm12, %v1847_v25  ;;  %v2128_v25 = vsel %vm3528_vm2, %v2126_v17, %v2127_v18  ;;  %v2457_v17 = vrot.slane %v3218_v13, 6  ;;  %v2400_v18 = vrot.slane %v2398_v60, 4 }
 0x244   : > { %2173 = vrot.lane.b32.xlu1 %v2076_v11, %s3456_s4  ;;  %v2072_v11 = vsel %vm3528_vm2, %v2070_v3, %v2071_v4  ;;  %v3217_v3 = vld [vmem:[%s3526_s25 + $0xac] sm:$0xf] }
 0x245   : > { %1870 = vrot.lane.b32.xlu0 %v3115_v14, %s3455_s3  ;;  %v3195_v14 = vld [vmem:[%s3526_s25 + $0x54] sm:$0xc] }
 0x246   : > { %v1833_v22 = vpop.permute.xlu1 %1832  ;;  %v3237_v20 = vrot.slane %v3195_v14, 10  ;;  %v3194_v14 = vld [vmem:[%s3526_s25 + $0x50] sm:$0x3] }
 0x247   : > { %1923 = vst.msk [vmem:[#allocation2 + $0x18] sm:$0xf] %vm1916_vm12, %v1833_v22  ;;  %v1831_v26 = vpop.permute.xlu0 %1830 }
 0x248   : > { %1922 = vst.msk [vmem:[#allocation2 + $0x14] sm:$0xf] %vm1916_vm12, %v1831_v26  ;;  %2175 = vrot.lane.b32.xlu2 %v2079_v30, %s3456_s4  ;;  %v2406_v26 = vsel %vm3682_vm6, %v3237_v20, %v2405_v9  ;;  %v3221_v30 = vld [vmem:[%s3526_s25 + $0xbc] sm:$0x3] }
 0x249   : > { %v2464_v34 = vrot.slane %v3221_v30, 6 }
 0x24a   : > { %v1881_v42 = vpop.permute.xlu2 %1880 }
 0x24b   : > { %1947 = vst.msk [vmem:[#allocation2 + $0x78] sm:$0xf] %vm1916_vm12, %v1881_v42  ;;  %v3130_v42 = vld [vmem:[%s3526_s25 + $0x50] sm:$0x1] }
 0x24c   : > { %2207 = vrot.lane.b32.xlu1 %v2135_v27, %s3456_s4  ;;  %v2461_v27 = vrot.slane %v3220_v23, 6 }
 0x24d   : > { %2205 = vrot.lane.b32.xlu0 %v2132_v31, %s3456_s4  ;;  %v3245_v31 = vrot.slane %v3219_v28, 10  ;;  %v3126_v28 = vld [vmem:[%s3526_s25 + $0x40] sm:$0xf] }
 0x24e   : > { %v1839_v39 = vpop.permute.xlu1 %1838  ;;  %v2463_v33 = vrot.slane %v2461_v27, 4 }
 0x24f   : > { %1926 = vst.msk [vmem:[#allocation2 + $0x24] sm:$0xf] %vm1916_vm12, %v1839_v39  ;;  %v1837_v43 = vpop.permute.xlu0 %1836  ;;  %v2061_v39 = vrot.slane %v3129_v35, 5  ;;  %v2462_v40 = vsel %vm3682_vm6, %v3245_v31, %v2461_v27  ;;  %v3125_v27 = vld [vmem:[%s3526_s25 + $0x3c] sm:$0xe]  ;;  %v2054_v31 = vrot.slane %v3126_v28, 5 }
 0x250   : > { %1925 = vst.msk [vmem:[#allocation2 + $0x20] sm:$0xf] %vm1916_vm12, %v1837_v43  ;;  %2510 = vrot.lane.b32.xlu2 %v2413_v45, %s3457_s5  ;;  %v2465_v41 = vsel %vm3682_vm6, %v2463_v33, %v2464_v34  ;;  %v3128_v43 = vld [vmem:[%s3526_s25 + $0x48] sm:$0xe]  ;;  %v2064_v45 = vrot.slane %v3130_v42, 5  ;;  %v3171_v30 = vrot.slane %v3125_v27, 9 }
 0x251   : > { %v3172_v47 = vrot.slane %v3128_v43, 9  ;;  %v3150_v33 = vld [vmem:[%s3526_s25 + $0xa0] sm:$0xf]  ;;  %v3149_v42 = vld [vmem:[%s3526_s25 + $0x9c] sm:$0xe] }
 0x252   : > { %v2188_v52 = vpop.permute.xlu2 %2187 }
 0x254   : > { %2542 = vrot.lane.b32.xlu1 %v2469_v44, %s3457_s5  ;;  %v2063_v44 = vrot.slane %v2061_v39, 4 }
 0x255   : > { %2512 = vrot.lane.b32.xlu0 %v2416_v46, %s3457_s5 }
 0x256   : > { %v1845_v50 = vpop.permute.xlu1 %1844  ;;  %v2065_v51 = vsel %vm3528_vm2, %v2063_v44, %v2064_v45  ;;  %v2056_v45 = vrot.slane %v2054_v31, 4 }
 0x257   : > { %1929 = vst.msk [vmem:[#allocation2 + $0x30] sm:$0xf] %vm1916_vm12, %v1845_v50  ;;  %v1843_v53 = vpop.permute.xlu0 %1842 }
 0x258   : > { %1928 = vst.msk [vmem:[#allocation2 + $0x2c] sm:$0xf] %vm1916_vm12, %v1843_v53  ;;  %2544 = vrot.lane.b32.xlu2 %v2472_v57, %s3457_s5  ;;  %v3111_v53 = vld [vmem:[%s3526_s25 + $0xac] sm:$0xf]  ;;  %v3152_v57 = vld [vmem:[%s3526_s25 + $0xa8] sm:$0xe] }
 0x259   : > { %v3180_v61 = vrot.slane %v3152_v57, 9 }
 0x25a   : > { %v2523_v6 = vpop.permute.xlu2 %2522 }
 0x25c   : > { %1866 = vrot.lane.b32.xlu1 %v3113_v54, %s3455_s3  ;;  %v2062_v54 = vsel %vm3528_vm2, %v3172_v47, %v2061_v39  ;;  %v3109_v39 = vld [vmem:[%s3526_s25 + $0xa0] sm:$0xf] }
 0x25d   : > { %1864 = vrot.lane.b32.xlu0 %v3112_v55, %s3455_s3  ;;  %v3192_v55 = vld [vmem:[%s3526_s25 + $0x48] sm:$0xc] }
 0x25e   : > { %v1851_v2 = vpop.permute.xlu1 %1850  ;;  %v3236_v59 = vrot.slane %v3192_v55, 10 }
 0x25f   : > { %1932 = vst.msk [vmem:[#allocation2 + $0x3c] sm:$0xf] %vm1916_vm12, %v1851_v2  ;;  %v1849_v7 = vpop.permute.xlu0 %1848 }
 0x260   : > { %1931 = vst.msk [vmem:[#allocation2 + $0x38] sm:$0xf] %vm1916_vm12, %v1849_v7  ;;  %2169 = vrot.lane.b32.xlu2 %v2069_v10, %s3456_s4  ;;  %v2399_v9 = vsel %vm3682_vm6, %v3236_v59, %v2398_v60  ;;  %v2454_v10 = vrot.slane %v3217_v3, 6  ;;  %v3214_v59 = vld [vmem:[%s3526_s25 + $0xa0] sm:$0xf] }
 0x261   : > { %2269 = vst.msk [vmem:[#allocation2 + $0x3c] sm:$0xf] %vm2253_vm13, %v2188_v52  ;;  %v2117_v52 = vrot.slane %v3153_v48, 5  ;;  %v3179_v48 = vrot.slane %v3149_v42, 9  ;;  %v3189_v60 = vld [vmem:[%s3526_s25 + $0x3c] sm:$0xc] }
 0x262   : > { %v2557_v21 = vpop.permute.xlu2 %2556  ;;  %v2456_v16 = vrot.slane %v2454_v10, 4 }
 0x263   : > { %v2119_v63 = vrot.slane %v2117_v52, 4 }
 0x264   : > { %2201 = vrot.lane.b32.xlu1 %v2125_v8, %s3456_s4 }
 0x265   : > { %2171 = vrot.lane.b32.xlu0 %v2072_v11, %s3456_s4  ;;  %v2118_v11 = vsel %vm3528_vm2, %v3180_v61, %v2117_v52  ;;  %v2121_v12 = vsel %vm3528_vm2, %v2119_v63, %v2120_v1  ;;  %v3191_v61 = vld [vmem:[%s3526_s25 + $0x44] sm:$0x3]  ;;  %v2447_v63 = vrot.slane %v3214_v59, 6  ;;  %v3235_v1 = vrot.slane %v3189_v60, 10 }
 0x266   : > { %v2186_v19 = vpop.permute.xlu1 %2185 }
 0x267   : > { %2268 = vst.msk [vmem:[#allocation2 + $0x38] sm:$0xf] %vm2253_vm13, %v2186_v19  ;;  %v1883_v22 = vpop.permute.xlu0 %1882  ;;  %v2401_v19 = vrot.slane %v3194_v14, 6  ;;  %v2449_v13 = vrot.slane %v2447_v63, 4 }
 0x268   : > { %1948 = vst.msk [vmem:[#allocation2 + $0x7c] sm:$0xf] %vm1916_vm12, %v1883_v22  ;;  %2203 = vrot.lane.b32.xlu2 %v2128_v25, %s3456_s4 }
 0x269   : > { %2605 = vst.msk [vmem:[#allocation2 + $0x38] sm:$0xf] %vm2590_vm14, %v2523_v6  ;;  %v2402_v25 = vsel %vm3682_vm6, %v2400_v18, %v2401_v19  ;;  %v3107_v19 = vld [vmem:[%s3526_s25 + $0x94] sm:$0xf] }
 0x26a   : > { %v2182_v36 = vpop.permute.xlu2 %2181 }
 0x26b   : > { %2266 = vst.msk [vmem:[#allocation2 + $0x30] sm:$0xf] %vm2253_vm13, %v2182_v36  ;;  %v2055_v36 = vsel %vm3528_vm2, %v3171_v30, %v2054_v31 }
 0x26c   : > { %2508 = vrot.lane.b32.xlu1 %v2409_v24, %s3457_s5  ;;  %v2458_v24 = vsel %vm3682_vm6, %v2456_v16, %v2457_v17  ;;  %v3123_v16 = vld [vmem:[%s3526_s25 + $0x34] sm:$0xf] }
 0x26d   : > { %2506 = vrot.lane.b32.xlu0 %v2406_v26, %s3457_s5 }
 0x26e   : > { %v2220_v32 = vpop.permute.xlu1 %2219 }
 0x26f   : > { %2285 = vst.msk [vmem:[#allocation2 + $0x7c] sm:$0xf] %vm2253_vm13, %v2220_v32  ;;  %v2218_v37 = vpop.permute.xlu0 %2217 }
 0x270   : > { %2284 = vst.msk [vmem:[#allocation2 + $0x78] sm:$0xf] %vm2253_vm13, %v2218_v37  ;;  %2538 = vrot.lane.b32.xlu2 %v2462_v40, %s3457_s5  ;;  %v2110_v37 = vrot.slane %v3150_v33, 5  ;;  %v3151_v40 = vld [vmem:[%s3526_s25 + $0xa4] sm:$0x1] }
 0x271   : > { %2622 = vst.msk [vmem:[#allocation2 + $0x7c] sm:$0xf] %vm2590_vm14, %v2557_v21  ;;  %v3244_v21 = vrot.slane %v3216_v15, 10  ;;  %v2113_v44 = vrot.slane %v3151_v40, 5 }
 0x272   : > { %v2216_v49 = vpop.permute.xlu2 %2215  ;;  %v2112_v43 = vrot.slane %v2110_v37, 4  ;;  %v2111_v57 = vsel %vm3528_vm2, %v3179_v48, %v2110_v37 }
 0x273   : > { %v2455_v26 = vsel %vm3682_vm6, %v3244_v21, %v2454_v10  ;;  %v2047_v21 = vrot.slane %v3123_v16, 5 }
 0x274   : > { %1860 = vrot.lane.b32.xlu1 %v3110_v38, %s3455_s3  ;;  %v3108_v38 = vld [vmem:[%s3526_s25 + $0x9c] sm:$0xf] }
 0x275   : > { %2540 = vrot.lane.b32.xlu0 %v2465_v41, %s3457_s5  ;;  %v3127_v41 = vld [vmem:[%s3526_s25 + $0x44] sm:$0x1] }
 0x276   : > { %v2555_v46 = vpop.permute.xlu1 %2554 }
 0x277   : > { %2621 = vst.msk [vmem:[#allocation2 + $0x78] sm:$0xf] %vm2590_vm14, %v2555_v46  ;;  %v2525_v50 = vpop.permute.xlu0 %2524  ;;  %v2057_v46 = vrot.slane %v3127_v41, 5 }
 0x278   : > { %2606 = vst.msk [vmem:[#allocation2 + $0x3c] sm:$0xf] %vm2590_vm14, %v2525_v50  ;;  %1862 = vrot.lane.b32.xlu2 %v3111_v53, %s3455_s3 }
 0x279   : > { %v2058_v56 = vsel %vm3528_vm2, %v2056_v45, %v2057_v46  ;;  %v3186_v45 = vld [vmem:[%s3526_s25 + $0x30] sm:$0xc] }
 0x27a   : > { %v2551_v4 = vpop.permute.xlu2 %2550 }
 0x27c   : > { %2167 = vrot.lane.b32.xlu1 %v2065_v51, %s3456_s4 }
 0x27d   : > { %2165 = vrot.lane.b32.xlu0 %v2062_v54, %s3456_s4  ;;  %v2114_v54 = vsel %vm3528_vm2, %v2112_v43, %v2113_v44  ;;  %v3188_v43 = vld [vmem:[%s3526_s25 + $0x38] sm:$0x3] }
 0x27e   : > { %v1879_v62 = vpop.permute.xlu1 %1878  ;;  %v3336_v2 = vld [vmem:[#allocation2 + $0x78] sm:$0xff] }
 0x27f   : > { %1946 = vst.msk [vmem:[#allocation2 + $0x74] sm:$0xf] %vm1916_vm12, %v1879_v62  ;;  %v1877_v5 = vpop.permute.xlu0 %1876  ;;  %v3328_v6 = vld [vmem:[#allocation2 + $0x38] sm:$0xff]  ;;  %v2786_v7 = vsel %vm2736_vm15, %v3336_v2, 0  ;;  %v3243_v62 = vrot.slane %v3213_v58, 10 }
 0x280   : > { %1945 = vst.msk [vmem:[#allocation2 + $0x70] sm:$0xf] %vm1916_vm12, %v1877_v5  ;;  %v2762_v8 = vsel %vm2736_vm15, %v3328_v6, 0  ;;  %2801 = vmatpush.bf16.xpose.msra.mxu1 %v2786_v7  ;;  %2197 = vrot.lane.b32.xlu2 %v2118_v11, %s3456_s4  ;;  %v3148_v44 = vld [vmem:[%s3526_s25 + $0x98] sm:$0x1] }
 0x281   : > { %2283 = vst.msk [vmem:[#allocation2 + $0x74] sm:$0xf] %vm2253_vm13, %v2216_v49  ;;  %2788 = vmatpush.bf16.xpose.msra.mxu0 %v2762_v8  ;;  %v3190_v49 = vld [vmem:[%s3526_s25 + $0x40] sm:$0xf] }
 0x282   : > { %v1875_v22 = vpop.permute.xlu2 %1874  ;;  %v2391_v55 = vrot.slane %v3190_v49, 6  ;;  %v2106_v49 = vrot.slane %v3148_v44, 5 }
 0x283   : > { %1944 = vst.msk [vmem:[#allocation2 + $0x6c] sm:$0xf] %vm1916_vm12, %v1875_v22 }
 0x284   : > { %2502 = vrot.lane.b32.xlu1 %v2399_v9, %s3457_s5  ;;  %v2393_v3 = vrot.slane %v2391_v55, 4  ;;  %v2448_v9 = vsel %vm3682_vm6, %v3243_v62, %v2447_v63  ;;  %v2392_v10 = vsel %vm3682_vm6, %v3235_v1, %v2391_v55  ;;  %v3211_v55 = vld [vmem:[%s3526_s25 + $0x94] sm:$0xf]  ;;  %v3212_v62 = vld [vmem:[%s3526_s25 + $0x98] sm:$0x3] }
 0x285   : > { %2199 = vrot.lane.b32.xlu0 %v2121_v12, %s3456_s4  ;;  %v3215_v12 = vld [vmem:[%s3526_s25 + $0xa4] sm:$0x3]  ;;  %v2440_v60 = vrot.slane %v3211_v55, 6 }
 0x286   : > { %v2214_v20 = vpop.permute.xlu1 %2213  ;;  %v2450_v14 = vrot.slane %v3215_v12, 6 }
 0x287   : > { %2282 = vst.msk [vmem:[#allocation2 + $0x70] sm:$0xf] %vm2253_vm13, %v2214_v20  ;;  %v2184_v23 = vpop.permute.xlu0 %2183  ;;  %v3106_v20 = vld [vmem:[%s3526_s25 + $0x90] sm:$0xf] }
 0x288   : > { %2267 = vst.msk [vmem:[#allocation2 + $0x34] sm:$0xf] %vm2253_vm13, %v2184_v23  ;;  %2504 = vrot.lane.b32.xlu2 %v2402_v25, %s3457_s5  ;;  %v2451_v22 = vsel %vm3682_vm6, %v2449_v13, %v2450_v14  ;;  %v3146_v23 = vld [vmem:[%s3526_s25 + $0x90] sm:$0xe] }
 0x289   : > { %2619 = vst.msk [vmem:[#allocation2 + $0x70] sm:$0xf] %vm2590_vm14, %v2551_v4  ;;  %v2394_v4 = vrot.slane %v3191_v61, 6  ;;  %v3122_v25 = vld [vmem:[%s3526_s25 + $0x30] sm:$0xe]  ;;  %v3178_v27 = vrot.slane %v3146_v23, 9 }
 0x28a   : > { %v2210_v34 = vpop.permute.xlu2 %2209  ;;  %v3170_v30 = vrot.slane %v3122_v25, 9  ;;  %v3210_v61 = vld [vmem:[%s3526_s25 + $0x90] sm:$0xc] }
 0x28b   : > { %v2395_v11 = vsel %vm3682_vm6, %v2393_v3, %v2394_v4  ;;  %v3242_v63 = vrot.slane %v3210_v61, 10  ;;  %v2443_v3 = vrot.slane %v3212_v62, 6 }
 0x28c   : > { %2536 = vrot.lane.b32.xlu1 %v2458_v24, %s3457_s5  ;;  %v3147_v24 = vld [vmem:[%s3526_s25 + $0x94] sm:$0xf]  ;;  %v2048_v41 = vsel %vm3528_vm2, %v3170_v30, %v2047_v21 }
 0x28d   : > { %2534 = vrot.lane.b32.xlu0 %v2455_v26, %s3457_s5  ;;  %v3124_v26 = vld [vmem:[%s3526_s25 + $0x38] sm:$0x1]  ;;  %v2103_v28 = vrot.slane %v3147_v24, 5 }
 0x28e   : > { %v2521_v32 = vpop.permute.xlu1 %2520  ;;  %v2050_v33 = vrot.slane %v3124_v26, 5 }
 0x28f   : > { %2604 = vst.msk [vmem:[#allocation2 + $0x34] sm:$0xf] %vm2590_vm14, %v2521_v32  ;;  %v2519_v35 = vpop.permute.xlu0 %2518  ;;  %v2049_v32 = vrot.slane %v2047_v21, 4  ;;  %v2105_v48 = vrot.slane %v2103_v28, 4 }
 0x290   : > { %2603 = vst.msk [vmem:[#allocation2 + $0x30] sm:$0xf] %vm2590_vm14, %v2519_v35  ;;  %1856 = vrot.lane.b32.xlu2 %v3108_v38, %s3455_s3  ;;  %v3187_v35 = vld [vmem:[%s3526_s25 + $0x34] sm:$0xf]  ;;  %s2832_s25 = sshll.u32 %s2828_s23, 4  ;;  %s2833_s25 = int_to_ptr.hbm [resolvable:$true] %s2832_s25 }
 0x291   : > { %v2384_v40 = vrot.slane %v3187_v35, 6  ;;  %v2051_v42 = vsel %vm3528_vm2, %v2049_v32, %v2050_v33  ;;  %v2107_v58 = vsel %vm3528_vm2, %v2105_v48, %v2106_v49  ;;  %s3400_s27 = sshra.s32 %s2833_s25, 4  ;;  %s3401_s27 = int_to_ptr.hbm [resolvable:$true] %s3400_s27 }
 0x292   : > { %v2517_v50 = vpop.permute.xlu2 %2516  ;;  %s3402_s28 = scalar_lea.hbm %s3401_s27, 16  ;;  %p3407_p0 = scmp.lt.s32.totalorder %s3401_s27, %s4903_s2 }
 0x293   : > { %v2386_v46 = vrot.slane %v2384_v40, 4  ;;  %p3403_p11 = scmp.ne.s32.totalorder %s3401_s27, %s3402_s28  ;;  %p3408_p1 = scmp.lt.s32.totalorder %s3406_s30, %s3402_s28 }
 0x294   : > { %2161 = vrot.lane.b32.xlu1 %v2055_v36, %s3456_s4 }
 0x295   : > { %1858 = vrot.lane.b32.xlu0 %v3109_v39, %s3455_s3  ;;  %v2104_v39 = vsel %vm3528_vm2, %v3178_v27, %v2103_v28  ;;  %p3404_p12 = pnand %p3403_p11, %p3511_p5  ;;  %p3409_p2 = por %p3408_p1, %p3407_p0 }
 0x296   : > { %v1873_v47 = vpop.permute.xlu1 %1872 }
 0x297   : > { %1943 = vst.msk [vmem:[#allocation2 + $0x68] sm:$0xf] %vm1916_vm12, %v1873_v47  ;;  %v2553_v51 = vpop.permute.xlu0 %2552  ;;  %v3327_v52 = vld [vmem:[#allocation2 + $0x30] sm:$0xff]  ;;  %v2387_v47 = vrot.slane %v3188_v43, 6  ;;  %p3405_p13 = pneg %p3404_p12 }
 0x298   : > { %2620 = vst.msk [vmem:[#allocation2 + $0x74] sm:$0xf] %vm2590_vm14, %v2553_v51  ;;  %v2759_v53 = vsel %vm2736_vm15, %v3327_v52, 0  ;;  %2163 = vrot.lane.b32.xlu2 %v2058_v56, %s3456_s4  ;;  %v3234_v51 = vrot.slane %v3186_v45, 10 }
 0x299   : > { %2280 = vst.msk [vmem:[#allocation2 + $0x68] sm:$0xf] %vm2253_vm13, %v2210_v34  ;;  %2789 = vmatpush.bf16.xpose.msra.mxu0 %v2759_v53  ;;  %p3410_p3 = pnand %p3409_p2, %p3405_p13 }
 0x29a   : > { %v1869_v5 = vpop.permute.xlu2 %1868  ;;  %v2385_v59 = vsel %vm3682_vm6, %v3234_v51, %v2384_v40 }
 0x29b   : > { %1941 = vst.msk [vmem:[#allocation2 + $0x60] sm:$0xf] %vm1916_vm12, %v1869_v5  ;;  %v2441_v5 = vsel %vm3682_vm6, %v3242_v63, %v2440_v60 }
 0x29c   : > { %2195 = vrot.lane.b32.xlu1 %v2114_v54, %s3456_s4 }
 0x29d   : > { %2193 = vrot.lane.b32.xlu0 %v2111_v57, %s3456_s4  ;;  %v2388_v57 = vsel %vm3682_vm6, %v2386_v46, %v2387_v47 }
 0x29e   : > { %v2180_v2 = vpop.permute.xlu1 %2179 }
 0x29f   : > { %2265 = vst.msk [vmem:[#allocation2 + $0x2c] sm:$0xf] %vm2253_vm13, %v2180_v2  ;;  %v2178_v6 = vpop.permute.xlu0 %2177  ;;  %v3335_v7 = vld [vmem:[#allocation2 + $0x70] sm:$0xff]  ;;  %v2442_v2 = vrot.slane %v2440_v60, 4 }
 0x2a0   : > { %2264 = vst.msk [vmem:[#allocation2 + $0x28] sm:$0xf] %vm2253_vm13, %v2178_v6  ;;  %v2783_v8 = vsel %vm2736_vm15, %v3335_v7, 0  ;;  %2498 = vrot.lane.b32.xlu2 %v2392_v10, %s3457_s5 }
 0x2a1   : > { %2602 = vst.msk [vmem:[#allocation2 + $0x2c] sm:$0xf] %vm2590_vm14, %v2517_v50  ;;  %2802 = vmatpush.bf16.xpose.msra.mxu1 %v2783_v8  ;;  %v2444_v6 = vsel %vm3682_vm6, %v2442_v2, %v2443_v3  ;;  %v2623_v3 = vld [vmem:[%s4902_s1] sm:$0xf] }
 0x2a2   : > { %v2176_v17 = vpop.permute.xlu2 %2175 }
 0x2a3   : > { %2263 = vst.msk [vmem:[#allocation2 + $0x24] sm:$0xf] %vm2253_vm13, %v2176_v17 }
 0x2a4   : > { %2530 = vrot.lane.b32.xlu1 %v2448_v9, %s3457_s5 }
 0x2a5   : > { %2500 = vrot.lane.b32.xlu0 %v2395_v11, %s3457_s5 }
 0x2a6   : > { %v2515_v15 = vpop.permute.xlu1 %2514 }
 0x2a7   : > { %2601 = vst.msk [vmem:[#allocation2 + $0x28] sm:$0xf] %vm2590_vm14, %v2515_v15  ;;  %v2212_v18 = vpop.permute.xlu0 %2211 }
 0x2a8   : > { %2281 = vst.msk [vmem:[#allocation2 + $0x6c] sm:$0xf] %vm2253_vm13, %v2212_v18  ;;  %2532 = vrot.lane.b32.xlu2 %v2451_v22, %s3457_s5 }
 0x2aa   : > { %v2511_v36 = vpop.permute.xlu2 %2510 }
 0x2ac   : > { %1854 = vrot.lane.b32.xlu1 %v3107_v19, %s3455_s3 }
 0x2ad   : > { %1852 = vrot.lane.b32.xlu0 %v3106_v20, %s3455_s3 }
 0x2ae   : > { %v2549_v31 = vpop.permute.xlu1 %2548  ;;  %v3326_v34 = vld [vmem:[#allocation2 + $0x28] sm:$0xff] }
 0x2af   : > { %2618 = vst.msk [vmem:[#allocation2 + $0x6c] sm:$0xf] %vm2590_vm14, %v2549_v31  ;;  %v2547_v37 = vpop.permute.xlu0 %2546  ;;  %v2756_v38 = vsel %vm2736_vm15, %v3326_v34, 0 }
 0x2b0   : > { %2617 = vst.msk [vmem:[#allocation2 + $0x68] sm:$0xf] %vm2590_vm14, %v2547_v37  ;;  %2790 = vmatpush.bf16.xpose.msra.mxu0 %v2756_v38  ;;  %2157 = vrot.lane.b32.xlu2 %v2048_v41, %s3456_s4 }
 0x2b2   : > { %v2545_v52 = vpop.permute.xlu2 %2544 }
 0x2b4   : > { %2189 = vrot.lane.b32.xlu1 %v2104_v39, %s3456_s4 }
 0x2b5   : > { %2159 = vrot.lane.b32.xlu0 %v2051_v42, %s3456_s4 }
 0x2b6   : > { %v2174_v50 = vpop.permute.xlu1 %2173 }
 0x2b7   : > { %2262 = vst.msk [vmem:[#allocation2 + $0x20] sm:$0xf] %vm2253_vm13, %v2174_v50  ;;  %v1871_v53 = vpop.permute.xlu0 %1870  ;;  %v3334_v54 = vld [vmem:[#allocation2 + $0x68] sm:$0xff] }
 0x2b8   : > { %1942 = vst.msk [vmem:[#allocation2 + $0x64] sm:$0xf] %vm1916_vm12, %v1871_v53  ;;  %v2780_v56 = vsel %vm2736_vm15, %v3334_v54, 0  ;;  %2191 = vrot.lane.b32.xlu2 %v2107_v58, %s3456_s4 }
 0x2b9   : > { %2599 = vst.msk [vmem:[#allocation2 + $0x20] sm:$0xf] %vm2590_vm14, %v2511_v36  ;;  %2803 = vmatpush.bf16.xpose.msra.mxu1 %v2780_v56 }
 0x2ba   : > { %v2170_v4 = vpop.permute.xlu2 %2169 }
 0x2bb   : > { %2260 = vst.msk [vmem:[#allocation2 + $0x18] sm:$0xf] %vm2253_vm13, %v2170_v4 }
 0x2bc   : > { %2496 = vrot.lane.b32.xlu1 %v2388_v57, %s3457_s5 }
 0x2bd   : > { %2494 = vrot.lane.b32.xlu0 %v2385_v59, %s3457_s5 }
 0x2be   : > { %v2208_v1 = vpop.permute.xlu1 %2207 }
 0x2bf   : > { %2279 = vst.msk [vmem:[#allocation2 + $0x64] sm:$0xf] %vm2253_vm13, %v2208_v1  ;;  %v2206_v0 = vpop.permute.xlu0 %2205 }
 0x2c0   : > { %2278 = vst.msk [vmem:[#allocation2 + $0x60] sm:$0xf] %vm2253_vm13, %v2206_v0  ;;  %2526 = vrot.lane.b32.xlu2 %v2441_v5, %s3457_s5 }
 0x2c1   : > { %2616 = vst.msk [vmem:[#allocation2 + $0x64] sm:$0xf] %vm2590_vm14, %v2545_v52 }
 0x2c2   : > { %v2204_v8 = vpop.permute.xlu2 %2203 }
 0x2c5   : > { %2528 = vrot.lane.b32.xlu0 %v2444_v6, %s3457_s5 }
 0x2c6   : > { %v2543_v7 = vpop.permute.xlu1 %2542 }
 0x2c7   : > { %2615 = vst.msk [vmem:[#allocation2 + $0x60] sm:$0xf] %vm2590_vm14, %v2543_v7  ;;  %v2513_v9 = vpop.permute.xlu0 %2512 }
 0x2c8   : > { %2600 = vst.msk [vmem:[#allocation2 + $0x24] sm:$0xf] %vm2590_vm14, %v2513_v9 }
 0x2ca   : > { %v2539_v12 = vpop.permute.xlu2 %2538 }
 0x2ce   : > { %v1867_v10 = vpop.permute.xlu1 %1866  ;;  %v3333_v11 = vld [vmem:[#allocation2 + $0x60] sm:$0xff] }
 0x2cf   : > { %1940 = vst.msk [vmem:[#allocation2 + $0x5c] sm:$0xf] %vm1916_vm12, %v1867_v10  ;;  %v1865_v29 = vpop.permute.xlu0 %1864  ;;  %v3325_v13 = vld [vmem:[#allocation2 + $0x20] sm:$0xff]  ;;  %v2777_v14 = vsel %vm2736_vm15, %v3333_v11, 0 }
 0x2d0   : > { %1939 = vst.msk [vmem:[#allocation2 + $0x58] sm:$0xf] %vm1916_vm12, %v1865_v29  ;;  %v2753_v15 = vsel %vm2736_vm15, %v3325_v13, 0  ;;  %2804 = vmatpush.bf16.xpose.msra.mxu1 %v2777_v14 }
 0x2d1   : > { %2277 = vst.msk [vmem:[#allocation2 + $0x5c] sm:$0xf] %vm2253_vm13, %v2204_v8  ;;  %2791 = vmatpush.bf16.xpose.msra.mxu0 %v2753_v15 }
 0x2d2   : > { %v1863_v17 = vpop.permute.xlu2 %1862 }
 0x2d3   : > { %1938 = vst.msk [vmem:[#allocation2 + $0x54] sm:$0xf] %vm1916_vm12, %v1863_v17 }
 0x2d6   : > { %v2202_v16 = vpop.permute.xlu1 %2201 }
 0x2d7   : > { %2276 = vst.msk [vmem:[#allocation2 + $0x58] sm:$0xf] %vm2253_vm13, %v2202_v16  ;;  %v2172_v18 = vpop.permute.xlu0 %2171 }
 0x2d8   : > { %2261 = vst.msk [vmem:[#allocation2 + $0x1c] sm:$0xf] %vm2253_vm13, %v2172_v18 }
 0x2d9   : > { %2613 = vst.msk [vmem:[#allocation2 + $0x58] sm:$0xf] %vm2590_vm14, %v2539_v12 }
 0x2da   : > { %v2198_v20 = vpop.permute.xlu2 %2197 }
 0x2de   : > { %v2509_v19 = vpop.permute.xlu1 %2508 }
 0x2df   : > { %2598 = vst.msk [vmem:[#allocation2 + $0x1c] sm:$0xf] %vm2590_vm14, %v2509_v19  ;;  %v2507_v21 = vpop.permute.xlu0 %2506 }
 0x2e0   : > { %2597 = vst.msk [vmem:[#allocation2 + $0x18] sm:$0xf] %vm2590_vm14, %v2507_v21 }
 0x2e2   : > { %v2505_v23 = vpop.permute.xlu2 %2504 }
 0x2e6   : > { %v1861_v22 = vpop.permute.xlu1 %1860 }
 0x2e7   : > { %1937 = vst.msk [vmem:[#allocation2 + $0x50] sm:$0xf] %vm1916_vm12, %v1861_v22  ;;  %v2541_v24 = vpop.permute.xlu0 %2540  ;;  %v3324_v25 = vld [vmem:[#allocation2 + $0x18] sm:$0xff] }
 0x2e8   : > { %2614 = vst.msk [vmem:[#allocation2 + $0x5c] sm:$0xf] %vm2590_vm14, %v2541_v24  ;;  %v2750_v26 = vsel %vm2736_vm15, %v3324_v25, 0 }
 0x2e9   : > { %2274 = vst.msk [vmem:[#allocation2 + $0x50] sm:$0xf] %vm2253_vm13, %v2198_v20  ;;  %2792 = vmatpush.bf16.xpose.msra.mxu0 %v2750_v26 }
 0x2ea   : > { %v1857_v28 = vpop.permute.xlu2 %1856 }
 0x2eb   : > { %1935 = vst.msk [vmem:[#allocation2 + $0x48] sm:$0xf] %vm1916_vm12, %v1857_v28 }
 0x2ee   : > { %v2168_v27 = vpop.permute.xlu1 %2167 }
 0x2ef   : > { %2259 = vst.msk [vmem:[#allocation2 + $0x14] sm:$0xf] %vm2253_vm13, %v2168_v27  ;;  %v2166_v30 = vpop.permute.xlu0 %2165  ;;  %v3332_v31 = vld [vmem:[#allocation2 + $0x58] sm:$0xff] }
 0x2f0   : > { %2258 = vst.msk [vmem:[#allocation2 + $0x10] sm:$0xf] %vm2253_vm13, %v2166_v30  ;;  %v2774_v32 = vsel %vm2736_vm15, %v3332_v31, 0 }
 0x2f1   : > { %2596 = vst.msk [vmem:[#allocation2 + $0x14] sm:$0xf] %vm2590_vm14, %v2505_v23  ;;  %2805 = vmatpush.bf16.xpose.msra.mxu1 %v2774_v32 }
 0x2f2   : > { %v2164_v34 = vpop.permute.xlu2 %2163 }
 0x2f3   : > { %2257 = vst.msk [vmem:[#allocation2 + $0xc] sm:$0xf] %vm2253_vm13, %v2164_v34 }
 0x2f6   : > { %v2503_v33 = vpop.permute.xlu1 %2502 }
 0x2f7   : > { %2595 = vst.msk [vmem:[#allocation2 + $0x10] sm:$0xf] %vm2590_vm14, %v2503_v33  ;;  %v2200_v35 = vpop.permute.xlu0 %2199 }
 0x2f8   : > { %2275 = vst.msk [vmem:[#allocation2 + $0x54] sm:$0xf] %vm2253_vm13, %v2200_v35 }
 0x2fa   : > { %v2499_v38 = vpop.permute.xlu2 %2498 }
 0x2fe   : > { %v2537_v36 = vpop.permute.xlu1 %2536  ;;  %v3323_v37 = vld [vmem:[#allocation2 + $0x10] sm:$0xff] }
 0x2ff   : > { %2612 = vst.msk [vmem:[#allocation2 + $0x54] sm:$0xf] %vm2590_vm14, %v2537_v36  ;;  %v2535_v39 = vpop.permute.xlu0 %2534  ;;  %v2747_v40 = vsel %vm2736_vm15, %v3323_v37, 0 }
 0x300   : > { %2611 = vst.msk [vmem:[#allocation2 + $0x50] sm:$0xf] %vm2590_vm14, %v2535_v39  ;;  %2793 = vmatpush.bf16.xpose.msra.mxu0 %v2747_v40 }
 0x302   : > { %v2533_v42 = vpop.permute.xlu2 %2532 }
 0x306   : > { %v2162_v41 = vpop.permute.xlu1 %2161 }
 0x307   : > { %2256 = vst.msk [vmem:[#allocation2 + $0x8] sm:$0xf] %vm2253_vm13, %v2162_v41  ;;  %v1859_v43 = vpop.permute.xlu0 %1858  ;;  %v3331_v44 = vld [vmem:[#allocation2 + $0x50] sm:$0xff] }
 0x308   : > { %1936 = vst.msk [vmem:[#allocation2 + $0x4c] sm:$0xf] %vm1916_vm12, %v1859_v43  ;;  %v2771_v45 = vsel %vm2736_vm15, %v3331_v44, 0 }
 0x309   : > { %2593 = vst.msk [vmem:[#allocation2 + $0x8] sm:$0xf] %vm2590_vm14, %v2499_v38  ;;  %2806 = vmatpush.bf16.xpose.msra.mxu1 %v2771_v45 }
 0x30a   : > { %v2158_v48 = vpop.permute.xlu2 %2157 }
 0x30b   : > { %2254 = vst.msk [vmem:[#allocation2] sm:$0xf] %vm2253_vm13, %v2158_v48 }
 0x30e   : > { %v2196_v46 = vpop.permute.xlu1 %2195 }
 0x30f   : > { %2273 = vst.msk [vmem:[#allocation2 + $0x4c] sm:$0xf] %vm2253_vm13, %v2196_v46  ;;  %v2194_v47 = vpop.permute.xlu0 %2193 }
 0x310   : > { %2272 = vst.msk [vmem:[#allocation2 + $0x48] sm:$0xf] %vm2253_vm13, %v2194_v47 }
 0x311   : > { %2610 = vst.msk [vmem:[#allocation2 + $0x4c] sm:$0xf] %vm2590_vm14, %v2533_v42 }
 0x312   : > { %v2192_v51 = vpop.permute.xlu2 %2191 }
 0x316   : > { %v2531_v49 = vpop.permute.xlu1 %2530 }
 0x317   : > { %2609 = vst.msk [vmem:[#allocation2 + $0x48] sm:$0xf] %vm2590_vm14, %v2531_v49  ;;  %v2501_v50 = vpop.permute.xlu0 %2500 }
 0x318   : > { %2594 = vst.msk [vmem:[#allocation2 + $0xc] sm:$0xf] %vm2590_vm14, %v2501_v50 }
 0x31a   : > { %v2527_v59 = vpop.permute.xlu2 %2526 }
 0x31e   : > { %v1855_v52 = vpop.permute.xlu1 %1854  ;;  %v3330_v53 = vld [vmem:[#allocation2 + $0x48] sm:$0xff] }
 0x31f   : > { %1934 = vst.msk [vmem:[#allocation2 + $0x44] sm:$0xf] %vm1916_vm12, %v1855_v52  ;;  %v1853_v54 = vpop.permute.xlu0 %1852  ;;  %v3322_v55 = vld [vmem:[#allocation2 + $0x8] sm:$0xff]  ;;  %v2768_v56 = vsel %vm2736_vm15, %v3330_v53, 0 }
 0x320   : > { %1933 = vst.msk [vmem:[#allocation2 + $0x40] sm:$0xf] %vm1916_vm12, %v1853_v54  ;;  %v2744_v57 = vsel %vm2736_vm15, %v3322_v55, 0  ;;  %2807 = vmatpush.bf16.xpose.msra.mxu1 %v2768_v56 }
 0x321   : > { %2271 = vst.msk [vmem:[#allocation2 + $0x44] sm:$0xf] %vm2253_vm13, %v2192_v51  ;;  %2794 = vmatpush.bf16.xpose.msra.mxu0 %v2744_v57 }
 0x326   : > { %v2190_v58 = vpop.permute.xlu1 %2189 }
 0x327   : > { %2270 = vst.msk [vmem:[#allocation2 + $0x40] sm:$0xf] %vm2253_vm13, %v2190_v58  ;;  %v2160_v60 = vpop.permute.xlu0 %2159 }
 0x328   : > { %2255 = vst.msk [vmem:[#allocation2 + $0x4] sm:$0xf] %vm2253_vm13, %v2160_v60 }
 0x329   : > { %2607 = vst.msk [vmem:[#allocation2 + $0x40] sm:$0xf] %vm2590_vm14, %v2527_v59 }
 0x32e   : > { %v2497_v61 = vpop.permute.xlu1 %2496 }
 0x32f   : > { %2592 = vst.msk [vmem:[#allocation2 + $0x4] sm:$0xf] %vm2590_vm14, %v2497_v61  ;;  %v2495_v62 = vpop.permute.xlu0 %2494 }
 0x330   : > { %2591 = vst.msk [vmem:[#allocation2] sm:$0xf] %vm2590_vm14, %v2495_v62 }
 0x337   : > { %v2529_v63 = vpop.permute.xlu0 %2528  ;;  %v3321_v1 = vld [vmem:[#allocation2] sm:$0xff] }
 0x338   : > { %2608 = vst.msk [vmem:[#allocation2 + $0x44] sm:$0xf] %vm2590_vm14, %v2529_v63  ;;  %v2741_v2 = vsel %vm2736_vm15, %v3321_v1, 0 }
 0x339   : > { %2795 = vmatpush.bf16.xpose.msra.mxu0 %v2741_v2 }
 0x33f   : > { %v3329_v4 = vld [vmem:[#allocation2 + $0x40] sm:$0xff] }
 0x340   : > { %3314 = vmatmul.msk.bf16.vlgmr.msra.gmra.mxu0 %vm2736_vm15, %v2623_v3  ;;  %v2765_v0 = vsel %vm2736_vm15, %v3329_v4, 0 }
 0x341   : > { %2808 = vmatpush.bf16.xpose.msra.mxu1 %v2765_v0 }
 0x348   : > { %3315 = vmatmul.msk.bf16.vlgmr.msra.gmra.mxu1 %vm2736_vm15, %v2623_v3 }
 0x3bd   : > { %v2797_v5 = vpop.f32.mrf.mxu0 }
 0x3be   : > { %2814 = vst [vmem:[%s136_s17] sm:$0xff] %v2797_v5 }
 0x3c5   : > { %v2799_v6 = vpop.f32.mrf.mxu0  ;;  %v2810_v7 = vpop.f32.mrf.mxu1 }
 0x3c6   : > { %2815 = vst [vmem:[%s136_s17 + $0x8] sm:$0xff] %v2810_v7 }
 0x3c7   : > { %3413 = shalt.err (!%p3410_p3)
}
 0x3c8   : > { %3339 = dma.vmem_to_hbm [thread:$0]  (%p3511_p5), %s2831_s24, 256, %s2833_s25, %s2817_s26  }
 0x3cd   : > { %v2812_v8 = vpop.f32.mrf.mxu1 }
 0x3ce PF: > { %p3345_p4 = scmp.ge.s32.totalorder %s3448_s12, 2  ;;  %s2844_s5 = sand.u32 1, %s3436_s9  }
 0x3cf   : > { %s2845_s6 = scalar_lea.sflag [#allocation4], %s2844_s5 }
 0x3d0   : > { %p3342_p7 = pnand %p3345_p4, %p3515_p6 }
 0x3d2   : > { %p3343_p8 = pneg %p3342_p7 }
 0x3d4   : > { %3431 = dma.done.wait (%p3343_p8), %s2845_s6, 256  }
 0x3d5   : > { %3433 = vsyncadd (%p3343_p8), %s2845_s6, 4294967040  ;;  %p12_p9 = scmp.ge.s32.totalorder %s3498_s15, 4   ;;  %s4910_s9 = smov %s3440_s10 }
 0x3d6   : > { %s4911_s10 = smov %s3444_s11  ;;  %s4912_s11 = smov %s3509_s18 }
 0x3d7   : > { %s4913_s12 = smov %s3498_s15  ;;  %14 = sbr.rel (!%p12_p9) target bundleno = 3 (0x3), region = 65 }
 0x3dc   :  { %2851 = vsyncpa [#allocation4], 1 }
 0x3dd   :  { %2853 = vsyncpa [#allocation4 + $0x1], 1 }

</bundles_post_ra>
